<compile_context>
chip_gen: v7x
topology: tpu7x:2x2x1
jax: 0.10.0
libtpu: 0.0.40
codegen_flags: <defaults>
</compile_context>

<pallas_src>
import functools

import jax
import jax.numpy as jnp
from jax import lax
from jax.experimental import pallas as pl
from jax.experimental.pallas import tpu as pltpu


def _leaky_relu(x, leak):
    return jnp.where(x > 0, x, leak * x)


def _round_up(x, m):
    return (x + m - 1) // m * m


def edge_model_kernel(x_ref,
                      w1_ref, b1_ref,
                      w2_ref, b2_ref,
                      w3_ref, b3_ref,
                      w4_ref, b4_ref,
                      w5t_ref, b5t_ref,
                      out_ref, *, leak):
    dt = w1_ref.dtype  # MXU operand dtype (bf16 or f32); accumulation is always f32

    # Layer 1: single wide-K matmul over the pre-concatenated [src|dest|edge_attr].
    h = jnp.dot(x_ref[...], w1_ref[...],
                preferred_element_type=jnp.float32) + b1_ref[...]
    h = _leaky_relu(h, leak)

    h = _leaky_relu(jnp.dot(h.astype(dt), w2_ref[...],
                            preferred_element_type=jnp.float32) + b2_ref[...], leak)
    h = _leaky_relu(jnp.dot(h.astype(dt), w3_ref[...],
                            preferred_element_type=jnp.float32) + b3_ref[...], leak)
    h = _leaky_relu(jnp.dot(h.astype(dt), w4_ref[...],
                            preferred_element_type=jnp.float32) + b4_ref[...], leak)

    # Final layer computed transposed: y_t[n, e] = sum_k w5t[n, k] * h[e, k]
    # (NT contraction) so the store is lane-dense (block (2, tile_e), full vst
    # instead of masked 2-of-128-lane stores).
    y_t = lax.dot_general(w5t_ref[...], h.astype(dt),
                          dimension_numbers=(((1,), (1,)), ((), ())),
                          preferred_element_type=jnp.float32)
    out_ref[...] = (y_t + b5t_ref[...]).astype(out_ref.dtype)


def edge_model_forward(src, dest, edge_attr, params, *, leak,
                       tile_e=512, compute_dtype=jnp.bfloat16):
    """Pallas wrapper. src/dest: (E, node_in), edge_attr: (E, edge_in) -> (E, 2)."""
    E = src.shape[0]

    # One wrapper-side concat -> a single contiguous HBM stream into the kernel.
    x = jnp.concatenate([src, dest, edge_attr], axis=1).astype(compute_dtype)
    f_in = x.shape[1]

    (w1, b1), (w2, b2), (w3, b3), (w4, b4), (w5, b5) = params
    w1 = w1.astype(compute_dtype)
    w2 = w2.astype(compute_dtype)
    w3 = w3.astype(compute_dtype)
    w4 = w4.astype(compute_dtype)
    w5t = w5.T.astype(compute_dtype)                  # (2, 8) for the NT final dot
    b5t = b5.reshape(-1, 1).astype(jnp.float32)       # (2, 1) broadcasts over lanes
    b1 = b1.astype(jnp.float32)
    b2 = b2.astype(jnp.float32)
    b3 = b3.astype(jnp.float32)
    b4 = b4.astype(jnp.float32)

    # Tile selection: multiples of 128 (keeps the lane-dense (2, tile_e) output block
    # legal), capped near E, and >=2 grid steps when possible so v7x megacore can
    # shard the "parallel" E axis across both TensorCores.
    tile_e = _round_up(min(tile_e, max(E, 1)), 128)
    if pl.cdiv(E, tile_e) < 2 and E > 128:
        tile_e = _round_up(pl.cdiv(E, 2), 128)
    n_tiles = pl.cdiv(E, tile_e)
    e_pad = n_tiles * tile_e

    if e_pad != E:
        x = jnp.pad(x, ((0, e_pad - E), (0, 0)))      # ragged tail -> zero pad

    def resident(a):
        return pl.BlockSpec(a.shape, lambda i: tuple(0 for _ in a.shape))

    in_specs = [
        pl.BlockSpec((tile_e, f_in), lambda i: (i, 0)),   # streaming input tiles
        resident(w1), resident(b1),
        resident(w2), resident(b2),
        resident(w3), resident(b3),
        resident(w4), resident(b4),
        resident(w5t), resident(b5t),
    ]
    out_spec = pl.BlockSpec((2, tile_e), lambda i: (0, i))

    weight_bytes = sum(int(a.size) * a.dtype.itemsize
                       for a in (w1, b1, w2, b2, w3, b3, w4, b4, w5t, b5t))
    cost = pl.CostEstimate(
        flops=2 * e_pad * (f_in * 64 + 64 * 32 + 32 * 16 + 16 * 8 + 8 * 2),
        transcendentals=0,
        bytes_accessed=int(e_pad * f_in * x.dtype.itemsize
                           + 2 * e_pad * 4 + weight_bytes),
    )

    out_t = pl.pallas_call(
        functools.partial(edge_model_kernel, leak=leak),
        out_shape=jax.ShapeDtypeStruct((2, e_pad), jnp.float32),
        grid_spec=pltpu.PrefetchScalarGridSpec(
            num_scalar_prefetch=0,
            grid=(n_tiles,),
            in_specs=in_specs,
            out_specs=out_spec,
        ),
        compiler_params=pltpu.CompilerParams(
            dimension_semantics=("parallel",)),
        cost_estimate=cost,
    )(x, w1, b1, w2, b2, w3, b3, w4, b4, w5t, b5t)

    return out_t[:, :E].T                              # back to (E, 2)


def init_params(key, node_in, edge_in):
    """Deterministic init mimicking torch.nn.Linear default (U[-1/sqrt(fan_in), +])."""
    dims = [2 * node_in + edge_in, 64, 32, 16, 8, 2]
    params = []
    for fin, fout in zip(dims[:-1], dims[1:]):
        key, kw, kb = jax.random.split(key, 3)
        bound = 1.0 / jnp.sqrt(fin)
        w = jax.random.uniform(kw, (fin, fout), jnp.float32, -bound, bound)
        b = jax.random.uniform(kb, (1, fout), jnp.float32, -bound, bound)
        params.append((w, b))
    return params


def reference_forward(src, dest, edge_attr, params, leak):
    x = jnp.concatenate([src, dest, edge_attr], axis=1)
    for i, (w, b) in enumerate(params):
        x = x @ w + b
        if i < len(params) - 1:
            x = jnp.where(x > 0, x, leak * x)
    return x


if __name__ == "__main__":
    node_in, edge_in, leak = 16, 8, 0.1
    E = 1000  # deliberately not a multiple of the tile; exercises the padded tail

    key = jax.random.PRNGKey(0)
    kp, ks, kd, ke = jax.random.split(key, 4)

    params = init_params(kp, node_in, edge_in)
    src = jax.random.normal(ks, (E, node_in), jnp.float32)
    dest = jax.random.normal(kd, (E, node_in), jnp.float32)
    edge_attr = jax.random.normal(ke, (E, edge_in), jnp.float32)
    # TODO(synk): `u` / `batch` args of the PyTorch forward are unused by the module; omitted.

    ref = reference_forward(src, dest, edge_attr, params, leak)

    # f32 operand path: tight check against the pure-JAX reference.
    out_f32 = jax.block_until_ready(
        edge_model_forward(src, dest, edge_attr, params, leak=leak,
                           tile_e=512, compute_dtype=jnp.float32))
    assert out_f32.shape == (E, 2)
    assert jnp.allclose(out_f32, ref, atol=1e-4, rtol=1e-4), "f32 mismatch vs reference"

    # bf16 operand path (f32 accumulation): loose tolerance for operand rounding.
    out_bf16 = jax.block_until_ready(
        edge_model_forward(src, dest, edge_attr, params, leak=leak,
                           tile_e=512, compute_dtype=jnp.bfloat16))
    assert out_bf16.shape == (E, 2)
    assert jnp.allclose(out_bf16, ref, atol=5e-2, rtol=5e-2), "bf16 mismatch vs reference"

    print("KERNEL_OK")
</pallas_src>

<mosaic_0001>
module attributes {stable_mosaic.version = 11 : i64} {
  func.func @edge_model_kernel(%arg0: i32, %arg1: memref<512x40xf32, #tpu.memory_space<vmem>>, %arg2: memref<40x64xf32, #tpu.memory_space<vmem>>, %arg3: memref<1x64xf32, #tpu.memory_space<vmem>>, %arg4: memref<64x32xf32, #tpu.memory_space<vmem>>, %arg5: memref<1x32xf32, #tpu.memory_space<vmem>>, %arg6: memref<32x16xf32, #tpu.memory_space<vmem>>, %arg7: memref<1x16xf32, #tpu.memory_space<vmem>>, %arg8: memref<16x8xf32, #tpu.memory_space<vmem>>, %arg9: memref<1x8xf32, #tpu.memory_space<vmem>>, %arg10: memref<2x8xf32, #tpu.memory_space<vmem>>, %arg11: memref<2x1xf32, #tpu.memory_space<vmem>>, %arg12: memref<2x512xf32, #tpu.memory_space<vmem>>) attributes {dimension_semantics = [#tpu.dimension_semantics<parallel>], iteration_bounds = array<i64: 2>, scalar_prefetch = 0 : i64, scratch_operands = 0 : i64, tpu.core_type = #tpu.core_type<tc>, window_params = [{transform_indices = @transform_0, window_bounds = array<i64: 512, 40>}, {pipeline_mode = #tpu.pipeline_mode<synchronous>, transform_indices = @transform_1, window_bounds = array<i64: 40, 64>}, {pipeline_mode = #tpu.pipeline_mode<synchronous>, transform_indices = @transform_2, window_bounds = array<i64: 1, 64>}, {pipeline_mode = #tpu.pipeline_mode<synchronous>, transform_indices = @transform_3, window_bounds = array<i64: 64, 32>}, {pipeline_mode = #tpu.pipeline_mode<synchronous>, transform_indices = @transform_4, window_bounds = array<i64: 1, 32>}, {pipeline_mode = #tpu.pipeline_mode<synchronous>, transform_indices = @transform_5, window_bounds = array<i64: 32, 16>}, {pipeline_mode = #tpu.pipeline_mode<synchronous>, transform_indices = @transform_6, window_bounds = array<i64: 1, 16>}, {pipeline_mode = #tpu.pipeline_mode<synchronous>, transform_indices = @transform_7, window_bounds = array<i64: 16, 8>}, {pipeline_mode = #tpu.pipeline_mode<synchronous>, transform_indices = @transform_8, window_bounds = array<i64: 1, 8>}, {pipeline_mode = #tpu.pipeline_mode<synchronous>, transform_indices = @transform_9, window_bounds = array<i64: 2, 8>}, {pipeline_mode = #tpu.pipeline_mode<synchronous>, transform_indices = @transform_10, window_bounds = array<i64: 2, 1>}, {transform_indices = @transform_11, window_bounds = array<i64: 2, 512>}]} {
    %c0 = arith.constant 0 : index
    %c0_0 = arith.constant 0 : index
    %0 = vector.load %arg1[%c0, %c0_0] : memref<512x40xf32, #tpu.memory_space<vmem>>, vector<512x40xf32>
    %c0_1 = arith.constant 0 : index
    %c0_2 = arith.constant 0 : index
    %1 = vector.load %arg2[%c0_1, %c0_2] : memref<40x64xf32, #tpu.memory_space<vmem>>, vector<40x64xf32>
    %cst = arith.constant dense<0.000000e+00> : vector<512x64xf32>
    %2 = tpu.matmul %0, %1, %cst {dimension_numbers = #tpu.dot_dimension_numbers<[1], [0], [0], [1], [0, 0, 1, 1], [], []>} : vector<512x40xf32>, vector<40x64xf32>, vector<512x64xf32> -> vector<512x64xf32>
    %c0_3 = arith.constant 0 : index
    %c0_4 = arith.constant 0 : index
    %3 = vector.load %arg3[%c0_3, %c0_4] : memref<1x64xf32, #tpu.memory_space<vmem>>, vector<1x64xf32>
    %4 = vector.broadcast %3 : vector<1x64xf32> to vector<512x64xf32>
    %5 = arith.addf %2, %4 : vector<512x64xf32>
    %cst_5 = arith.constant 0.000000e+00 : f32
    %6 = vector.broadcast %cst_5 : f32 to vector<512x64xf32>
    %7 = arith.cmpf ogt, %5, %6 : vector<512x64xf32>
    %cst_6 = arith.constant 1.000000e-01 : f32
    %8 = vector.broadcast %cst_6 : f32 to vector<512x64xf32>
    %9 = arith.mulf %8, %5 : vector<512x64xf32>
    %10 = arith.select %7, %5, %9 : vector<512x64xi1>, vector<512x64xf32>
    %c0_7 = arith.constant 0 : index
    %c0_8 = arith.constant 0 : index
    %11 = vector.load %arg4[%c0_7, %c0_8] : memref<64x32xf32, #tpu.memory_space<vmem>>, vector<64x32xf32>
    %cst_9 = arith.constant dense<0.000000e+00> : vector<512x32xf32>
    %12 = tpu.matmul %10, %11, %cst_9 {dimension_numbers = #tpu.dot_dimension_numbers<[1], [0], [0], [1], [0, 0, 1, 1], [], []>} : vector<512x64xf32>, vector<64x32xf32>, vector<512x32xf32> -> vector<512x32xf32>
    %c0_10 = arith.constant 0 : index
    %c0_11 = arith.constant 0 : index
    %13 = vector.load %arg5[%c0_10, %c0_11] : memref<1x32xf32, #tpu.memory_space<vmem>>, vector<1x32xf32>
    %14 = vector.broadcast %13 : vector<1x32xf32> to vector<512x32xf32>
    %15 = arith.addf %12, %14 : vector<512x32xf32>
    %cst_12 = arith.constant 0.000000e+00 : f32
    %16 = vector.broadcast %cst_12 : f32 to vector<512x32xf32>
    %17 = arith.cmpf ogt, %15, %16 : vector<512x32xf32>
    %cst_13 = arith.constant 1.000000e-01 : f32
    %18 = vector.broadcast %cst_13 : f32 to vector<512x32xf32>
    %19 = arith.mulf %18, %15 : vector<512x32xf32>
    %20 = arith.select %17, %15, %19 : vector<512x32xi1>, vector<512x32xf32>
    %c0_14 = arith.constant 0 : index
    %c0_15 = arith.constant 0 : index
    %21 = vector.load %arg6[%c0_14, %c0_15] : memref<32x16xf32, #tpu.memory_space<vmem>>, vector<32x16xf32>
    %cst_16 = arith.constant dense<0.000000e+00> : vector<512x16xf32>
    %22 = tpu.matmul %20, %21, %cst_16 {dimension_numbers = #tpu.dot_dimension_numbers<[1], [0], [0], [1], [0, 0, 1, 1], [], []>} : vector<512x32xf32>, vector<32x16xf32>, vector<512x16xf32> -> vector<512x16xf32>
    %c0_17 = arith.constant 0 : index
    %c0_18 = arith.constant 0 : index
    %23 = vector.load %arg7[%c0_17, %c0_18] : memref<1x16xf32, #tpu.memory_space<vmem>>, vector<1x16xf32>
    %24 = vector.broadcast %23 : vector<1x16xf32> to vector<512x16xf32>
    %25 = arith.addf %22, %24 : vector<512x16xf32>
    %cst_19 = arith.constant 0.000000e+00 : f32
    %26 = vector.broadcast %cst_19 : f32 to vector<512x16xf32>
    %27 = arith.cmpf ogt, %25, %26 : vector<512x16xf32>
    %cst_20 = arith.constant 1.000000e-01 : f32
    %28 = vector.broadcast %cst_20 : f32 to vector<512x16xf32>
    %29 = arith.mulf %28, %25 : vector<512x16xf32>
    %30 = arith.select %27, %25, %29 : vector<512x16xi1>, vector<512x16xf32>
    %c0_21 = arith.constant 0 : index
    %c0_22 = arith.constant 0 : index
    %31 = vector.load %arg8[%c0_21, %c0_22] : memref<16x8xf32, #tpu.memory_space<vmem>>, vector<16x8xf32>
    %cst_23 = arith.constant dense<0.000000e+00> : vector<512x8xf32>
    %32 = tpu.matmul %30, %31, %cst_23 {dimension_numbers = #tpu.dot_dimension_numbers<[1], [0], [0], [1], [0, 0, 1, 1], [], []>} : vector<512x16xf32>, vector<16x8xf32>, vector<512x8xf32> -> vector<512x8xf32>
    %c0_24 = arith.constant 0 : index
    %c0_25 = arith.constant 0 : index
    %33 = vector.load %arg9[%c0_24, %c0_25] : memref<1x8xf32, #tpu.memory_space<vmem>>, vector<1x8xf32>
    %34 = vector.broadcast %33 : vector<1x8xf32> to vector<512x8xf32>
    %35 = arith.addf %32, %34 : vector<512x8xf32>
    %cst_26 = arith.constant 0.000000e+00 : f32
    %36 = vector.broadcast %cst_26 : f32 to vector<512x8xf32>
    %37 = arith.cmpf ogt, %35, %36 : vector<512x8xf32>
    %cst_27 = arith.constant 1.000000e-01 : f32
    %38 = vector.broadcast %cst_27 : f32 to vector<512x8xf32>
    %39 = arith.mulf %38, %35 : vector<512x8xf32>
    %40 = arith.select %37, %35, %39 : vector<512x8xi1>, vector<512x8xf32>
    %c0_28 = arith.constant 0 : index
    %c0_29 = arith.constant 0 : index
    %41 = vector.load %arg10[%c0_28, %c0_29] : memref<2x8xf32, #tpu.memory_space<vmem>>, vector<2x8xf32>
    %cst_30 = arith.constant dense<0.000000e+00> : vector<2x512xf32>
    %42 = tpu.matmul %41, %40, %cst_30 {dimension_numbers = #tpu.dot_dimension_numbers<[1], [1], [0], [0], [0, 0, 1, 0], [], []>} : vector<2x8xf32>, vector<512x8xf32>, vector<2x512xf32> -> vector<2x512xf32>
    %c0_31 = arith.constant 0 : index
    %c0_32 = arith.constant 0 : index
    %43 = vector.load %arg11[%c0_31, %c0_32] : memref<2x1xf32, #tpu.memory_space<vmem>>, vector<2x1xf32>
    %44 = vector.broadcast %43 : vector<2x1xf32> to vector<2x512xf32>
    %45 = arith.addf %42, %44 : vector<2x512xf32>
    %c0_33 = arith.constant 0 : index
    %c0_34 = arith.constant 0 : index
    %46 = vector.load %arg12[%c0_33, %c0_34] : memref<2x512xf32, #tpu.memory_space<vmem>>, vector<2x512xf32>
    tpu.vector_store %arg12[%c0_33, %c0_34], %45 {strides = array<i32>} : memref<2x512xf32, #tpu.memory_space<vmem>>, vector<2x512xf32>,
    return
  }
  func.func @transform_0(%arg0: i32) -> (i32, i32) {
    %c0_i32 = arith.constant 0 : i32
    %c0_i32_0 = arith.constant 0 : i32
    return %arg0, %c0_i32 : i32, i32
  }
  func.func @transform_1(%arg0: i32) -> (i32, i32) {
    %c0_i32 = arith.constant 0 : i32
    %c0_i32_0 = arith.constant 0 : i32
    %c0_i32_1 = arith.constant 0 : i32
    return %c0_i32, %c0_i32_0 : i32, i32
  }
  func.func @transform_2(%arg0: i32) -> (i32, i32) {
    %c0_i32 = arith.constant 0 : i32
    %c0_i32_0 = arith.constant 0 : i32
    %c0_i32_1 = arith.constant 0 : i32
    return %c0_i32, %c0_i32_0 : i32, i32
  }
  func.func @transform_3(%arg0: i32) -> (i32, i32) {
    %c0_i32 = arith.constant 0 : i32
    %c0_i32_0 = arith.constant 0 : i32
    %c0_i32_1 = arith.constant 0 : i32
    return %c0_i32, %c0_i32_0 : i32, i32
  }
  func.func @transform_4(%arg0: i32) -> (i32, i32) {
    %c0_i32 = arith.constant 0 : i32
    %c0_i32_0 = arith.constant 0 : i32
    %c0_i32_1 = arith.constant 0 : i32
    return %c0_i32, %c0_i32_0 : i32, i32
  }
  func.func @transform_5(%arg0: i32) -> (i32, i32) {
    %c0_i32 = arith.constant 0 : i32
    %c0_i32_0 = arith.constant 0 : i32
    %c0_i32_1 = arith.constant 0 : i32
    return %c0_i32, %c0_i32_0 : i32, i32
  }
  func.func @transform_6(%arg0: i32) -> (i32, i32) {
    %c0_i32 = arith.constant 0 : i32
    %c0_i32_0 = arith.constant 0 : i32
    %c0_i32_1 = arith.constant 0 : i32
    return %c0_i32, %c0_i32_0 : i32, i32
  }
  func.func @transform_7(%arg0: i32) -> (i32, i32) {
    %c0_i32 = arith.constant 0 : i32
    %c0_i32_0 = arith.constant 0 : i32
    %c0_i32_1 = arith.constant 0 : i32
    return %c0_i32, %c0_i32_0 : i32, i32
  }
  func.func @transform_8(%arg0: i32) -> (i32, i32) {
    %c0_i32 = arith.constant 0 : i32
    %c0_i32_0 = arith.constant 0 : i32
    %c0_i32_1 = arith.constant 0 : i32
    return %c0_i32, %c0_i32_0 : i32, i32
  }
  func.func @transform_9(%arg0: i32) -> (i32, i32) {
    %c0_i32 = arith.constant 0 : i32
    %c0_i32_0 = arith.constant 0 : i32
    %c0_i32_1 = arith.constant 0 : i32
    return %c0_i32, %c0_i32_0 : i32, i32
  }
  func.func @transform_10(%arg0: i32) -> (i32, i32) {
    %c0_i32 = arith.constant 0 : i32
    %c0_i32_0 = arith.constant 0 : i32
    %c0_i32_1 = arith.constant 0 : i32
    return %c0_i32, %c0_i32_0 : i32, i32
  }
  func.func @transform_11(%arg0: i32) -> (i32, i32) {
    %c0_i32 = arith.constant 0 : i32
    %c0_i32_0 = arith.constant 0 : i32
    return %c0_i32, %arg0 : i32, i32
  }
}

</mosaic_0001>

<bundles_post_ra>
// kernel: tpu_custom_call.1
= control target key start
LH: loop header
LB: loop body
LE: loop exit
PB: predicated region body
PF: predicated region fallthrough
CT: control target
= control target key end

     0   :  { %s6429_s0 = inlined_call_operand.vmem [shape: f32[1024,40], index: 0, kind: input, shape index: {}]   ;;  %s6430_s1 = inlined_call_operand.vmem [shape: f32[40,64], index: 1, kind: input, shape index: {}]   ;;  %s6431_s2 = inlined_call_operand.vmem [shape: f32[1,64], index: 2, kind: input, shape index: {}]   ;;  %s6432_s3 = inlined_call_operand.vmem [shape: f32[64,32], index: 3, kind: input, shape index: {}]   ;;  %s6433_s4 = inlined_call_operand.vmem [shape: f32[1,32], index: 4, kind: input, shape index: {}]   ;;  %s6434_s5 = inlined_call_operand.vmem [shape: f32[32,16], index: 5, kind: input, shape index: {}]   ;;  %s6435_s6 = inlined_call_operand.vmem [shape: f32[1,16], index: 6, kind: input, shape index: {}]   ;;  %s6436_s7 = inlined_call_operand.vmem [shape: f32[16,8], index: 7, kind: input, shape index: {}]   ;;  %s6437_s8 = inlined_call_operand.vmem [shape: f32[1,8], index: 8, kind: input, shape index: {}]   ;;  %s6438_s9 = inlined_call_operand.vmem [shape: f32[2,8], index: 9, kind: input, shape index: {}]   ;;  %s6439_s10 = inlined_call_operand.vmem [shape: f32[2,1], index: 10, kind: input, shape index: {}]   ;;  %s6440_s11 = inlined_call_operand.hbm [shape: f32[2,1024], index: 11, kind: output, shape index: {}]  }
   0x1   :  { %6441 = sst [smem:[#allocation5_spill]] %s6429_s0 }
   0x2   :  { %16 = vsyncpa [#allocation3], 0 }
   0x3   :  { %18 = vsyncpa [#allocation3 + $0x1], 0  ;;  %s5426_s17 = smov 0   ;;  %s5428_s18 = smov 0  }
   0x4   :  { %s5430_s19 = smov 0   ;;  %s5432_s20 = smov 0  }
   0x5 LB: > { %s5447_s21 = sadd.s32 4294967295, %s5361_s20   ;;  %s4021_s22 = sadd.s32 4294967294, %s5361_s20   ;;  %s5361_s20 = sphi %s5432_s20, %s6450_s20   ;;  %s5357_s19 = sphi %s5430_s19, %s6449_s19   ;;  %s5353_s18 = sphi %s5428_s18, %s6448_s18   ;;  %s5349_s17 = sphi %s5426_s17, %s6447_s17  }
   0x6   : > { %s5451_s23 = sadd.s32 1, %s5361_s20   ;;  %s267_s24 = sadd.s32 1, %s5357_s19 }
   0x7   : > { %s264_s25 = ssub.s32 %s5361_s20, %s5451_s23  ;;  %p277_p0 = scmp.ne.s32.totalorder %s5357_s19, %s5353_s18 }
   0x8   : > { %p265_p1 = scmp.eq.s32.totalorder %s264_s25, 0  ;;  %p278_p2 = scmp.eq.s32.totalorder %s5447_s21, 1 }
   0x9   : > { %p283_p3 = scmp.ne.s32.totalorder %s5353_s18, %s5349_s17  ;;  %p284_p4 = scmp.eq.s32.totalorder %s4021_s22, 1 }
   0xa   : > { %s5462_s26 = scalar_select %p265_p1, %s5357_s19, %s267_s24  }
   0xb   : > { %p5464_p5 = por %p278_p2, %p277_p0  ;;  %p5468_p6 = por %p284_p4, %p283_p3 }
   0xc   : > { %p4024_p7 = scmp.ge.s32.totalorder %s5361_s20, 1  ;;  %p341_p8 = scmp.lt.s32.totalorder %s5361_s20, 3 }
   0xe   : > { %p342_p9 = pnand %p4024_p7, %p341_p8 }
   0xf   : > { %v452_v0 = vld [vmem:[%s6430_s1] sm:$0xff] (!%p342_p9)  ;;  %v453_v1 = vld [vmem:[%s6430_s1 + $0x8] sm:$0xff] (!%p342_p9)  ;;  %v454_v2 = vld [vmem:[%s6430_s1 + $0x10] sm:$0xff] (!%p342_p9)  ;;  %s4026_s16 = sshll.u32 (!%p342_p9), %s5447_s21, 6  ;;  %vm464_vm0 = vcmask (!%p342_p9), 326656   ;;  %s6444_s0 = sld [smem:[#allocation5_spill]] (!%p342_p9) }
  0x10   : > { %345 = sbr.rel (%p342_p9) target bundleno = 1300 (0x514), region = 64  ;;  %v5125_v3 = vpack.c.bf16 (!%p342_p9), %v453_v1, %v452_v0  ;;  %v455_v4 = vld [vmem:[%s6430_s1 + $0x18] sm:$0xff] (!%p342_p9)  ;;  %p382_p10 = scmp.lt.s32.totalorder (!%p342_p9), %s4026_s16, 127  ;;  %v456_v6 = vld [vmem:[%s6430_s1 + $0x20] sm:$0xff] (!%p342_p9)  ;;  %v1235_v19 = vld [vmem:[%s6432_s3 + $0x8] sm:$0xff] (!%p342_p9)  ;;  %vm1249_vm2 = vcmask (!%p342_p9), 523264  }
  0x11   : > { %v5129_v5 = vpack.c.bf16 (!%p342_p9), %v455_v4, %v454_v2  ;;  %v1234_v18 = vld [vmem:[%s6432_s3] sm:$0xff] (!%p342_p9)  ;;  %v1236_v21 = vld [vmem:[%s6432_s3 + $0x10] sm:$0xff] (!%p342_p9)  ;;  %v1237_v22 = vld [vmem:[%s6432_s3 + $0x18] sm:$0xff] (!%p342_p9)  ;;  %s4359_s24 = sshll.u32 (!%p342_p9), %s5447_s21, 7  ;;  %s5365_s21 = smov (!%p342_p9), [#allocation2]  }
  0x12   : > { %5126 = vmatprep.subr.bf16.mxu0 (!%p342_p9), %v5125_v3  ;;  %v5133_v20 = vpack.c.bf16 (!%p342_p9), %v1235_v19, %v1234_v18  ;;  %v5137_v24 = vpack.c.bf16 (!%p342_p9), %v1237_v22, %v1236_v21  ;;  %v1238_v56 = vld [vmem:[%s6432_s3 + $0x20] sm:$0xff] (!%p342_p9)  ;;  %v1239_v57 = vld [vmem:[%s6432_s3 + $0x28] sm:$0xff] (!%p342_p9)  ;;  %v1240_v61 = vld [vmem:[%s6432_s3 + $0x30] sm:$0xff] (!%p342_p9)  ;;  %s6387_s13 = scalar_lea.hbm (!%p342_p9), %s6440_s11, %s4359_s24 }
  0x13   : > { %5128 = vmatpush3.bf16.msra.mxu0 (!%p342_p9), %v5125_v3  ;;  %v5141_v59 = vpack.c.bf16 (!%p342_p9), %v1239_v57, %v1238_v56  ;;  %v1241_v62 = vld [vmem:[%s6432_s3 + $0x38] sm:$0xff] (!%p342_p9)  ;;  %v5650_v19 = vld [vmem:[%s6431_s2] ss:$0 sm:$0xff] (!%p342_p9) }
  0x14   : > { %5130 = vmatprep.subr.bf16.mxu0 (!%p342_p9), %v5129_v5  ;;  %5134 = vmatprep.subr.bf16.mxu1 (!%p342_p9), %v5133_v20  ;;  %v5145_v0 = vpack.c.bf16 (!%p342_p9), %v1241_v62, %v1240_v61 }
  0x15   : > { %5136 = vmatpush3.bf16.msra.mxu1 (!%p342_p9), %v5133_v20 }
  0x16   : > { %5138 = vmatprep.subr.bf16.mxu1 (!%p342_p9), %v5137_v24 }
  0x17   : > { %s6452_s16 = smov (!%p382_p10, %s4026_s16), 127  ;;  %5132 = vmatpush3.bf16.msra.mxu0 %v5129_v5 }
  0x18   : > { %s4027_s25 = sshll.u32 %s6452_s16, 3  ;;  %4711 = vmatprep.subr.mxu0 %v456_v6  ;;  %s378_s16 = sand.u32 1, %s5353_s18  }
  0x19   : > { %s5493_s14 = scalar_lea.vmem %s6444_s0, %s4027_s25  ;;  %5140 = vmatpush3.bf16.msra.mxu1 %v5137_v24  ;;  %s4025_s22 = sshll.u32 %s378_s16, 3 }
  0x1a   : > { %v388_v7 = vld [vmem:[%s5493_s14] sm:$0xff]  ;;  %v389_v8 = vld [vmem:[%s5493_s14 + $0x8] sm:$0xff]  ;;  %v390_v9 = vld [vmem:[%s5493_s14 + $0x10] sm:$0xff]  ;;  %5142 = vmatprep.subr.bf16.mxu1 %v5141_v59  ;;  %s380_s25 = scalar_lea.vmem [#allocation2], %s4025_s22  ;;  %s5303_s22 = sshll.u32 %s5365_s21, 4  ;;  %s5304_s22 = int_to_ptr.vmem [resolvable:$false] %s5303_s22 }
  0x1b   : > { %4713 = vmatprep.mubr.msk.f32.mxu0 %vm464_vm0, %v388_v7  ;;  %4712 = vmatpush3.msra.mxu0 %v456_v6  ;;  %v391_v10 = vld [vmem:[%s5493_s14 + $0x18] sm:$0xff]  ;;  %v392_v11 = vld [vmem:[%s5493_s14 + $0x20] sm:$0xff]  ;;  %v393_v12 = vld [vmem:[%s5493_s14 + $0x28] sm:$0xff]  ;;  %s3962_s29 = sshll.u32 %s380_s25, 4  ;;  %s5305_s0 = scalar_lea.vmem %s5304_s22, 256  ;;  %s6389_s29 = int_to_ptr.vmem [resolvable:$true] %s3962_s29 }
  0x1c   : > { %4714 = vmatmul.mubr.msk.f32.vlgmr.msra.gmra.mrb[0].mxu0 %vm464_vm0, %v389_v8  ;;  %v394_v13 = vld [vmem:[%s5493_s14 + $0x30] sm:$0xff]  ;;  %v395_v14 = vld [vmem:[%s5493_s14 + $0x38] sm:$0xff]  ;;  %v396_v15 = vld [vmem:[%s5493_s14 + $0x40] sm:$0xff]  ;;  %s5299_s15 = scalar_lea.vmem %s6389_s29, 128  ;;  %p5306_p0 = scmp.lt.s32.totalorder %s6389_s29, %s5304_s22 }
  0x1d   : > { %4716 = vmatprep.mubr.msk.f32.mxu0 %vm464_vm0, %v390_v9  ;;  %v397_v16 = vld [vmem:[%s5493_s14 + $0x48] sm:$0xff]  ;;  %v398_v17 = vld [vmem:[%s5493_s14 + $0x50] sm:$0xff]  ;;  %v399_v23 = vld [vmem:[%s5493_s14 + $0x58] sm:$0xff]  ;;  %5144 = vmatpush3.bf16.msra.mxu1 %v5141_v59  ;;  %p5300_p11 = scmp.ne.s32.totalorder %s6389_s29, %s5299_s15  ;;  %p5307_p1 = scmp.lt.s32.totalorder %s5305_s0, %s5299_s15 }
  0x1e   : > { %v400_v25 = vld [vmem:[%s5493_s14 + $0x60] sm:$0xff]  ;;  %v401_v26 = vld [vmem:[%s5493_s14 + $0x68] sm:$0xff]  ;;  %v402_v27 = vld [vmem:[%s5493_s14 + $0x70] sm:$0xff]  ;;  %5146 = vmatprep.subr.bf16.mxu1 %v5145_v0 }
  0x1f   : > { %v403_v28 = vld [vmem:[%s5493_s14 + $0x78] sm:$0xff]  ;;  %v404_v29 = vld [vmem:[%s5493_s14 + $0x80] sm:$0xff]  ;;  %v405_v30 = vld [vmem:[%s5493_s14 + $0x88] sm:$0xff]  ;;  %p5301_p12 = pnand %p5300_p11, %p5464_p5  ;;  %p5308_p2 = por %p5307_p1, %p5306_p0 }
  0x20   : > { %4717 = vmatmul.mubr.msk.f32.gmra.mrb[2].mxu0 %vm464_vm0, %v391_v10  ;;  %v406_v31 = vld [vmem:[%s5493_s14 + $0x90] sm:$0xff]  ;;  %v407_v32 = vld [vmem:[%s5493_s14 + $0x98] sm:$0xff]  ;;  %v408_v33 = vld [vmem:[%s5493_s14 + $0xa0] sm:$0xff] }
  0x21   : > { %4719 = vmatprep.mubr.msk.f32.mxu0 %vm464_vm0, %v392_v11  ;;  %v409_v34 = vld [vmem:[%s5493_s14 + $0xa8] sm:$0xff]  ;;  %v410_v35 = vld [vmem:[%s5493_s14 + $0xb0] sm:$0xff]  ;;  %v411_v36 = vld [vmem:[%s5493_s14 + $0xb8] sm:$0xff]  ;;  %5148 = vmatpush3.bf16.msra.mxu1 %v5145_v0  ;;  %p5302_p13 = pneg %p5301_p12 }
  0x22   : > { %v412_v37 = vld [vmem:[%s5493_s14 + $0xc0] sm:$0xff]  ;;  %v413_v38 = vld [vmem:[%s5493_s14 + $0xc8] sm:$0xff]  ;;  %v414_v39 = vld [vmem:[%s5493_s14 + $0xd0] sm:$0xff] }
  0x23   : > { %v415_v40 = vld [vmem:[%s5493_s14 + $0xd8] sm:$0xff]  ;;  %v416_v41 = vld [vmem:[%s5493_s14 + $0xe0] sm:$0xff]  ;;  %v417_v42 = vld [vmem:[%s5493_s14 + $0xe8] sm:$0xff]  ;;  %p5309_p3 = pnand %p5308_p2, %p5302_p13 }
  0x24   : > { %4720 = vmatmul.mubr.msk.f32.gmra.mrb[4].mxu0 %vm464_vm0, %v393_v12  ;;  %v418_v43 = vld [vmem:[%s5493_s14 + $0xf0] sm:$0xff]  ;;  %v419_v44 = vld [vmem:[%s5493_s14 + $0xf8] sm:$0xff]  ;;  %v420_v45 = vld [vmem:[%s5493_s14 + $0x100] sm:$0xff] }
  0x25   : > { %4722 = vmatprep.mubr.msk.f32.mxu0 %vm464_vm0, %v394_v13  ;;  %v421_v46 = vld [vmem:[%s5493_s14 + $0x108] sm:$0xff]  ;;  %v422_v47 = vld [vmem:[%s5493_s14 + $0x110] sm:$0xff]  ;;  %v423_v48 = vld [vmem:[%s5493_s14 + $0x118] sm:$0xff] }
  0x26   : > { %v424_v49 = vld [vmem:[%s5493_s14 + $0x120] sm:$0xff]  ;;  %v425_v50 = vld [vmem:[%s5493_s14 + $0x128] sm:$0xff]  ;;  %v426_v51 = vld [vmem:[%s5493_s14 + $0x130] sm:$0xff] }
  0x27   : > { %v427_v52 = vld [vmem:[%s5493_s14 + $0x138] sm:$0xff]  ;;  %v428_v53 = vld [vmem:[%s5493_s14 + $0x140] sm:$0xff]  ;;  %v429_v54 = vld [vmem:[%s5493_s14 + $0x148] sm:$0xff] }
  0x28   : > { %4723 = vmatmul.mubr.msk.f32.gmra.mrb[6].mxu0 %vm464_vm0, %v395_v14  ;;  %v430_v55 = vld [vmem:[%s5493_s14 + $0x150] sm:$0xff]  ;;  %v431_v58 = vld [vmem:[%s5493_s14 + $0x158] sm:$0xff]  ;;  %v432_v60 = vld [vmem:[%s5493_s14 + $0x160] sm:$0xff] }
  0x29   : > { %4725 = vmatprep.mubr.msk.f32.mxu0 %vm464_vm0, %v396_v15  ;;  %v433_v63 = vld [vmem:[%s5493_s14 + $0x168] sm:$0xff]  ;;  %v434_v1 = vld [vmem:[%s5493_s14 + $0x170] sm:$0xff]  ;;  %v435_v2 = vld [vmem:[%s5493_s14 + $0x178] sm:$0xff] }
  0x2a   : > { %v436_v3 = vld [vmem:[%s5493_s14 + $0x180] sm:$0xff]  ;;  %v437_v4 = vld [vmem:[%s5493_s14 + $0x188] sm:$0xff]  ;;  %v438_v5 = vld [vmem:[%s5493_s14 + $0x190] sm:$0xff] }
  0x2b   : > { %v439_v6 = vld [vmem:[%s5493_s14 + $0x198] sm:$0xff]  ;;  %v440_v7 = vld [vmem:[%s5493_s14 + $0x1a0] sm:$0xff]  ;;  %v441_v8 = vld [vmem:[%s5493_s14 + $0x1a8] sm:$0xff] }
  0x2c   : > { %4726 = vmatmul.mubr.msk.f32.gmra.mrb[8].mxu0 %vm464_vm0, %v397_v16  ;;  %v442_v9 = vld [vmem:[%s5493_s14 + $0x1b0] sm:$0xff]  ;;  %v443_v10 = vld [vmem:[%s5493_s14 + $0x1b8] sm:$0xff]  ;;  %v444_v11 = vld [vmem:[%s5493_s14 + $0x1c0] sm:$0xff] }
  0x2d   : > { %4728 = vmatprep.mubr.msk.f32.mxu0 %vm464_vm0, %v398_v17  ;;  %v445_v12 = vld [vmem:[%s5493_s14 + $0x1c8] sm:$0xff]  ;;  %v446_v13 = vld [vmem:[%s5493_s14 + $0x1d0] sm:$0xff]  ;;  %v447_v14 = vld [vmem:[%s5493_s14 + $0x1d8] sm:$0xff] }
  0x2e   : > { %v448_v15 = vld [vmem:[%s5493_s14 + $0x1e0] sm:$0xff]  ;;  %v449_v16 = vld [vmem:[%s5493_s14 + $0x1e8] sm:$0xff]  ;;  %v450_v17 = vld [vmem:[%s5493_s14 + $0x1f0] sm:$0xff] }
  0x2f   : > { %v451_v18 = vld [vmem:[%s5493_s14 + $0x1f8] sm:$0xff]  ;;  %s3948_s14 = scalar_lea.sflag [#allocation3], %s378_s16 }
  0x30   : > { %4729 = vmatmul.mubr.msk.f32.gmra.mrb[10].mxu0 %vm464_vm0, %v399_v23 }
  0x31   : > { %4731 = vmatprep.mubr.msk.f32.mxu0 %vm464_vm0, %v400_v25 }
  0x34   : > { %4732 = vmatmul.mubr.msk.f32.gmra.mrb[12].mxu0 %vm464_vm0, %v401_v26 }
  0x35   : > { %4734 = vmatprep.mubr.msk.f32.mxu0 %vm464_vm0, %v402_v27  ;;  %v2019_v27 = vld [vmem:[%s6434_s5] sm:$0xff] }
  0x38   : > { %4735 = vmatmul.mubr.msk.f32.gmra.mrb[14].mxu0 %vm464_vm0, %v403_v28  ;;  %v2020_v28 = vld [vmem:[%s6434_s5 + $0x8] sm:$0xff] }
  0x39   : > { %4737 = vmatprep.mubr.msk.f32.mxu0 %vm464_vm0, %v404_v29 }
  0x3c   : > { %4738 = vmatmul.mubr.msk.f32.gmra.mrb[16].mxu0 %vm464_vm0, %v405_v30 }
  0x3d   : > { %4740 = vmatprep.mubr.msk.f32.mxu0 %vm464_vm0, %v406_v31  ;;  %v5149_v31 = vpack.c.bf16 %v2020_v28, %v2019_v27 }
  0x3f   : > { %5150 = vmatprep.subr.bf16.mxu0 %v5149_v31 }
  0x40   : > { %4741 = vmatmul.mubr.msk.f32.gmra.mrb[18].mxu0 %vm464_vm0, %v407_v32 }
  0x41   : > { %4743 = vmatprep.mubr.msk.f32.mxu0 %vm464_vm0, %v408_v33  ;;  %5152 = vmatpush3.bf16.msra.mxu0 %v5149_v31 }
  0x44   : > { %4744 = vmatmul.mubr.msk.f32.gmra.mrb[20].mxu0 %vm464_vm0, %v409_v34 }
  0x45   : > { %4746 = vmatprep.mubr.msk.f32.mxu0 %vm464_vm0, %v410_v35 }
  0x48   : > { %4747 = vmatmul.mubr.msk.f32.gmra.mrb[22].mxu0 %vm464_vm0, %v411_v36 }
  0x49   : > { %4749 = vmatprep.mubr.msk.f32.mxu0 %vm464_vm0, %v412_v37 }
  0x4c   : > { %4750 = vmatmul.mubr.msk.f32.gmra.mrb[24].mxu0 %vm464_vm0, %v413_v38 }
  0x4d   : > { %4752 = vmatprep.mubr.msk.f32.mxu0 %vm464_vm0, %v414_v39 }
  0x50   : > { %4753 = vmatmul.mubr.msk.f32.gmra.mrb[26].mxu0 %vm464_vm0, %v415_v40 }
  0x51   : > { %4755 = vmatprep.mubr.msk.f32.mxu0 %vm464_vm0, %v416_v41 }
  0x54   : > { %4756 = vmatmul.mubr.msk.f32.gmra.mrb[28].mxu0 %vm464_vm0, %v417_v42 }
  0x55   : > { %4758 = vmatprep.mubr.msk.f32.mxu0 %vm464_vm0, %v418_v43 }
  0x58   : > { %4759 = vmatmul.mubr.msk.f32.gmra.mrb[30].mxu0 %vm464_vm0, %v419_v44 }
  0x59   : > { %4761 = vmatprep.mubr.msk.f32.mxu0 %vm464_vm0, %v420_v45 }
  0x5c   : > { %4762 = vmatmul.mubr.msk.f32.gmra.mrb[32].mxu0 %vm464_vm0, %v421_v46 }
  0x5d   : > { %4764 = vmatprep.mubr.msk.f32.mxu0 %vm464_vm0, %v422_v47 }
  0x60   : > { %4765 = vmatmul.mubr.msk.f32.gmra.mrb[34].mxu0 %vm464_vm0, %v423_v48 }
  0x61   : > { %4767 = vmatprep.mubr.msk.f32.mxu0 %vm464_vm0, %v424_v49 }
  0x64   : > { %4768 = vmatmul.mubr.msk.f32.gmra.mrb[36].mxu0 %vm464_vm0, %v425_v50 }
  0x65   : > { %4770 = vmatprep.mubr.msk.f32.mxu0 %vm464_vm0, %v426_v51 }
  0x68   : > { %4771 = vmatmul.mubr.msk.f32.gmra.mrb[38].mxu0 %vm464_vm0, %v427_v52 }
  0x69   : > { %4773 = vmatprep.mubr.msk.f32.mxu0 %vm464_vm0, %v428_v53 }
  0x6c   : > { %4774 = vmatmul.mubr.msk.f32.gmra.mrb[40].mxu0 %vm464_vm0, %v429_v54 }
  0x6d   : > { %4776 = vmatprep.mubr.msk.f32.mxu0 %vm464_vm0, %v430_v55 }
  0x70   : > { %4777 = vmatmul.mubr.msk.f32.gmra.mrb[42].mxu0 %vm464_vm0, %v431_v58 }
  0x71   : > { %4779 = vmatprep.mubr.msk.f32.mxu0 %vm464_vm0, %v432_v60 }
  0x74   : > { %4780 = vmatmul.mubr.msk.f32.gmra.mrb[44].mxu0 %vm464_vm0, %v433_v63 }
  0x75   : > { %4782 = vmatprep.mubr.msk.f32.mxu0 %vm464_vm0, %v434_v1 }
  0x78   : > { %4783 = vmatmul.mubr.msk.f32.gmra.mrb[46].mxu0 %vm464_vm0, %v435_v2 }
  0x79   : > { %4785 = vmatprep.mubr.msk.f32.mxu0 %vm464_vm0, %v436_v3 }
  0x7c   : > { %4786 = vmatmul.mubr.msk.f32.gmra.mrb[48].mxu0 %vm464_vm0, %v437_v4 }
  0x7d   : > { %4788 = vmatprep.mubr.msk.f32.mxu0 %vm464_vm0, %v438_v5 }
  0x80   : > { %4789 = vmatmul.mubr.msk.f32.gmra.mrb[50].mxu0 %vm464_vm0, %v439_v6 }
  0x81   : > { %4791 = vmatprep.mubr.msk.f32.mxu0 %vm464_vm0, %v440_v7 }
  0x84   : > { %4792 = vmatmul.mubr.msk.f32.gmra.mrb[52].mxu0 %vm464_vm0, %v441_v8 }
  0x85   : > { %4794 = vmatprep.mubr.msk.f32.mxu0 %vm464_vm0, %v442_v9 }
  0x88   : > { %4795 = vmatmul.mubr.msk.f32.gmra.mrb[54].mxu0 %vm464_vm0, %v443_v10 }
  0x89   : > { %4797 = vmatprep.mubr.msk.f32.mxu0 %vm464_vm0, %v444_v11 }
  0x8c   : > { %4798 = vmatmul.mubr.msk.f32.gmra.mrb[56].mxu0 %vm464_vm0, %v445_v12 }
  0x8d   : > { %4800 = vmatprep.mubr.msk.f32.mxu0 %vm464_vm0, %v446_v13 }
  0x90   : > { %4801 = vmatmul.mubr.msk.f32.gmra.mrb[58].mxu0 %vm464_vm0, %v447_v14 }
  0x91   : > { %4803 = vmatprep.mubr.msk.f32.mxu0 %vm464_vm0, %v448_v15 }
  0x94   : > { %4804 = vmatmul.mubr.msk.f32.gmra.mrb[60].mxu0 %vm464_vm0, %v449_v16 }
  0x95   : > { %4806 = vmatprep.mubr.msk.f32.mxu0 %vm464_vm0, %v450_v17 }
  0x98   : > { %4807 = vmatmul.mubr.msk.f32.gmra.mrb[62].mxu0 %vm464_vm0, %v451_v18 }
  0xef   : > { %v4715_v20 = vpop.f32.mrb[0].mxu0 }
  0xf0   : > { %v729_v21 = vadd.f32 %v4715_v20, %v5650_v19  ;;  %v723_v22 = vpop.f32.mrb[1].mxu0 }
  0xf1   : > { %v724_v23 = vadd.f32 %v5650_v19, %v723_v22 }
  0xf2   : > { %vm1043_vm1 = vcmp.gt.f32.partialorder %v729_v21, 0.0  ;;  %v1107_v24 = vmul.f32 0.1, %v729_v21 }
  0xf3   : > { %v4718_v25 = vpop.f32.mrb[2].mxu0  ;;  %vm1042_vm3 = vcmp.gt.f32.partialorder %v724_v23, 0.0  ;;  %v1106_v26 = vmul.f32 0.1, %v724_v23 }
  0xf4   : > { %v739_v29 = vadd.f32 %v4718_v25, %v5650_v19  ;;  %v733_v30 = vpop.f32.mrb[3].mxu0  ;;  %v1171_v35 = vsel %vm1043_vm1, %v729_v21, %v1107_v24 }
  0xf5   : > { %v734_v32 = vadd.f32 %v5650_v19, %v733_v30  ;;  %v1170_v33 = vsel %vm1042_vm3, %v724_v23, %v1106_v26 }
  0xf6   : > { %v1109_v34 = vmul.f32 0.1, %v739_v29  ;;  %4825 = vmatprep.mubr.msk.f32.mxu1 %vm1249_vm2, %v1170_v33  ;;  %vm1045_vm4 = vcmp.gt.f32.partialorder %v739_v29, 0.0 }
  0xf7   : > { %vm1044_vm5 = vcmp.gt.f32.partialorder %v734_v32, 0.0  ;;  %v1108_v36 = vmul.f32 0.1, %v734_v32  ;;  %v4721_v37 = vpop.f32.mrb[4].mxu0  ;;  %4826 = vmatmul.mubr.msk.f32.vlgmr.msra.gmra.mrb[0].mxu1 %vm1249_vm2, %v1171_v35 }
  0xf8   : > { %v749_v38 = vadd.f32 %v4721_v37, %v5650_v19  ;;  %v743_v39 = vpop.f32.mrb[5].mxu0  ;;  %v1173_v43 = vsel %vm1045_vm4, %v739_v29, %v1109_v34 }
  0xf9   : > { %v744_v40 = vadd.f32 %v5650_v19, %v743_v39  ;;  %v1172_v41 = vsel %vm1044_vm5, %v734_v32, %v1108_v36 }
  0xfa   : > { %v1111_v42 = vmul.f32 0.1, %v749_v38  ;;  %4828 = vmatprep.mubr.msk.f32.mxu1 %vm1249_vm2, %v1172_v41  ;;  %vm1047_vm6 = vcmp.gt.f32.partialorder %v749_v38, 0.0 }
  0xfb   : > { %vm1046_vm7 = vcmp.gt.f32.partialorder %v744_v40, 0.0  ;;  %v1110_v44 = vmul.f32 0.1, %v744_v40  ;;  %v4724_v45 = vpop.f32.mrb[6].mxu0  ;;  %4829 = vmatmul.mubr.msk.f32.gmra.mrb[2].mxu1 %vm1249_vm2, %v1173_v43 }
  0xfc   : > { %v759_v46 = vadd.f32 %v4724_v45, %v5650_v19  ;;  %v753_v47 = vpop.f32.mrb[7].mxu0  ;;  %v1175_v51 = vsel %vm1047_vm6, %v749_v38, %v1111_v42 }
  0xfd   : > { %v754_v48 = vadd.f32 %v5650_v19, %v753_v47  ;;  %v1174_v49 = vsel %vm1046_vm7, %v744_v40, %v1110_v44 }
  0xfe   : > { %v1113_v50 = vmul.f32 0.1, %v759_v46  ;;  %4831 = vmatprep.mubr.msk.f32.mxu1 %vm1249_vm2, %v1174_v49  ;;  %vm1049_vm8 = vcmp.gt.f32.partialorder %v759_v46, 0.0 }
  0xff   : > { %vm1048_vm9 = vcmp.gt.f32.partialorder %v754_v48, 0.0  ;;  %v1112_v52 = vmul.f32 0.1, %v754_v48  ;;  %v4727_v53 = vpop.f32.mrb[8].mxu0  ;;  %4832 = vmatmul.mubr.msk.f32.gmra.mrb[4].mxu1 %vm1249_vm2, %v1175_v51 }
 0x100   : > { %v769_v54 = vadd.f32 %v4727_v53, %v5650_v19  ;;  %v763_v55 = vpop.f32.mrb[9].mxu0  ;;  %v1177_v59 = vsel %vm1049_vm8, %v759_v46, %v1113_v50 }
 0x101   : > { %v764_v56 = vadd.f32 %v5650_v19, %v763_v55  ;;  %v1176_v57 = vsel %vm1048_vm9, %v754_v48, %v1112_v52 }
 0x102   : > { %v1115_v58 = vmul.f32 0.1, %v769_v54  ;;  %4834 = vmatprep.mubr.msk.f32.mxu1 %vm1249_vm2, %v1176_v57  ;;  %vm1051_vm10 = vcmp.gt.f32.partialorder %v769_v54, 0.0 }
 0x103   : > { %vm1050_vm11 = vcmp.gt.f32.partialorder %v764_v56, 0.0  ;;  %v1114_v60 = vmul.f32 0.1, %v764_v56  ;;  %v4730_v61 = vpop.f32.mrb[10].mxu0  ;;  %4835 = vmatmul.mubr.msk.f32.gmra.mrb[6].mxu1 %vm1249_vm2, %v1177_v59 }
 0x104   : > { %v779_v62 = vadd.f32 %v4730_v61, %v5650_v19  ;;  %v773_v63 = vpop.f32.mrb[11].mxu0  ;;  %v1179_v3 = vsel %vm1051_vm10, %v769_v54, %v1115_v58 }
 0x105   : > { %v774_v0 = vadd.f32 %v5650_v19, %v773_v63  ;;  %v1178_v1 = vsel %vm1050_vm11, %v764_v56, %v1114_v60 }
 0x106   : > { %v1117_v2 = vmul.f32 0.1, %v779_v62  ;;  %4837 = vmatprep.mubr.msk.f32.mxu1 %vm1249_vm2, %v1178_v1  ;;  %vm1053_vm12 = vcmp.gt.f32.partialorder %v779_v62, 0.0 }
 0x107   : > { %vm1052_vm13 = vcmp.gt.f32.partialorder %v774_v0, 0.0  ;;  %v1116_v4 = vmul.f32 0.1, %v774_v0  ;;  %v4733_v5 = vpop.f32.mrb[12].mxu0  ;;  %4838 = vmatmul.mubr.msk.f32.gmra.mrb[8].mxu1 %vm1249_vm2, %v1179_v3 }
 0x108   : > { %v789_v6 = vadd.f32 %v4733_v5, %v5650_v19  ;;  %v783_v7 = vpop.f32.mrb[13].mxu0  ;;  %v1181_v11 = vsel %vm1053_vm12, %v779_v62, %v1117_v2 }
 0x109   : > { %v784_v8 = vadd.f32 %v5650_v19, %v783_v7  ;;  %v1180_v9 = vsel %vm1052_vm13, %v774_v0, %v1116_v4 }
 0x10a   : > { %v1119_v10 = vmul.f32 0.1, %v789_v6  ;;  %4840 = vmatprep.mubr.msk.f32.mxu1 %vm1249_vm2, %v1180_v9  ;;  %vm1055_vm14 = vcmp.gt.f32.partialorder %v789_v6, 0.0 }
 0x10b   : > { %vm1054_vm15 = vcmp.gt.f32.partialorder %v784_v8, 0.0  ;;  %v1118_v12 = vmul.f32 0.1, %v784_v8  ;;  %v4736_v13 = vpop.f32.mrb[14].mxu0  ;;  %4841 = vmatmul.mubr.msk.f32.gmra.mrb[10].mxu1 %vm1249_vm2, %v1181_v11 }
 0x10c   : > { %v799_v14 = vadd.f32 %v4736_v13, %v5650_v19  ;;  %v793_v15 = vpop.f32.mrb[15].mxu0  ;;  %v1183_v20 = vsel %vm1055_vm14, %v789_v6, %v1119_v10 }
 0x10d   : > { %v794_v16 = vadd.f32 %v5650_v19, %v793_v15  ;;  %v1182_v17 = vsel %vm1054_vm15, %v784_v8, %v1118_v12 }
 0x10e   : > { %v1121_v18 = vmul.f32 0.1, %v799_v14  ;;  %4843 = vmatprep.mubr.msk.f32.mxu1 %vm1249_vm2, %v1182_v17  ;;  %vm1057_vm0 = vcmp.gt.f32.partialorder %v799_v14, 0.0 }
 0x10f   : > { %vm1056_vm1 = vcmp.gt.f32.partialorder %v794_v16, 0.0  ;;  %v1120_v21 = vmul.f32 0.1, %v794_v16  ;;  %v4739_v22 = vpop.f32.mrb[16].mxu0  ;;  %4844 = vmatmul.mubr.msk.f32.gmra.mrb[12].mxu1 %vm1249_vm2, %v1183_v20 }
 0x110   : > { %v809_v23 = vadd.f32 %v4739_v22, %v5650_v19  ;;  %v803_v24 = vpop.f32.mrb[17].mxu0  ;;  %v1185_v28 = vsel %vm1057_vm0, %v799_v14, %v1121_v18 }
 0x111   : > { %v804_v25 = vadd.f32 %v5650_v19, %v803_v24  ;;  %v1184_v26 = vsel %vm1056_vm1, %v794_v16, %v1120_v21 }
 0x112   : > { %v1123_v27 = vmul.f32 0.1, %v809_v23  ;;  %4846 = vmatprep.mubr.msk.f32.mxu1 %vm1249_vm2, %v1184_v26  ;;  %vm1059_vm3 = vcmp.gt.f32.partialorder %v809_v23, 0.0 }
 0x113   : > { %vm1058_vm4 = vcmp.gt.f32.partialorder %v804_v25, 0.0  ;;  %v1122_v29 = vmul.f32 0.1, %v804_v25  ;;  %v4742_v30 = vpop.f32.mrb[18].mxu0  ;;  %4847 = vmatmul.mubr.msk.f32.gmra.mrb[14].mxu1 %vm1249_vm2, %v1185_v28 }
 0x114   : > { %v819_v31 = vadd.f32 %v4742_v30, %v5650_v19  ;;  %v813_v32 = vpop.f32.mrb[19].mxu0  ;;  %v1187_v36 = vsel %vm1059_vm3, %v809_v23, %v1123_v27 }
 0x115   : > { %v814_v33 = vadd.f32 %v5650_v19, %v813_v32  ;;  %v1186_v34 = vsel %vm1058_vm4, %v804_v25, %v1122_v29 }
 0x116   : > { %v1125_v35 = vmul.f32 0.1, %v819_v31  ;;  %4849 = vmatprep.mubr.msk.f32.mxu1 %vm1249_vm2, %v1186_v34  ;;  %vm1061_vm5 = vcmp.gt.f32.partialorder %v819_v31, 0.0 }
 0x117   : > { %vm1060_vm6 = vcmp.gt.f32.partialorder %v814_v33, 0.0  ;;  %v1124_v37 = vmul.f32 0.1, %v814_v33  ;;  %v4745_v38 = vpop.f32.mrb[20].mxu0  ;;  %4850 = vmatmul.mubr.msk.f32.gmra.mrb[16].mxu1 %vm1249_vm2, %v1187_v36 }
 0x118   : > { %v829_v39 = vadd.f32 %v4745_v38, %v5650_v19  ;;  %v823_v40 = vpop.f32.mrb[21].mxu0  ;;  %v1189_v44 = vsel %vm1061_vm5, %v819_v31, %v1125_v35 }
 0x119   : > { %v824_v41 = vadd.f32 %v5650_v19, %v823_v40  ;;  %v1188_v42 = vsel %vm1060_vm6, %v814_v33, %v1124_v37 }
 0x11a   : > { %v1127_v43 = vmul.f32 0.1, %v829_v39  ;;  %4852 = vmatprep.mubr.msk.f32.mxu1 %vm1249_vm2, %v1188_v42  ;;  %vm1063_vm7 = vcmp.gt.f32.partialorder %v829_v39, 0.0 }
 0x11b   : > { %vm1062_vm8 = vcmp.gt.f32.partialorder %v824_v41, 0.0  ;;  %v1126_v45 = vmul.f32 0.1, %v824_v41  ;;  %v4748_v46 = vpop.f32.mrb[22].mxu0  ;;  %4853 = vmatmul.mubr.msk.f32.gmra.mrb[18].mxu1 %vm1249_vm2, %v1189_v44 }
 0x11c   : > { %v839_v47 = vadd.f32 %v4748_v46, %v5650_v19  ;;  %v833_v48 = vpop.f32.mrb[23].mxu0  ;;  %v1191_v52 = vsel %vm1063_vm7, %v829_v39, %v1127_v43 }
 0x11d   : > { %v834_v49 = vadd.f32 %v5650_v19, %v833_v48  ;;  %v1190_v50 = vsel %vm1062_vm8, %v824_v41, %v1126_v45 }
 0x11e   : > { %v1129_v51 = vmul.f32 0.1, %v839_v47  ;;  %4855 = vmatprep.mubr.msk.f32.mxu1 %vm1249_vm2, %v1190_v50  ;;  %vm1065_vm9 = vcmp.gt.f32.partialorder %v839_v47, 0.0 }
 0x11f   : > { %vm1064_vm10 = vcmp.gt.f32.partialorder %v834_v49, 0.0  ;;  %v1128_v53 = vmul.f32 0.1, %v834_v49  ;;  %v4751_v54 = vpop.f32.mrb[24].mxu0  ;;  %4856 = vmatmul.mubr.msk.f32.gmra.mrb[20].mxu1 %vm1249_vm2, %v1191_v52 }
 0x120   : > { %v849_v55 = vadd.f32 %v4751_v54, %v5650_v19  ;;  %v843_v56 = vpop.f32.mrb[25].mxu0  ;;  %v1193_v60 = vsel %vm1065_vm9, %v839_v47, %v1129_v51 }
 0x121   : > { %v844_v57 = vadd.f32 %v5650_v19, %v843_v56  ;;  %v1192_v58 = vsel %vm1064_vm10, %v834_v49, %v1128_v53 }
 0x122   : > { %v1131_v59 = vmul.f32 0.1, %v849_v55  ;;  %4858 = vmatprep.mubr.msk.f32.mxu1 %vm1249_vm2, %v1192_v58  ;;  %vm1067_vm11 = vcmp.gt.f32.partialorder %v849_v55, 0.0 }
 0x123   : > { %vm1066_vm12 = vcmp.gt.f32.partialorder %v844_v57, 0.0  ;;  %v1130_v61 = vmul.f32 0.1, %v844_v57  ;;  %v4754_v62 = vpop.f32.mrb[26].mxu0  ;;  %4859 = vmatmul.mubr.msk.f32.gmra.mrb[22].mxu1 %vm1249_vm2, %v1193_v60 }
 0x124   : > { %v859_v63 = vadd.f32 %v4754_v62, %v5650_v19  ;;  %v853_v0 = vpop.f32.mrb[27].mxu0  ;;  %v1195_v4 = vsel %vm1067_vm11, %v849_v55, %v1131_v59 }
 0x125   : > { %v854_v1 = vadd.f32 %v5650_v19, %v853_v0  ;;  %v1194_v2 = vsel %vm1066_vm12, %v844_v57, %v1130_v61 }
 0x126   : > { %v1133_v3 = vmul.f32 0.1, %v859_v63  ;;  %4861 = vmatprep.mubr.msk.f32.mxu1 %vm1249_vm2, %v1194_v2  ;;  %vm1069_vm13 = vcmp.gt.f32.partialorder %v859_v63, 0.0 }
 0x127   : > { %vm1068_vm14 = vcmp.gt.f32.partialorder %v854_v1, 0.0  ;;  %v1132_v5 = vmul.f32 0.1, %v854_v1  ;;  %v4757_v6 = vpop.f32.mrb[28].mxu0  ;;  %4862 = vmatmul.mubr.msk.f32.gmra.mrb[24].mxu1 %vm1249_vm2, %v1195_v4 }
 0x128   : > { %v869_v7 = vadd.f32 %v4757_v6, %v5650_v19  ;;  %v863_v8 = vpop.f32.mrb[29].mxu0  ;;  %v1197_v12 = vsel %vm1069_vm13, %v859_v63, %v1133_v3 }
 0x129   : > { %v864_v9 = vadd.f32 %v5650_v19, %v863_v8  ;;  %v1196_v10 = vsel %vm1068_vm14, %v854_v1, %v1132_v5 }
 0x12a   : > { %v1135_v11 = vmul.f32 0.1, %v869_v7  ;;  %4864 = vmatprep.mubr.msk.f32.mxu1 %vm1249_vm2, %v1196_v10  ;;  %vm1071_vm15 = vcmp.gt.f32.partialorder %v869_v7, 0.0 }
 0x12b   : > { %vm1070_vm0 = vcmp.gt.f32.partialorder %v864_v9, 0.0  ;;  %v1134_v13 = vmul.f32 0.1, %v864_v9  ;;  %v4760_v14 = vpop.f32.mrb[30].mxu0  ;;  %4865 = vmatmul.mubr.msk.f32.gmra.mrb[26].mxu1 %vm1249_vm2, %v1197_v12 }
 0x12c   : > { %v879_v15 = vadd.f32 %v4760_v14, %v5650_v19  ;;  %v873_v16 = vpop.f32.mrb[31].mxu0  ;;  %v1199_v21 = vsel %vm1071_vm15, %v869_v7, %v1135_v11 }
 0x12d   : > { %v874_v17 = vadd.f32 %v5650_v19, %v873_v16  ;;  %v1198_v18 = vsel %vm1070_vm0, %v864_v9, %v1134_v13  ;;  %v2021_v16 = vld [vmem:[%s6434_s5 + $0x10] sm:$0xff] }
 0x12e   : > { %v1137_v20 = vmul.f32 0.1, %v879_v15  ;;  %4867 = vmatprep.mubr.msk.f32.mxu1 %vm1249_vm2, %v1198_v18  ;;  %vm1073_vm1 = vcmp.gt.f32.partialorder %v879_v15, 0.0 }
 0x12f   : > { %vm1072_vm3 = vcmp.gt.f32.partialorder %v874_v17, 0.0  ;;  %v1136_v22 = vmul.f32 0.1, %v874_v17  ;;  %v4763_v23 = vpop.f32.mrb[32].mxu0  ;;  %4868 = vmatmul.mubr.msk.f32.gmra.mrb[28].mxu1 %vm1249_vm2, %v1199_v21 }
 0x130   : > { %v889_v24 = vadd.f32 %v4763_v23, %v5650_v19  ;;  %v883_v25 = vpop.f32.mrb[33].mxu0  ;;  %v1201_v29 = vsel %vm1073_vm1, %v879_v15, %v1137_v20 }
 0x131   : > { %v884_v26 = vadd.f32 %v5650_v19, %v883_v25  ;;  %v1200_v27 = vsel %vm1072_vm3, %v874_v17, %v1136_v22  ;;  %v2022_v17 = vld [vmem:[%s6434_s5 + $0x18] sm:$0xff] }
 0x132   : > { %v1139_v28 = vmul.f32 0.1, %v889_v24  ;;  %4870 = vmatprep.mubr.msk.f32.mxu1 %vm1249_vm2, %v1200_v27  ;;  %vm1075_vm4 = vcmp.gt.f32.partialorder %v889_v24, 0.0  ;;  %v5153_v21 = vpack.c.bf16 %v2022_v17, %v2021_v16 }
 0x133   : > { %vm1074_vm5 = vcmp.gt.f32.partialorder %v884_v26, 0.0  ;;  %v1138_v30 = vmul.f32 0.1, %v884_v26  ;;  %v4766_v31 = vpop.f32.mrb[34].mxu0  ;;  %4871 = vmatmul.mubr.msk.f32.gmra.mrb[30].mxu1 %vm1249_vm2, %v1201_v29 }
 0x134   : > { %v899_v32 = vadd.f32 %v4766_v31, %v5650_v19  ;;  %v893_v33 = vpop.f32.mrb[35].mxu0  ;;  %v1203_v37 = vsel %vm1075_vm4, %v889_v24, %v1139_v28  ;;  %5154 = vmatprep.subr.bf16.mxu0 %v5153_v21 }
 0x135   : > { %v894_v34 = vadd.f32 %v5650_v19, %v893_v33  ;;  %v1202_v35 = vsel %vm1074_vm5, %v884_v26, %v1138_v30  ;;  %5156 = vmatpush3.bf16.msra.mxu0 %v5153_v21 }
 0x136   : > { %v1141_v36 = vmul.f32 0.1, %v899_v32  ;;  %4873 = vmatprep.mubr.msk.f32.mxu1 %vm1249_vm2, %v1202_v35  ;;  %vm1077_vm6 = vcmp.gt.f32.partialorder %v899_v32, 0.0 }
 0x137   : > { %vm1076_vm7 = vcmp.gt.f32.partialorder %v894_v34, 0.0  ;;  %v1140_v38 = vmul.f32 0.1, %v894_v34  ;;  %v4769_v39 = vpop.f32.mrb[36].mxu0  ;;  %4874 = vmatmul.mubr.msk.f32.gmra.mrb[32].mxu1 %vm1249_vm2, %v1203_v37 }
 0x138   : > { %v909_v40 = vadd.f32 %v4769_v39, %v5650_v19  ;;  %v903_v41 = vpop.f32.mrb[37].mxu0  ;;  %v1205_v45 = vsel %vm1077_vm6, %v899_v32, %v1141_v36 }
 0x139   : > { %v904_v42 = vadd.f32 %v5650_v19, %v903_v41  ;;  %v1204_v43 = vsel %vm1076_vm7, %v894_v34, %v1140_v38 }
 0x13a   : > { %v1143_v44 = vmul.f32 0.1, %v909_v40  ;;  %4876 = vmatprep.mubr.msk.f32.mxu1 %vm1249_vm2, %v1204_v43  ;;  %vm1079_vm8 = vcmp.gt.f32.partialorder %v909_v40, 0.0 }
 0x13b   : > { %vm1078_vm9 = vcmp.gt.f32.partialorder %v904_v42, 0.0  ;;  %v1142_v46 = vmul.f32 0.1, %v904_v42  ;;  %v4772_v47 = vpop.f32.mrb[38].mxu0  ;;  %4877 = vmatmul.mubr.msk.f32.gmra.mrb[34].mxu1 %vm1249_vm2, %v1205_v45 }
 0x13c   : > { %v919_v48 = vadd.f32 %v4772_v47, %v5650_v19  ;;  %v913_v49 = vpop.f32.mrb[39].mxu0  ;;  %v1207_v53 = vsel %vm1079_vm8, %v909_v40, %v1143_v44 }
 0x13d   : > { %v914_v50 = vadd.f32 %v5650_v19, %v913_v49  ;;  %v1206_v51 = vsel %vm1078_vm9, %v904_v42, %v1142_v46 }
 0x13e   : > { %v1145_v52 = vmul.f32 0.1, %v919_v48  ;;  %4879 = vmatprep.mubr.msk.f32.mxu1 %vm1249_vm2, %v1206_v51  ;;  %vm1081_vm10 = vcmp.gt.f32.partialorder %v919_v48, 0.0 }
 0x13f   : > { %vm1080_vm11 = vcmp.gt.f32.partialorder %v914_v50, 0.0  ;;  %v1144_v54 = vmul.f32 0.1, %v914_v50  ;;  %v4775_v55 = vpop.f32.mrb[40].mxu0  ;;  %4880 = vmatmul.mubr.msk.f32.gmra.mrb[36].mxu1 %vm1249_vm2, %v1207_v53 }
 0x140   : > { %v929_v56 = vadd.f32 %v4775_v55, %v5650_v19  ;;  %v923_v57 = vpop.f32.mrb[41].mxu0  ;;  %v1209_v61 = vsel %vm1081_vm10, %v919_v48, %v1145_v52 }
 0x141   : > { %v924_v58 = vadd.f32 %v5650_v19, %v923_v57  ;;  %v1208_v59 = vsel %vm1080_vm11, %v914_v50, %v1144_v54 }
 0x142   : > { %v1147_v60 = vmul.f32 0.1, %v929_v56  ;;  %4882 = vmatprep.mubr.msk.f32.mxu1 %vm1249_vm2, %v1208_v59  ;;  %vm1083_vm12 = vcmp.gt.f32.partialorder %v929_v56, 0.0 }
 0x143   : > { %vm1082_vm13 = vcmp.gt.f32.partialorder %v924_v58, 0.0  ;;  %v1146_v62 = vmul.f32 0.1, %v924_v58  ;;  %v4778_v63 = vpop.f32.mrb[42].mxu0  ;;  %4883 = vmatmul.mubr.msk.f32.gmra.mrb[38].mxu1 %vm1249_vm2, %v1209_v61 }
 0x144   : > { %v939_v0 = vadd.f32 %v4778_v63, %v5650_v19  ;;  %v933_v1 = vpop.f32.mrb[43].mxu0  ;;  %v1211_v5 = vsel %vm1083_vm12, %v929_v56, %v1147_v60 }
 0x145   : > { %v934_v2 = vadd.f32 %v5650_v19, %v933_v1  ;;  %v1210_v3 = vsel %vm1082_vm13, %v924_v58, %v1146_v62 }
 0x146   : > { %v1149_v4 = vmul.f32 0.1, %v939_v0  ;;  %4885 = vmatprep.mubr.msk.f32.mxu1 %vm1249_vm2, %v1210_v3  ;;  %vm1085_vm14 = vcmp.gt.f32.partialorder %v939_v0, 0.0 }
 0x147   : > { %vm1084_vm15 = vcmp.gt.f32.partialorder %v934_v2, 0.0  ;;  %v1148_v6 = vmul.f32 0.1, %v934_v2  ;;  %v4781_v7 = vpop.f32.mrb[44].mxu0  ;;  %4886 = vmatmul.mubr.msk.f32.gmra.mrb[40].mxu1 %vm1249_vm2, %v1211_v5 }
 0x148   : > { %v949_v8 = vadd.f32 %v4781_v7, %v5650_v19  ;;  %v943_v9 = vpop.f32.mrb[45].mxu0  ;;  %v1213_v13 = vsel %vm1085_vm14, %v939_v0, %v1149_v4 }
 0x149   : > { %v944_v10 = vadd.f32 %v5650_v19, %v943_v9  ;;  %v1212_v11 = vsel %vm1084_vm15, %v934_v2, %v1148_v6 }
 0x14a   : > { %vm1087_vm0 = vcmp.gt.f32.partialorder %v949_v8, 0.0  ;;  %v1151_v12 = vmul.f32 0.1, %v949_v8  ;;  %4888 = vmatprep.mubr.msk.f32.mxu1 %vm1249_vm2, %v1212_v11 }
 0x14b   : > { %vm1086_vm1 = vcmp.gt.f32.partialorder %v944_v10, 0.0  ;;  %v1150_v14 = vmul.f32 0.1, %v944_v10  ;;  %v4784_v15 = vpop.f32.mrb[46].mxu0  ;;  %4889 = vmatmul.mubr.msk.f32.gmra.mrb[42].mxu1 %vm1249_vm2, %v1213_v13 }
 0x14c   : > { %v959_v18 = vadd.f32 %v4784_v15, %v5650_v19  ;;  %v953_v20 = vpop.f32.mrb[47].mxu0  ;;  %v1215_v25 = vsel %vm1087_vm0, %v949_v8, %v1151_v12 }
 0x14d   : > { %v954_v22 = vadd.f32 %v5650_v19, %v953_v20  ;;  %v1214_v23 = vsel %vm1086_vm1, %v944_v10, %v1150_v14 }
 0x14e   : > { %v1153_v24 = vmul.f32 0.1, %v959_v18  ;;  %4891 = vmatprep.mubr.msk.f32.mxu1 %vm1249_vm2, %v1214_v23  ;;  %vm1089_vm3 = vcmp.gt.f32.partialorder %v959_v18, 0.0 }
 0x14f   : > { %vm1088_vm4 = vcmp.gt.f32.partialorder %v954_v22, 0.0  ;;  %v1152_v26 = vmul.f32 0.1, %v954_v22  ;;  %v4787_v27 = vpop.f32.mrb[48].mxu0  ;;  %4892 = vmatmul.mubr.msk.f32.gmra.mrb[44].mxu1 %vm1249_vm2, %v1215_v25 }
 0x150   : > { %v969_v28 = vadd.f32 %v4787_v27, %v5650_v19  ;;  %v963_v29 = vpop.f32.mrb[49].mxu0  ;;  %v1217_v33 = vsel %vm1089_vm3, %v959_v18, %v1153_v24 }
 0x151   : > { %v964_v30 = vadd.f32 %v5650_v19, %v963_v29  ;;  %v1216_v31 = vsel %vm1088_vm4, %v954_v22, %v1152_v26 }
 0x152   : > { %v1155_v32 = vmul.f32 0.1, %v969_v28  ;;  %4894 = vmatprep.mubr.msk.f32.mxu1 %vm1249_vm2, %v1216_v31  ;;  %vm1091_vm5 = vcmp.gt.f32.partialorder %v969_v28, 0.0 }
 0x153   : > { %vm1090_vm6 = vcmp.gt.f32.partialorder %v964_v30, 0.0  ;;  %v1154_v34 = vmul.f32 0.1, %v964_v30  ;;  %v4790_v35 = vpop.f32.mrb[50].mxu0  ;;  %4895 = vmatmul.mubr.msk.f32.gmra.mrb[46].mxu1 %vm1249_vm2, %v1217_v33 }
 0x154   : > { %v979_v36 = vadd.f32 %v4790_v35, %v5650_v19  ;;  %v973_v37 = vpop.f32.mrb[51].mxu0  ;;  %v1219_v41 = vsel %vm1091_vm5, %v969_v28, %v1155_v32 }
 0x155   : > { %v974_v38 = vadd.f32 %v5650_v19, %v973_v37  ;;  %v1218_v39 = vsel %vm1090_vm6, %v964_v30, %v1154_v34  ;;  %v5796_v30 = vld [vmem:[%s6433_s4] ss:$0 sm:$0xff] }
 0x156   : > { %vm1093_vm7 = vcmp.gt.f32.partialorder %v979_v36, 0.0  ;;  %v1157_v40 = vmul.f32 0.1, %v979_v36  ;;  %4897 = vmatprep.mubr.msk.f32.mxu1 %vm1249_vm2, %v1218_v39  ;;  %v2800_v37 = vld [vmem:[%s6436_s7] sm:$0xff] }
 0x157   : > { %vm1092_vm8 = vcmp.gt.f32.partialorder %v974_v38, 0.0  ;;  %v1156_v42 = vmul.f32 0.1, %v974_v38  ;;  %4898 = vmatmul.mubr.msk.f32.gmra.mrb[48].mxu1 %vm1249_vm2, %v1219_v41  ;;  %v4793_v43 = vpop.f32.mrb[52].mxu0 }
 0x158   : > { %v1221_v44 = vsel %vm1093_vm7, %v979_v36, %v1157_v40  ;;  %v989_v45 = vadd.f32 %v4793_v43, %v5650_v19  ;;  %v983_v46 = vpop.f32.mrb[53].mxu0  ;;  %vm2030_vm7 = vcmask 261120  }
 0x159   : > { %v1220_v47 = vsel %vm1092_vm8, %v974_v38, %v1156_v42  ;;  %v984_v48 = vadd.f32 %v5650_v19, %v983_v46  ;;  %v2801_v38 = vld [vmem:[%s6436_s7 + $0x8] sm:$0xff] }
 0x15a   : > { %4900 = vmatprep.mubr.msk.f32.mxu1 %vm1249_vm2, %v1220_v47  ;;  %vm1095_vm9 = vcmp.gt.f32.partialorder %v989_v45, 0.0  ;;  %v1159_v49 = vmul.f32 0.1, %v989_v45  ;;  %v5157_v41 = vpack.c.bf16 %v2801_v38, %v2800_v37 }
 0x15b   : > { %4901 = vmatmul.mubr.msk.f32.gmra.mrb[50].mxu1 %vm1249_vm2, %v1221_v44  ;;  %vm1094_vm10 = vcmp.gt.f32.partialorder %v984_v48, 0.0  ;;  %v1158_v50 = vmul.f32 0.1, %v984_v48  ;;  %v4796_v51 = vpop.f32.mrb[54].mxu0 }
 0x15c   : > { %v999_v52 = vadd.f32 %v4796_v51, %v5650_v19  ;;  %v1223_v53 = vsel %vm1095_vm9, %v989_v45, %v1159_v49  ;;  %v993_v54 = vpop.f32.mrb[55].mxu0  ;;  %5158 = vmatprep.subr.bf16.mxu1 %v5157_v41 }
 0x15d   : > { %v1222_v55 = vsel %vm1094_vm10, %v984_v48, %v1158_v50  ;;  %v994_v56 = vadd.f32 %v5650_v19, %v993_v54  ;;  %5160 = vmatpush3.bf16.msra.mxu1 %v5157_v41 }
 0x15e   : > { %4903 = vmatprep.mubr.msk.f32.mxu1 %vm1249_vm2, %v1222_v55  ;;  %vm1097_vm11 = vcmp.gt.f32.partialorder %v999_v52, 0.0  ;;  %v1161_v57 = vmul.f32 0.1, %v999_v52 }
 0x15f   : > { %4904 = vmatmul.mubr.msk.f32.gmra.mrb[52].mxu1 %vm1249_vm2, %v1223_v53  ;;  %vm1096_vm12 = vcmp.gt.f32.partialorder %v994_v56, 0.0  ;;  %v1160_v58 = vmul.f32 0.1, %v994_v56  ;;  %v4799_v59 = vpop.f32.mrb[56].mxu0 }
 0x160   : > { %v1009_v60 = vadd.f32 %v4799_v59, %v5650_v19  ;;  %v1225_v61 = vsel %vm1097_vm11, %v999_v52, %v1161_v57  ;;  %v1003_v62 = vpop.f32.mrb[57].mxu0 }
 0x161   : > { %v1224_v63 = vsel %vm1096_vm12, %v994_v56, %v1160_v58  ;;  %v1004_v0 = vadd.f32 %v5650_v19, %v1003_v62 }
 0x162   : > { %4906 = vmatprep.mubr.msk.f32.mxu1 %vm1249_vm2, %v1224_v63  ;;  %vm1099_vm13 = vcmp.gt.f32.partialorder %v1009_v60, 0.0  ;;  %v1163_v1 = vmul.f32 0.1, %v1009_v60 }
 0x163   : > { %4907 = vmatmul.mubr.msk.f32.gmra.mrb[54].mxu1 %vm1249_vm2, %v1225_v61  ;;  %vm1098_vm14 = vcmp.gt.f32.partialorder %v1004_v0, 0.0  ;;  %v1162_v2 = vmul.f32 0.1, %v1004_v0  ;;  %v4802_v3 = vpop.f32.mrb[58].mxu0 }
 0x164   : > { %v1019_v4 = vadd.f32 %v4802_v3, %v5650_v19  ;;  %v1227_v5 = vsel %vm1099_vm13, %v1009_v60, %v1163_v1  ;;  %v1013_v6 = vpop.f32.mrb[59].mxu0 }
 0x165   : > { %v1226_v7 = vsel %vm1098_vm14, %v1004_v0, %v1162_v2  ;;  %v1014_v8 = vadd.f32 %v5650_v19, %v1013_v6 }
 0x166   : > { %4909 = vmatprep.mubr.msk.f32.mxu1 %vm1249_vm2, %v1226_v7  ;;  %vm1101_vm15 = vcmp.gt.f32.partialorder %v1019_v4, 0.0  ;;  %v1165_v9 = vmul.f32 0.1, %v1019_v4 }
 0x167   : > { %4910 = vmatmul.mubr.msk.f32.gmra.mrb[56].mxu1 %vm1249_vm2, %v1227_v5  ;;  %vm1100_vm0 = vcmp.gt.f32.partialorder %v1014_v8, 0.0  ;;  %v1164_v10 = vmul.f32 0.1, %v1014_v8  ;;  %v4805_v11 = vpop.f32.mrb[60].mxu0 }
 0x168   : > { %v1029_v12 = vadd.f32 %v4805_v11, %v5650_v19  ;;  %v1229_v13 = vsel %vm1101_vm15, %v1019_v4, %v1165_v9  ;;  %v1023_v14 = vpop.f32.mrb[61].mxu0 }
 0x169   : > { %v1228_v15 = vsel %vm1100_vm0, %v1014_v8, %v1164_v10  ;;  %v1024_v16 = vadd.f32 %v5650_v19, %v1023_v14 }
 0x16a   : > { %4912 = vmatprep.mubr.msk.f32.mxu1 %vm1249_vm2, %v1228_v15  ;;  %vm1103_vm1 = vcmp.gt.f32.partialorder %v1029_v12, 0.0  ;;  %v1167_v17 = vmul.f32 0.1, %v1029_v12 }
 0x16b   : > { %4913 = vmatmul.mubr.msk.f32.gmra.mrb[58].mxu1 %vm1249_vm2, %v1229_v13  ;;  %vm1102_vm3 = vcmp.gt.f32.partialorder %v1024_v16, 0.0  ;;  %v1166_v18 = vmul.f32 0.1, %v1024_v16  ;;  %v4808_v20 = vpop.f32.mrb[62].mxu0 }
 0x16c   : > { %v1039_v21 = vadd.f32 %v4808_v20, %v5650_v19  ;;  %v1231_v22 = vsel %vm1103_vm1, %v1029_v12, %v1167_v17  ;;  %v1033_v23 = vpop.f32.mrb[63].mxu0 }
 0x16d   : > { %v1230_v24 = vsel %vm1102_vm3, %v1024_v16, %v1166_v18  ;;  %v1034_v25 = vadd.f32 %v5650_v19, %v1033_v23 }
 0x16e   : > { %4915 = vmatprep.mubr.msk.f32.mxu1 %vm1249_vm2, %v1230_v24  ;;  %vm1105_vm4 = vcmp.gt.f32.partialorder %v1039_v21, 0.0  ;;  %v1169_v26 = vmul.f32 0.1, %v1039_v21 }
 0x16f   : > { %4916 = vmatmul.mubr.msk.f32.gmra.mrb[60].mxu1 %vm1249_vm2, %v1231_v22  ;;  %vm1104_vm5 = vcmp.gt.f32.partialorder %v1034_v25, 0.0  ;;  %v1168_v27 = vmul.f32 0.1, %v1034_v25 }
 0x170   : > { %v1233_v28 = vsel %vm1105_vm4, %v1039_v21, %v1169_v26 }
 0x171   : > { %v1232_v29 = vsel %vm1104_vm5, %v1034_v25, %v1168_v27 }
 0x172   : > { %4918 = vmatprep.mubr.msk.f32.mxu1 %vm1249_vm2, %v1232_v29 }
 0x173   : > { %4919 = vmatmul.mubr.msk.f32.gmra.mrb[62].mxu1 %vm1249_vm2, %v1233_v28 }
 0x1ca   : > { %v4827_v19 = vpop.f32.mrb[0].mxu1 }
 0x1cb   : > { %v1514_v31 = vadd.f32 %v4827_v19, %v5796_v30  ;;  %v1508_v32 = vpop.f32.mrb[1].mxu1 }
 0x1cc   : > { %v1509_v33 = vadd.f32 %v5796_v30, %v1508_v32 }
 0x1cd   : > { %vm1828_vm6 = vcmp.gt.f32.partialorder %v1514_v31, 0.0  ;;  %v1892_v34 = vmul.f32 0.1, %v1514_v31 }
 0x1ce   : > { %vm1827_vm8 = vcmp.gt.f32.partialorder %v1509_v33, 0.0  ;;  %v1891_v35 = vmul.f32 0.1, %v1509_v33  ;;  %v4830_v36 = vpop.f32.mrb[2].mxu1 }
 0x1cf   : > { %v1524_v39 = vadd.f32 %v4830_v36, %v5796_v30  ;;  %v1518_v40 = vpop.f32.mrb[3].mxu1  ;;  %v1956_v44 = vsel %vm1828_vm6, %v1514_v31, %v1892_v34 }
 0x1d0   : > { %v1519_v42 = vadd.f32 %v5796_v30, %v1518_v40  ;;  %v1955_v43 = vsel %vm1827_vm8, %v1509_v33, %v1891_v35 }
 0x1d1   : > { %v1894_v45 = vmul.f32 0.1, %v1524_v39  ;;  %4929 = vmatprep.mubr.msk.f32.mxu0 %vm2030_vm7, %v1955_v43  ;;  %vm1830_vm2 = vcmp.gt.f32.partialorder %v1524_v39, 0.0 }
 0x1d2   : > { %vm1829_vm9 = vcmp.gt.f32.partialorder %v1519_v42, 0.0  ;;  %v1893_v46 = vmul.f32 0.1, %v1519_v42  ;;  %v4833_v47 = vpop.f32.mrb[4].mxu1  ;;  %4930 = vmatmul.mubr.msk.f32.vlgmr.msra.gmra.mrb[64].mxu0 %vm2030_vm7, %v1956_v44 }
 0x1d3   : > { %v1534_v48 = vadd.f32 %v4833_v47, %v5796_v30  ;;  %v1528_v49 = vpop.f32.mrb[5].mxu1  ;;  %v1958_v53 = vsel %vm1830_vm2, %v1524_v39, %v1894_v45 }
 0x1d4   : > { %v1529_v50 = vadd.f32 %v5796_v30, %v1528_v49  ;;  %v1957_v51 = vsel %vm1829_vm9, %v1519_v42, %v1893_v46 }
 0x1d5   : > { %v1896_v52 = vmul.f32 0.1, %v1534_v48  ;;  %4932 = vmatprep.mubr.msk.f32.mxu0 %vm2030_vm7, %v1957_v51  ;;  %vm1832_vm10 = vcmp.gt.f32.partialorder %v1534_v48, 0.0 }
 0x1d6   : > { %vm1831_vm11 = vcmp.gt.f32.partialorder %v1529_v50, 0.0  ;;  %v1895_v54 = vmul.f32 0.1, %v1529_v50  ;;  %v4836_v55 = vpop.f32.mrb[6].mxu1  ;;  %4933 = vmatmul.mubr.msk.f32.gmra.mrb[66].mxu0 %vm2030_vm7, %v1958_v53 }
 0x1d7   : > { %v1544_v56 = vadd.f32 %v4836_v55, %v5796_v30  ;;  %v1538_v57 = vpop.f32.mrb[7].mxu1  ;;  %v1960_v61 = vsel %vm1832_vm10, %v1534_v48, %v1896_v52 }
 0x1d8   : > { %v1539_v58 = vadd.f32 %v5796_v30, %v1538_v57  ;;  %v1959_v59 = vsel %vm1831_vm11, %v1529_v50, %v1895_v54 }
 0x1d9   : > { %v1898_v60 = vmul.f32 0.1, %v1544_v56  ;;  %4935 = vmatprep.mubr.msk.f32.mxu0 %vm2030_vm7, %v1959_v59  ;;  %vm1834_vm12 = vcmp.gt.f32.partialorder %v1544_v56, 0.0 }
 0x1da   : > { %vm1833_vm13 = vcmp.gt.f32.partialorder %v1539_v58, 0.0  ;;  %v1897_v62 = vmul.f32 0.1, %v1539_v58  ;;  %v4839_v63 = vpop.f32.mrb[8].mxu1  ;;  %4936 = vmatmul.mubr.msk.f32.gmra.mrb[68].mxu0 %vm2030_vm7, %v1960_v61 }
 0x1db   : > { %v1554_v0 = vadd.f32 %v4839_v63, %v5796_v30  ;;  %v1548_v1 = vpop.f32.mrb[9].mxu1  ;;  %v1962_v5 = vsel %vm1834_vm12, %v1544_v56, %v1898_v60 }
 0x1dc   : > { %v1549_v2 = vadd.f32 %v5796_v30, %v1548_v1  ;;  %v1961_v3 = vsel %vm1833_vm13, %v1539_v58, %v1897_v62 }
 0x1dd   : > { %v1900_v4 = vmul.f32 0.1, %v1554_v0  ;;  %4938 = vmatprep.mubr.msk.f32.mxu0 %vm2030_vm7, %v1961_v3  ;;  %vm1836_vm14 = vcmp.gt.f32.partialorder %v1554_v0, 0.0 }
 0x1de   : > { %vm1835_vm15 = vcmp.gt.f32.partialorder %v1549_v2, 0.0  ;;  %v1899_v6 = vmul.f32 0.1, %v1549_v2  ;;  %v4842_v7 = vpop.f32.mrb[10].mxu1  ;;  %4939 = vmatmul.mubr.msk.f32.gmra.mrb[70].mxu0 %vm2030_vm7, %v1962_v5 }
 0x1df   : > { %v1564_v8 = vadd.f32 %v4842_v7, %v5796_v30  ;;  %v1558_v9 = vpop.f32.mrb[11].mxu1  ;;  %v1964_v13 = vsel %vm1836_vm14, %v1554_v0, %v1900_v4 }
 0x1e0   : > { %v1559_v10 = vadd.f32 %v5796_v30, %v1558_v9  ;;  %v1963_v11 = vsel %vm1835_vm15, %v1549_v2, %v1899_v6 }
 0x1e1   : > { %v1902_v12 = vmul.f32 0.1, %v1564_v8  ;;  %4941 = vmatprep.mubr.msk.f32.mxu0 %vm2030_vm7, %v1963_v11  ;;  %vm1838_vm0 = vcmp.gt.f32.partialorder %v1564_v8, 0.0 }
 0x1e2   : > { %vm1837_vm1 = vcmp.gt.f32.partialorder %v1559_v10, 0.0  ;;  %v1901_v14 = vmul.f32 0.1, %v1559_v10  ;;  %v4845_v15 = vpop.f32.mrb[12].mxu1  ;;  %4942 = vmatmul.mubr.msk.f32.gmra.mrb[72].mxu0 %vm2030_vm7, %v1964_v13 }
 0x1e3   : > { %v1574_v16 = vadd.f32 %v4845_v15, %v5796_v30  ;;  %v1568_v17 = vpop.f32.mrb[13].mxu1  ;;  %v1966_v22 = vsel %vm1838_vm0, %v1564_v8, %v1902_v12 }
 0x1e4   : > { %v1569_v18 = vadd.f32 %v5796_v30, %v1568_v17  ;;  %v1965_v20 = vsel %vm1837_vm1, %v1559_v10, %v1901_v14 }
 0x1e5   : > { %v1904_v21 = vmul.f32 0.1, %v1574_v16  ;;  %4944 = vmatprep.mubr.msk.f32.mxu0 %vm2030_vm7, %v1965_v20  ;;  %vm1840_vm3 = vcmp.gt.f32.partialorder %v1574_v16, 0.0 }
 0x1e6   : > { %vm1839_vm4 = vcmp.gt.f32.partialorder %v1569_v18, 0.0  ;;  %v1903_v23 = vmul.f32 0.1, %v1569_v18  ;;  %v4848_v24 = vpop.f32.mrb[14].mxu1  ;;  %4945 = vmatmul.mubr.msk.f32.gmra.mrb[74].mxu0 %vm2030_vm7, %v1966_v22 }
 0x1e7   : > { %v1584_v25 = vadd.f32 %v4848_v24, %v5796_v30  ;;  %v1578_v26 = vpop.f32.mrb[15].mxu1  ;;  %v1968_v19 = vsel %vm1840_vm3, %v1574_v16, %v1904_v21 }
 0x1e8   : > { %v1579_v27 = vadd.f32 %v5796_v30, %v1578_v26  ;;  %v1967_v28 = vsel %vm1839_vm4, %v1569_v18, %v1903_v23 }
 0x1e9   : > { %v1906_v29 = vmul.f32 0.1, %v1584_v25  ;;  %4947 = vmatprep.mubr.msk.f32.mxu0 %vm2030_vm7, %v1967_v28  ;;  %vm1842_vm5 = vcmp.gt.f32.partialorder %v1584_v25, 0.0 }
 0x1ea   : > { %vm1841_vm6 = vcmp.gt.f32.partialorder %v1579_v27, 0.0  ;;  %v1905_v31 = vmul.f32 0.1, %v1579_v27  ;;  %v4851_v32 = vpop.f32.mrb[16].mxu1  ;;  %4948 = vmatmul.mubr.msk.f32.gmra.mrb[76].mxu0 %vm2030_vm7, %v1968_v19 }
 0x1eb   : > { %v1594_v33 = vadd.f32 %v4851_v32, %v5796_v30  ;;  %v1588_v34 = vpop.f32.mrb[17].mxu1  ;;  %v1970_v38 = vsel %vm1842_vm5, %v1584_v25, %v1906_v29 }
 0x1ec   : > { %v1589_v35 = vadd.f32 %v5796_v30, %v1588_v34  ;;  %v1969_v36 = vsel %vm1841_vm6, %v1579_v27, %v1905_v31 }
 0x1ed   : > { %v1908_v37 = vmul.f32 0.1, %v1594_v33  ;;  %4950 = vmatprep.mubr.msk.f32.mxu0 %vm2030_vm7, %v1969_v36  ;;  %vm1844_vm8 = vcmp.gt.f32.partialorder %v1594_v33, 0.0 }
 0x1ee   : > { %vm1843_vm2 = vcmp.gt.f32.partialorder %v1589_v35, 0.0  ;;  %v1907_v39 = vmul.f32 0.1, %v1589_v35  ;;  %v4854_v40 = vpop.f32.mrb[18].mxu1  ;;  %4951 = vmatmul.mubr.msk.f32.gmra.mrb[78].mxu0 %vm2030_vm7, %v1970_v38 }
 0x1ef   : > { %v1604_v41 = vadd.f32 %v4854_v40, %v5796_v30  ;;  %v1598_v42 = vpop.f32.mrb[19].mxu1  ;;  %v1972_v46 = vsel %vm1844_vm8, %v1594_v33, %v1908_v37 }
 0x1f0   : > { %v1599_v43 = vadd.f32 %v5796_v30, %v1598_v42  ;;  %v1971_v44 = vsel %vm1843_vm2, %v1589_v35, %v1907_v39 }
 0x1f1   : > { %v1910_v45 = vmul.f32 0.1, %v1604_v41  ;;  %4953 = vmatprep.mubr.msk.f32.mxu0 %vm2030_vm7, %v1971_v44  ;;  %vm1846_vm9 = vcmp.gt.f32.partialorder %v1604_v41, 0.0 }
 0x1f2   : > { %vm1845_vm10 = vcmp.gt.f32.partialorder %v1599_v43, 0.0  ;;  %v1909_v47 = vmul.f32 0.1, %v1599_v43  ;;  %v4857_v48 = vpop.f32.mrb[20].mxu1  ;;  %4954 = vmatmul.mubr.msk.f32.gmra.mrb[80].mxu0 %vm2030_vm7, %v1972_v46 }
 0x1f3   : > { %v1614_v49 = vadd.f32 %v4857_v48, %v5796_v30  ;;  %v1608_v50 = vpop.f32.mrb[21].mxu1  ;;  %v1974_v54 = vsel %vm1846_vm9, %v1604_v41, %v1910_v45 }
 0x1f4   : > { %v1609_v51 = vadd.f32 %v5796_v30, %v1608_v50  ;;  %v1973_v52 = vsel %vm1845_vm10, %v1599_v43, %v1909_v47 }
 0x1f5   : > { %v1912_v53 = vmul.f32 0.1, %v1614_v49  ;;  %4956 = vmatprep.mubr.msk.f32.mxu0 %vm2030_vm7, %v1973_v52  ;;  %vm1848_vm11 = vcmp.gt.f32.partialorder %v1614_v49, 0.0 }
 0x1f6   : > { %vm1847_vm12 = vcmp.gt.f32.partialorder %v1609_v51, 0.0  ;;  %v1911_v55 = vmul.f32 0.1, %v1609_v51  ;;  %v4860_v56 = vpop.f32.mrb[22].mxu1  ;;  %4957 = vmatmul.mubr.msk.f32.gmra.mrb[82].mxu0 %vm2030_vm7, %v1974_v54 }
 0x1f7   : > { %v1624_v57 = vadd.f32 %v4860_v56, %v5796_v30  ;;  %v1618_v58 = vpop.f32.mrb[23].mxu1  ;;  %v1976_v62 = vsel %vm1848_vm11, %v1614_v49, %v1912_v53 }
 0x1f8   : > { %v1619_v59 = vadd.f32 %v5796_v30, %v1618_v58  ;;  %v1975_v60 = vsel %vm1847_vm12, %v1609_v51, %v1911_v55 }
 0x1f9   : > { %v1914_v61 = vmul.f32 0.1, %v1624_v57  ;;  %4959 = vmatprep.mubr.msk.f32.mxu0 %vm2030_vm7, %v1975_v60  ;;  %vm1850_vm13 = vcmp.gt.f32.partialorder %v1624_v57, 0.0 }
 0x1fa   : > { %vm1849_vm14 = vcmp.gt.f32.partialorder %v1619_v59, 0.0  ;;  %v1913_v63 = vmul.f32 0.1, %v1619_v59  ;;  %v4863_v0 = vpop.f32.mrb[24].mxu1  ;;  %4960 = vmatmul.mubr.msk.f32.gmra.mrb[84].mxu0 %vm2030_vm7, %v1976_v62 }
 0x1fb   : > { %v1634_v1 = vadd.f32 %v4863_v0, %v5796_v30  ;;  %v1628_v2 = vpop.f32.mrb[25].mxu1  ;;  %v1978_v6 = vsel %vm1850_vm13, %v1624_v57, %v1914_v61 }
 0x1fc   : > { %v1629_v3 = vadd.f32 %v5796_v30, %v1628_v2  ;;  %v1977_v4 = vsel %vm1849_vm14, %v1619_v59, %v1913_v63 }
 0x1fd   : > { %v1916_v5 = vmul.f32 0.1, %v1634_v1  ;;  %4962 = vmatprep.mubr.msk.f32.mxu0 %vm2030_vm7, %v1977_v4  ;;  %vm1852_vm15 = vcmp.gt.f32.partialorder %v1634_v1, 0.0 }
 0x1fe   : > { %vm1851_vm0 = vcmp.gt.f32.partialorder %v1629_v3, 0.0  ;;  %v1915_v7 = vmul.f32 0.1, %v1629_v3  ;;  %v4866_v8 = vpop.f32.mrb[26].mxu1  ;;  %4963 = vmatmul.mubr.msk.f32.gmra.mrb[86].mxu0 %vm2030_vm7, %v1978_v6 }
 0x1ff   : > { %v1644_v9 = vadd.f32 %v4866_v8, %v5796_v30  ;;  %v1638_v10 = vpop.f32.mrb[27].mxu1  ;;  %v1980_v14 = vsel %vm1852_vm15, %v1634_v1, %v1916_v5 }
 0x200   : > { %v1639_v11 = vadd.f32 %v5796_v30, %v1638_v10  ;;  %v1979_v12 = vsel %vm1851_vm0, %v1629_v3, %v1915_v7 }
 0x201   : > { %v1918_v13 = vmul.f32 0.1, %v1644_v9  ;;  %4965 = vmatprep.mubr.msk.f32.mxu0 %vm2030_vm7, %v1979_v12  ;;  %vm1854_vm1 = vcmp.gt.f32.partialorder %v1644_v9, 0.0 }
 0x202   : > { %vm1853_vm3 = vcmp.gt.f32.partialorder %v1639_v11, 0.0  ;;  %v1917_v15 = vmul.f32 0.1, %v1639_v11  ;;  %v4869_v16 = vpop.f32.mrb[28].mxu1  ;;  %4966 = vmatmul.mubr.msk.f32.gmra.mrb[88].mxu0 %vm2030_vm7, %v1980_v14 }
 0x203   : > { %v1654_v17 = vadd.f32 %v4869_v16, %v5796_v30  ;;  %v1648_v18 = vpop.f32.mrb[29].mxu1  ;;  %v1982_v23 = vsel %vm1854_vm1, %v1644_v9, %v1918_v13 }
 0x204   : > { %v1649_v20 = vadd.f32 %v5796_v30, %v1648_v18  ;;  %v1981_v21 = vsel %vm1853_vm3, %v1639_v11, %v1917_v15 }
 0x205   : > { %v1920_v22 = vmul.f32 0.1, %v1654_v17  ;;  %4968 = vmatprep.mubr.msk.f32.mxu0 %vm2030_vm7, %v1981_v21  ;;  %vm1856_vm4 = vcmp.gt.f32.partialorder %v1654_v17, 0.0 }
 0x206   : > { %vm1855_vm5 = vcmp.gt.f32.partialorder %v1649_v20, 0.0  ;;  %v1919_v24 = vmul.f32 0.1, %v1649_v20  ;;  %v4872_v25 = vpop.f32.mrb[30].mxu1  ;;  %4969 = vmatmul.mubr.msk.f32.gmra.mrb[90].mxu0 %vm2030_vm7, %v1982_v23 }
 0x207   : > { %v1664_v26 = vadd.f32 %v4872_v25, %v5796_v30  ;;  %v1658_v27 = vpop.f32.mrb[31].mxu1  ;;  %v1984_v31 = vsel %vm1856_vm4, %v1654_v17, %v1920_v22 }
 0x208   : > { %v1659_v28 = vadd.f32 %v5796_v30, %v1658_v27  ;;  %v1983_v29 = vsel %vm1855_vm5, %v1649_v20, %v1919_v24 }
 0x209   : > { %v1922_v19 = vmul.f32 0.1, %v1664_v26  ;;  %4971 = vmatprep.mubr.msk.f32.mxu0 %vm2030_vm7, %v1983_v29  ;;  %vm1858_vm6 = vcmp.gt.f32.partialorder %v1664_v26, 0.0 }
 0x20a   : > { %vm1857_vm8 = vcmp.gt.f32.partialorder %v1659_v28, 0.0  ;;  %v1921_v32 = vmul.f32 0.1, %v1659_v28  ;;  %v4875_v33 = vpop.f32.mrb[32].mxu1  ;;  %4972 = vmatmul.mubr.msk.f32.gmra.mrb[92].mxu0 %vm2030_vm7, %v1984_v31 }
 0x20b   : > { %v1674_v34 = vadd.f32 %v4875_v33, %v5796_v30  ;;  %v1668_v35 = vpop.f32.mrb[33].mxu1  ;;  %v1986_v39 = vsel %vm1858_vm6, %v1664_v26, %v1922_v19 }
 0x20c   : > { %v1669_v36 = vadd.f32 %v5796_v30, %v1668_v35  ;;  %v1985_v37 = vsel %vm1857_vm8, %v1659_v28, %v1921_v32 }
 0x20d   : > { %v1924_v38 = vmul.f32 0.1, %v1674_v34  ;;  %4974 = vmatprep.mubr.msk.f32.mxu0 %vm2030_vm7, %v1985_v37  ;;  %vm1860_vm2 = vcmp.gt.f32.partialorder %v1674_v34, 0.0 }
 0x20e   : > { %vm1859_vm9 = vcmp.gt.f32.partialorder %v1669_v36, 0.0  ;;  %v1923_v40 = vmul.f32 0.1, %v1669_v36  ;;  %v4878_v41 = vpop.f32.mrb[34].mxu1  ;;  %4975 = vmatmul.mubr.msk.f32.gmra.mrb[94].mxu0 %vm2030_vm7, %v1986_v39 }
 0x20f   : > { %v1684_v42 = vadd.f32 %v4878_v41, %v5796_v30  ;;  %v1678_v43 = vpop.f32.mrb[35].mxu1  ;;  %v1988_v47 = vsel %vm1860_vm2, %v1674_v34, %v1924_v38 }
 0x210   : > { %v1679_v44 = vadd.f32 %v5796_v30, %v1678_v43  ;;  %v1987_v45 = vsel %vm1859_vm9, %v1669_v36, %v1923_v40 }
 0x211   : > { %v1926_v46 = vmul.f32 0.1, %v1684_v42  ;;  %4977 = vmatprep.mubr.msk.f32.mxu0 %vm2030_vm7, %v1987_v45  ;;  %vm1862_vm10 = vcmp.gt.f32.partialorder %v1684_v42, 0.0 }
 0x212   : > { %vm1861_vm11 = vcmp.gt.f32.partialorder %v1679_v44, 0.0  ;;  %v1925_v48 = vmul.f32 0.1, %v1679_v44  ;;  %v4881_v49 = vpop.f32.mrb[36].mxu1  ;;  %4978 = vmatmul.mubr.msk.f32.gmra.mrb[96].mxu0 %vm2030_vm7, %v1988_v47 }
 0x213   : > { %v1694_v50 = vadd.f32 %v4881_v49, %v5796_v30  ;;  %v1688_v51 = vpop.f32.mrb[37].mxu1  ;;  %v1990_v55 = vsel %vm1862_vm10, %v1684_v42, %v1926_v46 }
 0x214   : > { %v1689_v52 = vadd.f32 %v5796_v30, %v1688_v51  ;;  %v1989_v53 = vsel %vm1861_vm11, %v1679_v44, %v1925_v48 }
 0x215   : > { %v1928_v54 = vmul.f32 0.1, %v1694_v50  ;;  %4980 = vmatprep.mubr.msk.f32.mxu0 %vm2030_vm7, %v1989_v53  ;;  %vm1864_vm12 = vcmp.gt.f32.partialorder %v1694_v50, 0.0 }
 0x216   : > { %vm1863_vm13 = vcmp.gt.f32.partialorder %v1689_v52, 0.0  ;;  %v1927_v56 = vmul.f32 0.1, %v1689_v52  ;;  %v4884_v57 = vpop.f32.mrb[38].mxu1  ;;  %4981 = vmatmul.mubr.msk.f32.gmra.mrb[98].mxu0 %vm2030_vm7, %v1990_v55 }
 0x217   : > { %v1704_v58 = vadd.f32 %v4884_v57, %v5796_v30  ;;  %v1698_v59 = vpop.f32.mrb[39].mxu1  ;;  %v1992_v63 = vsel %vm1864_vm12, %v1694_v50, %v1928_v54 }
 0x218   : > { %v1699_v60 = vadd.f32 %v5796_v30, %v1698_v59  ;;  %v1991_v61 = vsel %vm1863_vm13, %v1689_v52, %v1927_v56 }
 0x219   : > { %v1930_v62 = vmul.f32 0.1, %v1704_v58  ;;  %4983 = vmatprep.mubr.msk.f32.mxu0 %vm2030_vm7, %v1991_v61  ;;  %vm1866_vm14 = vcmp.gt.f32.partialorder %v1704_v58, 0.0 }
 0x21a   : > { %vm1865_vm15 = vcmp.gt.f32.partialorder %v1699_v60, 0.0  ;;  %v1929_v0 = vmul.f32 0.1, %v1699_v60  ;;  %v4887_v1 = vpop.f32.mrb[40].mxu1  ;;  %4984 = vmatmul.mubr.msk.f32.gmra.mrb[100].mxu0 %vm2030_vm7, %v1992_v63 }
 0x21b   : > { %v1714_v2 = vadd.f32 %v4887_v1, %v5796_v30  ;;  %v1708_v3 = vpop.f32.mrb[41].mxu1  ;;  %v1994_v7 = vsel %vm1866_vm14, %v1704_v58, %v1930_v62 }
 0x21c   : > { %v1709_v4 = vadd.f32 %v5796_v30, %v1708_v3  ;;  %v1993_v5 = vsel %vm1865_vm15, %v1699_v60, %v1929_v0 }
 0x21d   : > { %v1932_v6 = vmul.f32 0.1, %v1714_v2  ;;  %4986 = vmatprep.mubr.msk.f32.mxu0 %vm2030_vm7, %v1993_v5  ;;  %vm1868_vm0 = vcmp.gt.f32.partialorder %v1714_v2, 0.0 }
 0x21e   : > { %vm1867_vm1 = vcmp.gt.f32.partialorder %v1709_v4, 0.0  ;;  %v1931_v8 = vmul.f32 0.1, %v1709_v4  ;;  %v4890_v9 = vpop.f32.mrb[42].mxu1  ;;  %4987 = vmatmul.mubr.msk.f32.gmra.mrb[102].mxu0 %vm2030_vm7, %v1994_v7 }
 0x21f   : > { %v1724_v10 = vadd.f32 %v4890_v9, %v5796_v30  ;;  %v1718_v11 = vpop.f32.mrb[43].mxu1  ;;  %v1996_v15 = vsel %vm1868_vm0, %v1714_v2, %v1932_v6 }
 0x220   : > { %v1719_v12 = vadd.f32 %v5796_v30, %v1718_v11  ;;  %v1995_v13 = vsel %vm1867_vm1, %v1709_v4, %v1931_v8 }
 0x221   : > { %v1934_v14 = vmul.f32 0.1, %v1724_v10  ;;  %4989 = vmatprep.mubr.msk.f32.mxu0 %vm2030_vm7, %v1995_v13  ;;  %vm1870_vm3 = vcmp.gt.f32.partialorder %v1724_v10, 0.0 }
 0x222   : > { %vm1869_vm4 = vcmp.gt.f32.partialorder %v1719_v12, 0.0  ;;  %v1933_v16 = vmul.f32 0.1, %v1719_v12  ;;  %v4893_v17 = vpop.f32.mrb[44].mxu1  ;;  %4990 = vmatmul.mubr.msk.f32.gmra.mrb[104].mxu0 %vm2030_vm7, %v1996_v15 }
 0x223   : > { %v1734_v18 = vadd.f32 %v4893_v17, %v5796_v30  ;;  %v1728_v20 = vpop.f32.mrb[45].mxu1  ;;  %v1998_v24 = vsel %vm1870_vm3, %v1724_v10, %v1934_v14 }
 0x224   : > { %v1729_v21 = vadd.f32 %v5796_v30, %v1728_v20  ;;  %v1997_v22 = vsel %vm1869_vm4, %v1719_v12, %v1933_v16 }
 0x225   : > { %v1936_v23 = vmul.f32 0.1, %v1734_v18  ;;  %4992 = vmatprep.mubr.msk.f32.mxu0 %vm2030_vm7, %v1997_v22  ;;  %vm1872_vm5 = vcmp.gt.f32.partialorder %v1734_v18, 0.0 }
 0x226   : > { %vm1871_vm6 = vcmp.gt.f32.partialorder %v1729_v21, 0.0  ;;  %v1935_v25 = vmul.f32 0.1, %v1729_v21  ;;  %v4896_v26 = vpop.f32.mrb[46].mxu1  ;;  %4993 = vmatmul.mubr.msk.f32.gmra.mrb[106].mxu0 %vm2030_vm7, %v1998_v24 }
 0x227   : > { %v1744_v27 = vadd.f32 %v4896_v26, %v5796_v30  ;;  %v1738_v28 = vpop.f32.mrb[47].mxu1  ;;  %v2000_v32 = vsel %vm1872_vm5, %v1734_v18, %v1936_v23 }
 0x228   : > { %v1739_v29 = vadd.f32 %v5796_v30, %v1738_v28  ;;  %v1999_v19 = vsel %vm1871_vm6, %v1729_v21, %v1935_v25 }
 0x229   : > { %v1938_v31 = vmul.f32 0.1, %v1744_v27  ;;  %4995 = vmatprep.mubr.msk.f32.mxu0 %vm2030_vm7, %v1999_v19  ;;  %vm1874_vm8 = vcmp.gt.f32.partialorder %v1744_v27, 0.0 }
 0x22a   : > { %vm1873_vm2 = vcmp.gt.f32.partialorder %v1739_v29, 0.0  ;;  %v1937_v33 = vmul.f32 0.1, %v1739_v29  ;;  %v4899_v34 = vpop.f32.mrb[48].mxu1  ;;  %4996 = vmatmul.mubr.msk.f32.gmra.mrb[108].mxu0 %vm2030_vm7, %v2000_v32 }
 0x22b   : > { %v1754_v35 = vadd.f32 %v4899_v34, %v5796_v30  ;;  %v1748_v36 = vpop.f32.mrb[49].mxu1  ;;  %v2002_v40 = vsel %vm1874_vm8, %v1744_v27, %v1938_v31 }
 0x22c   : > { %v1749_v37 = vadd.f32 %v5796_v30, %v1748_v36  ;;  %v2001_v38 = vsel %vm1873_vm2, %v1739_v29, %v1937_v33 }
 0x22d   : > { %v1940_v39 = vmul.f32 0.1, %v1754_v35  ;;  %4998 = vmatprep.mubr.msk.f32.mxu0 %vm2030_vm7, %v2001_v38  ;;  %vm1876_vm9 = vcmp.gt.f32.partialorder %v1754_v35, 0.0 }
 0x22e   : > { %vm1875_vm10 = vcmp.gt.f32.partialorder %v1749_v37, 0.0  ;;  %v1939_v41 = vmul.f32 0.1, %v1749_v37  ;;  %v4902_v42 = vpop.f32.mrb[50].mxu1  ;;  %4999 = vmatmul.mubr.msk.f32.gmra.mrb[110].mxu0 %vm2030_vm7, %v2002_v40 }
 0x22f   : > { %v1764_v43 = vadd.f32 %v4902_v42, %v5796_v30  ;;  %v1758_v44 = vpop.f32.mrb[51].mxu1  ;;  %v2004_v48 = vsel %vm1876_vm9, %v1754_v35, %v1940_v39 }
 0x230   : > { %v1759_v45 = vadd.f32 %v5796_v30, %v1758_v44  ;;  %v2003_v46 = vsel %vm1875_vm10, %v1749_v37, %v1939_v41  ;;  %v5935_v37 = vld [vmem:[%s6435_s6] ss:$0 sm:$0xff] }
 0x231   : > { %v1942_v47 = vmul.f32 0.1, %v1764_v43  ;;  %5001 = vmatprep.mubr.msk.f32.mxu0 %vm2030_vm7, %v2003_v46  ;;  %vm1878_vm11 = vcmp.gt.f32.partialorder %v1764_v43, 0.0 }
 0x232   : > { %vm1877_vm12 = vcmp.gt.f32.partialorder %v1759_v45, 0.0  ;;  %v1941_v49 = vmul.f32 0.1, %v1759_v45  ;;  %5002 = vmatmul.mubr.msk.f32.gmra.mrb[112].mxu0 %vm2030_vm7, %v2004_v48  ;;  %v4905_v50 = vpop.f32.mrb[52].mxu1 }
 0x233   : > { %v1774_v51 = vadd.f32 %v4905_v50, %v5796_v30  ;;  %v1768_v52 = vpop.f32.mrb[53].mxu1  ;;  %v2006_v55 = vsel %vm1878_vm11, %v1764_v43, %v1942_v47 }
 0x234   : > { %v2005_v53 = vsel %vm1877_vm12, %v1759_v45, %v1941_v49  ;;  %v1769_v54 = vadd.f32 %v5796_v30, %v1768_v52  ;;  %vm2809_vm12 = vcmask 130048  }
 0x235   : > { %5004 = vmatprep.mubr.msk.f32.mxu0 %vm2030_vm7, %v2005_v53  ;;  %vm1880_vm13 = vcmp.gt.f32.partialorder %v1774_v51, 0.0  ;;  %v1944_v56 = vmul.f32 0.1, %v1774_v51 }
 0x236   : > { %5005 = vmatmul.mubr.msk.f32.gmra.mrb[114].mxu0 %vm2030_vm7, %v2006_v55  ;;  %vm1879_vm14 = vcmp.gt.f32.partialorder %v1769_v54, 0.0  ;;  %v1943_v57 = vmul.f32 0.1, %v1769_v54  ;;  %v4908_v58 = vpop.f32.mrb[54].mxu1 }
 0x237   : > { %v1784_v59 = vadd.f32 %v4908_v58, %v5796_v30  ;;  %v2008_v60 = vsel %vm1880_vm13, %v1774_v51, %v1944_v56  ;;  %v1778_v61 = vpop.f32.mrb[55].mxu1 }
 0x238   : > { %v2007_v62 = vsel %vm1879_vm14, %v1769_v54, %v1943_v57  ;;  %v1779_v63 = vadd.f32 %v5796_v30, %v1778_v61 }
 0x239   : > { %5007 = vmatprep.mubr.msk.f32.mxu0 %vm2030_vm7, %v2007_v62  ;;  %vm1882_vm15 = vcmp.gt.f32.partialorder %v1784_v59, 0.0  ;;  %v1946_v0 = vmul.f32 0.1, %v1784_v59 }
 0x23a   : > { %5008 = vmatmul.mubr.msk.f32.gmra.mrb[116].mxu0 %vm2030_vm7, %v2008_v60  ;;  %vm1881_vm0 = vcmp.gt.f32.partialorder %v1779_v63, 0.0  ;;  %v1945_v1 = vmul.f32 0.1, %v1779_v63  ;;  %v4911_v2 = vpop.f32.mrb[56].mxu1 }
 0x23b   : > { %v1794_v3 = vadd.f32 %v4911_v2, %v5796_v30  ;;  %v2010_v4 = vsel %vm1882_vm15, %v1784_v59, %v1946_v0  ;;  %v1788_v5 = vpop.f32.mrb[57].mxu1 }
 0x23c   : > { %v2009_v6 = vsel %vm1881_vm0, %v1779_v63, %v1945_v1  ;;  %v1789_v7 = vadd.f32 %v5796_v30, %v1788_v5 }
 0x23d   : > { %5010 = vmatprep.mubr.msk.f32.mxu0 %vm2030_vm7, %v2009_v6  ;;  %vm1884_vm1 = vcmp.gt.f32.partialorder %v1794_v3, 0.0  ;;  %v1948_v8 = vmul.f32 0.1, %v1794_v3 }
 0x23e   : > { %5011 = vmatmul.mubr.msk.f32.gmra.mrb[118].mxu0 %vm2030_vm7, %v2010_v4  ;;  %vm1883_vm3 = vcmp.gt.f32.partialorder %v1789_v7, 0.0  ;;  %v1947_v9 = vmul.f32 0.1, %v1789_v7  ;;  %v4914_v10 = vpop.f32.mrb[58].mxu1 }
 0x23f   : > { %v1804_v11 = vadd.f32 %v4914_v10, %v5796_v30  ;;  %v2012_v12 = vsel %vm1884_vm1, %v1794_v3, %v1948_v8  ;;  %v1798_v13 = vpop.f32.mrb[59].mxu1 }
 0x240   : > { %v2011_v14 = vsel %vm1883_vm3, %v1789_v7, %v1947_v9  ;;  %v1799_v15 = vadd.f32 %v5796_v30, %v1798_v13 }
 0x241   : > { %5013 = vmatprep.mubr.msk.f32.mxu0 %vm2030_vm7, %v2011_v14  ;;  %vm1886_vm4 = vcmp.gt.f32.partialorder %v1804_v11, 0.0  ;;  %v1950_v16 = vmul.f32 0.1, %v1804_v11 }
 0x242   : > { %5014 = vmatmul.mubr.msk.f32.gmra.mrb[120].mxu0 %vm2030_vm7, %v2012_v12  ;;  %vm1885_vm5 = vcmp.gt.f32.partialorder %v1799_v15, 0.0  ;;  %v1949_v17 = vmul.f32 0.1, %v1799_v15  ;;  %v4917_v18 = vpop.f32.mrb[60].mxu1 }
 0x243   : > { %v1814_v20 = vadd.f32 %v4917_v18, %v5796_v30  ;;  %v2014_v21 = vsel %vm1886_vm4, %v1804_v11, %v1950_v16  ;;  %v1808_v22 = vpop.f32.mrb[61].mxu1 }
 0x244   : > { %v2013_v23 = vsel %vm1885_vm5, %v1799_v15, %v1949_v17  ;;  %v1809_v24 = vadd.f32 %v5796_v30, %v1808_v22 }
 0x245   : > { %5016 = vmatprep.mubr.msk.f32.mxu0 %vm2030_vm7, %v2013_v23  ;;  %vm1888_vm6 = vcmp.gt.f32.partialorder %v1814_v20, 0.0  ;;  %v1952_v25 = vmul.f32 0.1, %v1814_v20 }
 0x246   : > { %5017 = vmatmul.mubr.msk.f32.gmra.mrb[122].mxu0 %vm2030_vm7, %v2014_v21  ;;  %vm1887_vm8 = vcmp.gt.f32.partialorder %v1809_v24, 0.0  ;;  %v1951_v26 = vmul.f32 0.1, %v1809_v24  ;;  %v4920_v27 = vpop.f32.mrb[62].mxu1 }
 0x247   : > { %v1824_v28 = vadd.f32 %v4920_v27, %v5796_v30  ;;  %v2016_v29 = vsel %vm1888_vm6, %v1814_v20, %v1952_v25  ;;  %v1818_v19 = vpop.f32.mrb[63].mxu1 }
 0x248   : > { %v2015_v31 = vsel %vm1887_vm8, %v1809_v24, %v1951_v26  ;;  %v1819_v32 = vadd.f32 %v5796_v30, %v1818_v19 }
 0x249   : > { %5019 = vmatprep.mubr.msk.f32.mxu0 %vm2030_vm7, %v2015_v31  ;;  %vm1890_vm2 = vcmp.gt.f32.partialorder %v1824_v28, 0.0  ;;  %v1954_v33 = vmul.f32 0.1, %v1824_v28 }
 0x24a   : > { %5020 = vmatmul.mubr.msk.f32.gmra.mrb[124].mxu0 %vm2030_vm7, %v2016_v29  ;;  %vm1889_vm9 = vcmp.gt.f32.partialorder %v1819_v32, 0.0  ;;  %v1953_v34 = vmul.f32 0.1, %v1819_v32 }
 0x24b   : > { %v2018_v35 = vsel %vm1890_vm2, %v1824_v28, %v1954_v33 }
 0x24c   : > { %v2017_v36 = vsel %vm1889_vm9, %v1819_v32, %v1953_v34 }
 0x24d   : > { %5022 = vmatprep.mubr.msk.f32.mxu0 %vm2030_vm7, %v2017_v36 }
 0x24e   : > { %5023 = vmatmul.mubr.msk.f32.gmra.mrb[126].mxu0 %vm2030_vm7, %v2018_v35 }
 0x2a5   : > { %v4931_v30 = vpop.f32.mrb[64].mxu0 }
 0x2a6   : > { %v2295_v38 = vadd.f32 %v4931_v30, %v5935_v37  ;;  %v2289_v39 = vpop.f32.mrb[65].mxu0 }
 0x2a7   : > { %v2290_v40 = vadd.f32 %v5935_v37, %v2289_v39 }
 0x2a8   : > { %v2673_v41 = vmul.f32 0.1, %v2295_v38  ;;  %vm2609_vm10 = vcmp.gt.f32.partialorder %v2295_v38, 0.0 }
 0x2a9   : > { %vm2608_vm11 = vcmp.gt.f32.partialorder %v2290_v40, 0.0  ;;  %v2672_v42 = vmul.f32 0.1, %v2290_v40  ;;  %v4934_v43 = vpop.f32.mrb[66].mxu0 }
 0x2aa   : > { %v2305_v44 = vadd.f32 %v4934_v43, %v5935_v37  ;;  %v2299_v45 = vpop.f32.mrb[67].mxu0  ;;  %v2737_v48 = vsel %vm2609_vm10, %v2295_v38, %v2673_v41 }
 0x2ab   : > { %v2300_v46 = vadd.f32 %v5935_v37, %v2299_v45  ;;  %v2736_v47 = vsel %vm2608_vm11, %v2290_v40, %v2672_v42 }
 0x2ac   : > { %v2675_v49 = vmul.f32 0.1, %v2305_v44  ;;  %5029 = vmatprep.mubr.msk.f32.mxu1 %vm2809_vm12, %v2736_v47  ;;  %vm2611_vm7 = vcmp.gt.f32.partialorder %v2305_v44, 0.0 }
 0x2ad   : > { %vm2610_vm13 = vcmp.gt.f32.partialorder %v2300_v46, 0.0  ;;  %v2674_v50 = vmul.f32 0.1, %v2300_v46  ;;  %v4937_v51 = vpop.f32.mrb[68].mxu0  ;;  %5030 = vmatmul.mubr.msk.f32.vlgmr.msra.gmra.mrb[64].mxu1 %vm2809_vm12, %v2737_v48 }
 0x2ae   : > { %v2315_v52 = vadd.f32 %v4937_v51, %v5935_v37  ;;  %v2309_v53 = vpop.f32.mrb[69].mxu0  ;;  %v2739_v57 = vsel %vm2611_vm7, %v2305_v44, %v2675_v49 }
 0x2af   : > { %v2310_v54 = vadd.f32 %v5935_v37, %v2309_v53  ;;  %v2738_v55 = vsel %vm2610_vm13, %v2300_v46, %v2674_v50 }
 0x2b0   : > { %v2677_v56 = vmul.f32 0.1, %v2315_v52  ;;  %5032 = vmatprep.mubr.msk.f32.mxu1 %vm2809_vm12, %v2738_v55  ;;  %vm2613_vm14 = vcmp.gt.f32.partialorder %v2315_v52, 0.0 }
 0x2b1   : > { %vm2612_vm15 = vcmp.gt.f32.partialorder %v2310_v54, 0.0  ;;  %v2676_v58 = vmul.f32 0.1, %v2310_v54  ;;  %v4940_v59 = vpop.f32.mrb[70].mxu0  ;;  %5033 = vmatmul.mubr.msk.f32.gmra.mrb[66].mxu1 %vm2809_vm12, %v2739_v57 }
 0x2b2   : > { %v2325_v60 = vadd.f32 %v4940_v59, %v5935_v37  ;;  %v2319_v61 = vpop.f32.mrb[71].mxu0  ;;  %v2741_v1 = vsel %vm2613_vm14, %v2315_v52, %v2677_v56 }
 0x2b3   : > { %v2320_v62 = vadd.f32 %v5935_v37, %v2319_v61  ;;  %v2740_v63 = vsel %vm2612_vm15, %v2310_v54, %v2676_v58 }
 0x2b4   : > { %v2679_v0 = vmul.f32 0.1, %v2325_v60  ;;  %5035 = vmatprep.mubr.msk.f32.mxu1 %vm2809_vm12, %v2740_v63  ;;  %vm2615_vm0 = vcmp.gt.f32.partialorder %v2325_v60, 0.0 }
 0x2b5   : > { %vm2614_vm1 = vcmp.gt.f32.partialorder %v2320_v62, 0.0  ;;  %v2678_v2 = vmul.f32 0.1, %v2320_v62  ;;  %v4943_v3 = vpop.f32.mrb[72].mxu0  ;;  %5036 = vmatmul.mubr.msk.f32.gmra.mrb[68].mxu1 %vm2809_vm12, %v2741_v1 }
 0x2b6   : > { %v2335_v4 = vadd.f32 %v4943_v3, %v5935_v37  ;;  %v2329_v5 = vpop.f32.mrb[73].mxu0  ;;  %v2743_v9 = vsel %vm2615_vm0, %v2325_v60, %v2679_v0 }
 0x2b7   : > { %v2330_v6 = vadd.f32 %v5935_v37, %v2329_v5  ;;  %v2742_v7 = vsel %vm2614_vm1, %v2320_v62, %v2678_v2 }
 0x2b8   : > { %v2681_v8 = vmul.f32 0.1, %v2335_v4  ;;  %5038 = vmatprep.mubr.msk.f32.mxu1 %vm2809_vm12, %v2742_v7  ;;  %vm2617_vm3 = vcmp.gt.f32.partialorder %v2335_v4, 0.0 }
 0x2b9   : > { %vm2616_vm4 = vcmp.gt.f32.partialorder %v2330_v6, 0.0  ;;  %v2680_v10 = vmul.f32 0.1, %v2330_v6  ;;  %v4946_v11 = vpop.f32.mrb[74].mxu0  ;;  %5039 = vmatmul.mubr.msk.f32.gmra.mrb[70].mxu1 %vm2809_vm12, %v2743_v9 }
 0x2ba   : > { %v2345_v12 = vadd.f32 %v4946_v11, %v5935_v37  ;;  %v2339_v13 = vpop.f32.mrb[75].mxu0  ;;  %v2745_v17 = vsel %vm2617_vm3, %v2335_v4, %v2681_v8 }
 0x2bb   : > { %v2340_v14 = vadd.f32 %v5935_v37, %v2339_v13  ;;  %v2744_v15 = vsel %vm2616_vm4, %v2330_v6, %v2680_v10 }
 0x2bc   : > { %v2683_v16 = vmul.f32 0.1, %v2345_v12  ;;  %5041 = vmatprep.mubr.msk.f32.mxu1 %vm2809_vm12, %v2744_v15  ;;  %vm2619_vm5 = vcmp.gt.f32.partialorder %v2345_v12, 0.0 }
 0x2bd   : > { %vm2618_vm6 = vcmp.gt.f32.partialorder %v2340_v14, 0.0  ;;  %v2682_v18 = vmul.f32 0.1, %v2340_v14  ;;  %v4949_v20 = vpop.f32.mrb[76].mxu0  ;;  %5042 = vmatmul.mubr.msk.f32.gmra.mrb[72].mxu1 %vm2809_vm12, %v2745_v17 }
 0x2be   : > { %v2355_v21 = vadd.f32 %v4949_v20, %v5935_v37  ;;  %v2349_v22 = vpop.f32.mrb[77].mxu0  ;;  %v2747_v26 = vsel %vm2619_vm5, %v2345_v12, %v2683_v16 }
 0x2bf   : > { %v2350_v23 = vadd.f32 %v5935_v37, %v2349_v22  ;;  %v2746_v24 = vsel %vm2618_vm6, %v2340_v14, %v2682_v18 }
 0x2c0   : > { %v2685_v25 = vmul.f32 0.1, %v2355_v21  ;;  %5044 = vmatprep.mubr.msk.f32.mxu1 %vm2809_vm12, %v2746_v24  ;;  %vm2621_vm8 = vcmp.gt.f32.partialorder %v2355_v21, 0.0 }
 0x2c1   : > { %vm2620_vm2 = vcmp.gt.f32.partialorder %v2350_v23, 0.0  ;;  %v2684_v27 = vmul.f32 0.1, %v2350_v23  ;;  %v4952_v28 = vpop.f32.mrb[78].mxu0  ;;  %5045 = vmatmul.mubr.msk.f32.gmra.mrb[74].mxu1 %vm2809_vm12, %v2747_v26 }
 0x2c2   : > { %v2365_v29 = vadd.f32 %v4952_v28, %v5935_v37  ;;  %v2359_v19 = vpop.f32.mrb[79].mxu0  ;;  %v2749_v34 = vsel %vm2621_vm8, %v2355_v21, %v2685_v25 }
 0x2c3   : > { %v2360_v31 = vadd.f32 %v5935_v37, %v2359_v19  ;;  %v2748_v32 = vsel %vm2620_vm2, %v2350_v23, %v2684_v27 }
 0x2c4   : > { %v2687_v33 = vmul.f32 0.1, %v2365_v29  ;;  %5047 = vmatprep.mubr.msk.f32.mxu1 %vm2809_vm12, %v2748_v32  ;;  %vm2623_vm9 = vcmp.gt.f32.partialorder %v2365_v29, 0.0 }
 0x2c5   : > { %vm2622_vm10 = vcmp.gt.f32.partialorder %v2360_v31, 0.0  ;;  %v2686_v35 = vmul.f32 0.1, %v2360_v31  ;;  %v4955_v36 = vpop.f32.mrb[80].mxu0  ;;  %5048 = vmatmul.mubr.msk.f32.gmra.mrb[76].mxu1 %vm2809_vm12, %v2749_v34 }
 0x2c6   : > { %v2375_v30 = vadd.f32 %v4955_v36, %v5935_v37  ;;  %v2369_v38 = vpop.f32.mrb[81].mxu0  ;;  %v2751_v42 = vsel %vm2623_vm9, %v2365_v29, %v2687_v33 }
 0x2c7   : > { %v2370_v39 = vadd.f32 %v5935_v37, %v2369_v38  ;;  %v2750_v40 = vsel %vm2622_vm10, %v2360_v31, %v2686_v35 }
 0x2c8   : > { %v2689_v41 = vmul.f32 0.1, %v2375_v30  ;;  %5050 = vmatprep.mubr.msk.f32.mxu1 %vm2809_vm12, %v2750_v40  ;;  %vm2625_vm11 = vcmp.gt.f32.partialorder %v2375_v30, 0.0 }
 0x2c9   : > { %vm2624_vm7 = vcmp.gt.f32.partialorder %v2370_v39, 0.0  ;;  %v2688_v43 = vmul.f32 0.1, %v2370_v39  ;;  %v4958_v44 = vpop.f32.mrb[82].mxu0  ;;  %5051 = vmatmul.mubr.msk.f32.gmra.mrb[78].mxu1 %vm2809_vm12, %v2751_v42 }
 0x2ca   : > { %v2385_v45 = vadd.f32 %v4958_v44, %v5935_v37  ;;  %v2379_v46 = vpop.f32.mrb[83].mxu0  ;;  %v2753_v50 = vsel %vm2625_vm11, %v2375_v30, %v2689_v41 }
 0x2cb   : > { %v2380_v47 = vadd.f32 %v5935_v37, %v2379_v46  ;;  %v2752_v48 = vsel %vm2624_vm7, %v2370_v39, %v2688_v43 }
 0x2cc   : > { %v2691_v49 = vmul.f32 0.1, %v2385_v45  ;;  %5053 = vmatprep.mubr.msk.f32.mxu1 %vm2809_vm12, %v2752_v48  ;;  %vm2627_vm13 = vcmp.gt.f32.partialorder %v2385_v45, 0.0 }
 0x2cd   : > { %vm2626_vm14 = vcmp.gt.f32.partialorder %v2380_v47, 0.0  ;;  %v2690_v51 = vmul.f32 0.1, %v2380_v47  ;;  %v4961_v52 = vpop.f32.mrb[84].mxu0  ;;  %5054 = vmatmul.mubr.msk.f32.gmra.mrb[80].mxu1 %vm2809_vm12, %v2753_v50 }
 0x2ce   : > { %v2395_v53 = vadd.f32 %v4961_v52, %v5935_v37  ;;  %v2389_v54 = vpop.f32.mrb[85].mxu0  ;;  %v2755_v58 = vsel %vm2627_vm13, %v2385_v45, %v2691_v49 }
 0x2cf   : > { %v2390_v55 = vadd.f32 %v5935_v37, %v2389_v54  ;;  %v2754_v56 = vsel %vm2626_vm14, %v2380_v47, %v2690_v51 }
 0x2d0   : > { %v2693_v57 = vmul.f32 0.1, %v2395_v53  ;;  %5056 = vmatprep.mubr.msk.f32.mxu1 %vm2809_vm12, %v2754_v56  ;;  %vm2629_vm15 = vcmp.gt.f32.partialorder %v2395_v53, 0.0 }
 0x2d1   : > { %vm2628_vm0 = vcmp.gt.f32.partialorder %v2390_v55, 0.0  ;;  %v2692_v59 = vmul.f32 0.1, %v2390_v55  ;;  %v4964_v60 = vpop.f32.mrb[86].mxu0  ;;  %5057 = vmatmul.mubr.msk.f32.gmra.mrb[82].mxu1 %vm2809_vm12, %v2755_v58 }
 0x2d2   : > { %v2405_v61 = vadd.f32 %v4964_v60, %v5935_v37  ;;  %v2399_v62 = vpop.f32.mrb[87].mxu0  ;;  %v2757_v2 = vsel %vm2629_vm15, %v2395_v53, %v2693_v57 }
 0x2d3   : > { %v2400_v63 = vadd.f32 %v5935_v37, %v2399_v62  ;;  %v2756_v0 = vsel %vm2628_vm0, %v2390_v55, %v2692_v59 }
 0x2d4   : > { %v2695_v1 = vmul.f32 0.1, %v2405_v61  ;;  %5059 = vmatprep.mubr.msk.f32.mxu1 %vm2809_vm12, %v2756_v0  ;;  %vm2631_vm1 = vcmp.gt.f32.partialorder %v2405_v61, 0.0 }
 0x2d5   : > { %vm2630_vm3 = vcmp.gt.f32.partialorder %v2400_v63, 0.0  ;;  %v2694_v3 = vmul.f32 0.1, %v2400_v63  ;;  %v4967_v4 = vpop.f32.mrb[88].mxu0  ;;  %5060 = vmatmul.mubr.msk.f32.gmra.mrb[84].mxu1 %vm2809_vm12, %v2757_v2 }
 0x2d6   : > { %v2415_v5 = vadd.f32 %v4967_v4, %v5935_v37  ;;  %v2409_v6 = vpop.f32.mrb[89].mxu0  ;;  %v2759_v10 = vsel %vm2631_vm1, %v2405_v61, %v2695_v1 }
 0x2d7   : > { %v2410_v7 = vadd.f32 %v5935_v37, %v2409_v6  ;;  %v2758_v8 = vsel %vm2630_vm3, %v2400_v63, %v2694_v3 }
 0x2d8   : > { %v2697_v9 = vmul.f32 0.1, %v2415_v5  ;;  %5062 = vmatprep.mubr.msk.f32.mxu1 %vm2809_vm12, %v2758_v8  ;;  %vm2633_vm4 = vcmp.gt.f32.partialorder %v2415_v5, 0.0 }
 0x2d9   : > { %vm2632_vm5 = vcmp.gt.f32.partialorder %v2410_v7, 0.0  ;;  %v2696_v11 = vmul.f32 0.1, %v2410_v7  ;;  %v4970_v12 = vpop.f32.mrb[90].mxu0  ;;  %5063 = vmatmul.mubr.msk.f32.gmra.mrb[86].mxu1 %vm2809_vm12, %v2759_v10 }
 0x2da   : > { %v2425_v13 = vadd.f32 %v4970_v12, %v5935_v37  ;;  %v2419_v14 = vpop.f32.mrb[91].mxu0  ;;  %v2761_v18 = vsel %vm2633_vm4, %v2415_v5, %v2697_v9 }
 0x2db   : > { %v2420_v15 = vadd.f32 %v5935_v37, %v2419_v14  ;;  %v2760_v16 = vsel %vm2632_vm5, %v2410_v7, %v2696_v11 }
 0x2dc   : > { %v2699_v17 = vmul.f32 0.1, %v2425_v13  ;;  %5065 = vmatprep.mubr.msk.f32.mxu1 %vm2809_vm12, %v2760_v16  ;;  %vm2635_vm6 = vcmp.gt.f32.partialorder %v2425_v13, 0.0 }
 0x2dd   : > { %vm2634_vm8 = vcmp.gt.f32.partialorder %v2420_v15, 0.0  ;;  %v2698_v20 = vmul.f32 0.1, %v2420_v15  ;;  %v4973_v21 = vpop.f32.mrb[92].mxu0  ;;  %5066 = vmatmul.mubr.msk.f32.gmra.mrb[88].mxu1 %vm2809_vm12, %v2761_v18 }
 0x2de   : > { %v2435_v22 = vadd.f32 %v4973_v21, %v5935_v37  ;;  %v2429_v23 = vpop.f32.mrb[93].mxu0  ;;  %v2763_v27 = vsel %vm2635_vm6, %v2425_v13, %v2699_v17 }
 0x2df   : > { %v2430_v24 = vadd.f32 %v5935_v37, %v2429_v23  ;;  %v2762_v25 = vsel %vm2634_vm8, %v2420_v15, %v2698_v20 }
 0x2e0   : > { %v2701_v26 = vmul.f32 0.1, %v2435_v22  ;;  %5068 = vmatprep.mubr.msk.f32.mxu1 %vm2809_vm12, %v2762_v25  ;;  %vm2637_vm2 = vcmp.gt.f32.partialorder %v2435_v22, 0.0 }
 0x2e1   : > { %vm2636_vm9 = vcmp.gt.f32.partialorder %v2430_v24, 0.0  ;;  %v2700_v28 = vmul.f32 0.1, %v2430_v24  ;;  %v4976_v29 = vpop.f32.mrb[94].mxu0  ;;  %5069 = vmatmul.mubr.msk.f32.gmra.mrb[90].mxu1 %vm2809_vm12, %v2763_v27 }
 0x2e2   : > { %v2445_v19 = vadd.f32 %v4976_v29, %v5935_v37  ;;  %v2439_v31 = vpop.f32.mrb[95].mxu0  ;;  %v2765_v35 = vsel %vm2637_vm2, %v2435_v22, %v2701_v26 }
 0x2e3   : > { %v2440_v32 = vadd.f32 %v5935_v37, %v2439_v31  ;;  %v2764_v33 = vsel %vm2636_vm9, %v2430_v24, %v2700_v28 }
 0x2e4   : > { %v2703_v34 = vmul.f32 0.1, %v2445_v19  ;;  %5071 = vmatprep.mubr.msk.f32.mxu1 %vm2809_vm12, %v2764_v33  ;;  %vm2639_vm10 = vcmp.gt.f32.partialorder %v2445_v19, 0.0 }
 0x2e5   : > { %vm2638_vm11 = vcmp.gt.f32.partialorder %v2440_v32, 0.0  ;;  %v2702_v36 = vmul.f32 0.1, %v2440_v32  ;;  %v4979_v30 = vpop.f32.mrb[96].mxu0  ;;  %5072 = vmatmul.mubr.msk.f32.gmra.mrb[92].mxu1 %vm2809_vm12, %v2765_v35 }
 0x2e6   : > { %v2455_v38 = vadd.f32 %v4979_v30, %v5935_v37  ;;  %v2449_v39 = vpop.f32.mrb[97].mxu0  ;;  %v2767_v43 = vsel %vm2639_vm10, %v2445_v19, %v2703_v34 }
 0x2e7   : > { %v2450_v40 = vadd.f32 %v5935_v37, %v2449_v39  ;;  %v2766_v41 = vsel %vm2638_vm11, %v2440_v32, %v2702_v36 }
 0x2e8   : > { %v2705_v42 = vmul.f32 0.1, %v2455_v38  ;;  %5074 = vmatprep.mubr.msk.f32.mxu1 %vm2809_vm12, %v2766_v41  ;;  %vm2641_vm7 = vcmp.gt.f32.partialorder %v2455_v38, 0.0 }
 0x2e9   : > { %vm2640_vm13 = vcmp.gt.f32.partialorder %v2450_v40, 0.0  ;;  %v2704_v44 = vmul.f32 0.1, %v2450_v40  ;;  %v4982_v45 = vpop.f32.mrb[98].mxu0  ;;  %5075 = vmatmul.mubr.msk.f32.gmra.mrb[94].mxu1 %vm2809_vm12, %v2767_v43 }
 0x2ea   : > { %v2465_v46 = vadd.f32 %v4982_v45, %v5935_v37  ;;  %v2459_v47 = vpop.f32.mrb[99].mxu0  ;;  %v2769_v51 = vsel %vm2641_vm7, %v2455_v38, %v2705_v42 }
 0x2eb   : > { %v2460_v48 = vadd.f32 %v5935_v37, %v2459_v47  ;;  %v2768_v49 = vsel %vm2640_vm13, %v2450_v40, %v2704_v44 }
 0x2ec   : > { %v2707_v50 = vmul.f32 0.1, %v2465_v46  ;;  %5077 = vmatprep.mubr.msk.f32.mxu1 %vm2809_vm12, %v2768_v49  ;;  %vm2643_vm14 = vcmp.gt.f32.partialorder %v2465_v46, 0.0 }
 0x2ed   : > { %vm2642_vm15 = vcmp.gt.f32.partialorder %v2460_v48, 0.0  ;;  %v2706_v52 = vmul.f32 0.1, %v2460_v48  ;;  %v4985_v53 = vpop.f32.mrb[100].mxu0  ;;  %5078 = vmatmul.mubr.msk.f32.gmra.mrb[96].mxu1 %vm2809_vm12, %v2769_v51 }
 0x2ee   : > { %v2475_v54 = vadd.f32 %v4985_v53, %v5935_v37  ;;  %v2469_v55 = vpop.f32.mrb[101].mxu0  ;;  %v2771_v59 = vsel %vm2643_vm14, %v2465_v46, %v2707_v50 }
 0x2ef   : > { %v2470_v56 = vadd.f32 %v5935_v37, %v2469_v55  ;;  %v2770_v57 = vsel %vm2642_vm15, %v2460_v48, %v2706_v52 }
 0x2f0   : > { %v2709_v58 = vmul.f32 0.1, %v2475_v54  ;;  %5080 = vmatprep.mubr.msk.f32.mxu1 %vm2809_vm12, %v2770_v57  ;;  %vm2645_vm0 = vcmp.gt.f32.partialorder %v2475_v54, 0.0 }
 0x2f1   : > { %vm2644_vm1 = vcmp.gt.f32.partialorder %v2470_v56, 0.0  ;;  %v2708_v60 = vmul.f32 0.1, %v2470_v56  ;;  %v4988_v61 = vpop.f32.mrb[102].mxu0  ;;  %5081 = vmatmul.mubr.msk.f32.gmra.mrb[98].mxu1 %vm2809_vm12, %v2771_v59 }
 0x2f2   : > { %v2485_v62 = vadd.f32 %v4988_v61, %v5935_v37  ;;  %v2479_v63 = vpop.f32.mrb[103].mxu0  ;;  %v2773_v3 = vsel %vm2645_vm0, %v2475_v54, %v2709_v58 }
 0x2f3   : > { %v2480_v0 = vadd.f32 %v5935_v37, %v2479_v63  ;;  %v2772_v1 = vsel %vm2644_vm1, %v2470_v56, %v2708_v60 }
 0x2f4   : > { %v2711_v2 = vmul.f32 0.1, %v2485_v62  ;;  %5083 = vmatprep.mubr.msk.f32.mxu1 %vm2809_vm12, %v2772_v1  ;;  %vm2647_vm3 = vcmp.gt.f32.partialorder %v2485_v62, 0.0 }
 0x2f5   : > { %vm2646_vm4 = vcmp.gt.f32.partialorder %v2480_v0, 0.0  ;;  %v2710_v4 = vmul.f32 0.1, %v2480_v0  ;;  %v4991_v5 = vpop.f32.mrb[104].mxu0  ;;  %5084 = vmatmul.mubr.msk.f32.gmra.mrb[100].mxu1 %vm2809_vm12, %v2773_v3 }
 0x2f6   : > { %v2495_v6 = vadd.f32 %v4991_v5, %v5935_v37  ;;  %v2489_v7 = vpop.f32.mrb[105].mxu0  ;;  %v2775_v11 = vsel %vm2647_vm3, %v2485_v62, %v2711_v2 }
 0x2f7   : > { %v2490_v8 = vadd.f32 %v5935_v37, %v2489_v7  ;;  %v2774_v9 = vsel %vm2646_vm4, %v2480_v0, %v2710_v4 }
 0x2f8   : > { %v2713_v10 = vmul.f32 0.1, %v2495_v6  ;;  %5086 = vmatprep.mubr.msk.f32.mxu1 %vm2809_vm12, %v2774_v9  ;;  %vm2649_vm5 = vcmp.gt.f32.partialorder %v2495_v6, 0.0 }
 0x2f9   : > { %vm2648_vm6 = vcmp.gt.f32.partialorder %v2490_v8, 0.0  ;;  %v2712_v12 = vmul.f32 0.1, %v2490_v8  ;;  %v4994_v13 = vpop.f32.mrb[106].mxu0  ;;  %5087 = vmatmul.mubr.msk.f32.gmra.mrb[102].mxu1 %vm2809_vm12, %v2775_v11 }
 0x2fa   : > { %v2505_v14 = vadd.f32 %v4994_v13, %v5935_v37  ;;  %v2499_v15 = vpop.f32.mrb[107].mxu0  ;;  %v2777_v20 = vsel %vm2649_vm5, %v2495_v6, %v2713_v10 }
 0x2fb   : > { %v2500_v16 = vadd.f32 %v5935_v37, %v2499_v15  ;;  %v2776_v17 = vsel %vm2648_vm6, %v2490_v8, %v2712_v12 }
 0x2fc   : > { %v2715_v18 = vmul.f32 0.1, %v2505_v14  ;;  %5089 = vmatprep.mubr.msk.f32.mxu1 %vm2809_vm12, %v2776_v17  ;;  %vm2651_vm8 = vcmp.gt.f32.partialorder %v2505_v14, 0.0 }
 0x2fd   : > { %vm2650_vm2 = vcmp.gt.f32.partialorder %v2500_v16, 0.0  ;;  %v2714_v21 = vmul.f32 0.1, %v2500_v16  ;;  %v4997_v22 = vpop.f32.mrb[108].mxu0  ;;  %5090 = vmatmul.mubr.msk.f32.gmra.mrb[104].mxu1 %vm2809_vm12, %v2777_v20 }
 0x2fe   : > { %v2515_v23 = vadd.f32 %v4997_v22, %v5935_v37  ;;  %v2509_v24 = vpop.f32.mrb[109].mxu0  ;;  %v2779_v28 = vsel %vm2651_vm8, %v2505_v14, %v2715_v18 }
 0x2ff   : > { %v2510_v25 = vadd.f32 %v5935_v37, %v2509_v24  ;;  %v2778_v26 = vsel %vm2650_vm2, %v2500_v16, %v2714_v21 }
 0x300   : > { %v2717_v27 = vmul.f32 0.1, %v2515_v23  ;;  %5092 = vmatprep.mubr.msk.f32.mxu1 %vm2809_vm12, %v2778_v26  ;;  %vm2653_vm9 = vcmp.gt.f32.partialorder %v2515_v23, 0.0 }
 0x301   : > { %vm2652_vm10 = vcmp.gt.f32.partialorder %v2510_v25, 0.0  ;;  %v2716_v29 = vmul.f32 0.1, %v2510_v25  ;;  %v5000_v19 = vpop.f32.mrb[110].mxu0  ;;  %5093 = vmatmul.mubr.msk.f32.gmra.mrb[106].mxu1 %vm2809_vm12, %v2779_v28 }
 0x302   : > { %v2525_v31 = vadd.f32 %v5000_v19, %v5935_v37  ;;  %v2519_v32 = vpop.f32.mrb[111].mxu0  ;;  %v2781_v36 = vsel %vm2653_vm9, %v2515_v23, %v2717_v27 }
 0x303   : > { %v2520_v33 = vadd.f32 %v5935_v37, %v2519_v32  ;;  %v2780_v34 = vsel %vm2652_vm10, %v2510_v25, %v2716_v29 }
 0x304   : > { %v2719_v35 = vmul.f32 0.1, %v2525_v31  ;;  %5095 = vmatprep.mubr.msk.f32.mxu1 %vm2809_vm12, %v2780_v34  ;;  %vm2655_vm11 = vcmp.gt.f32.partialorder %v2525_v31, 0.0 }
 0x305   : > { %vm2654_vm7 = vcmp.gt.f32.partialorder %v2520_v33, 0.0  ;;  %v2718_v30 = vmul.f32 0.1, %v2520_v33  ;;  %v5003_v38 = vpop.f32.mrb[112].mxu0  ;;  %5096 = vmatmul.mubr.msk.f32.gmra.mrb[108].mxu1 %vm2809_vm12, %v2781_v36 }
 0x306   : > { %v2535_v39 = vadd.f32 %v5003_v38, %v5935_v37  ;;  %v2529_v40 = vpop.f32.mrb[113].mxu0  ;;  %v2783_v44 = vsel %vm2655_vm11, %v2525_v31, %v2719_v35 }
 0x307   : > { %v2530_v41 = vadd.f32 %v5935_v37, %v2529_v40  ;;  %v2782_v42 = vsel %vm2654_vm7, %v2520_v33, %v2718_v30 }
 0x308   : > { %v2721_v43 = vmul.f32 0.1, %v2535_v39  ;;  %5098 = vmatprep.mubr.msk.f32.mxu1 %vm2809_vm12, %v2782_v42  ;;  %vm2657_vm13 = vcmp.gt.f32.partialorder %v2535_v39, 0.0 }
 0x309   : > { %vm2656_vm14 = vcmp.gt.f32.partialorder %v2530_v41, 0.0  ;;  %v2720_v45 = vmul.f32 0.1, %v2530_v41  ;;  %v5006_v46 = vpop.f32.mrb[114].mxu0  ;;  %5099 = vmatmul.mubr.msk.f32.gmra.mrb[110].mxu1 %vm2809_vm12, %v2783_v44 }
 0x30a   : > { %v2545_v47 = vadd.f32 %v5006_v46, %v5935_v37  ;;  %v2539_v48 = vpop.f32.mrb[115].mxu0  ;;  %v2785_v52 = vsel %vm2657_vm13, %v2535_v39, %v2721_v43 }
 0x30b   : > { %v2540_v49 = vadd.f32 %v5935_v37, %v2539_v48  ;;  %v2784_v50 = vsel %vm2656_vm14, %v2530_v41, %v2720_v45  ;;  %v6068_v41 = vld [vmem:[%s6437_s8] ss:$0 sm:$0xff] }
 0x30c   : > { %v2723_v51 = vmul.f32 0.1, %v2545_v47  ;;  %5101 = vmatprep.mubr.msk.f32.mxu1 %vm2809_vm12, %v2784_v50  ;;  %vm2659_vm15 = vcmp.gt.f32.partialorder %v2545_v47, 0.0 }
 0x30d   : > { %vm2658_vm0 = vcmp.gt.f32.partialorder %v2540_v49, 0.0  ;;  %v2722_v53 = vmul.f32 0.1, %v2540_v49  ;;  %5102 = vmatmul.mubr.msk.f32.gmra.mrb[112].mxu1 %vm2809_vm12, %v2785_v52  ;;  %v5009_v54 = vpop.f32.mrb[116].mxu0 }
 0x30e   : > { %v2555_v55 = vadd.f32 %v5009_v54, %v5935_v37  ;;  %v2549_v56 = vpop.f32.mrb[117].mxu0  ;;  %v2787_v59 = vsel %vm2659_vm15, %v2545_v47, %v2723_v51 }
 0x30f   : > { %v2786_v57 = vsel %vm2658_vm0, %v2540_v49, %v2722_v53  ;;  %v2550_v58 = vadd.f32 %v5935_v37, %v2549_v56 }
 0x310   : > { %5104 = vmatprep.mubr.msk.f32.mxu1 %vm2809_vm12, %v2786_v57  ;;  %v2725_v60 = vmul.f32 0.1, %v2555_v55  ;;  %vm2661_vm1 = vcmp.gt.f32.partialorder %v2555_v55, 0.0 }
 0x311   : > { %5105 = vmatmul.mubr.msk.f32.gmra.mrb[114].mxu1 %vm2809_vm12, %v2787_v59  ;;  %vm2660_vm3 = vcmp.gt.f32.partialorder %v2550_v58, 0.0  ;;  %v2724_v61 = vmul.f32 0.1, %v2550_v58  ;;  %v5012_v62 = vpop.f32.mrb[118].mxu0 }
 0x312   : > { %v2565_v63 = vadd.f32 %v5012_v62, %v5935_v37  ;;  %v2559_v0 = vpop.f32.mrb[119].mxu0  ;;  %v2789_v4 = vsel %vm2661_vm1, %v2555_v55, %v2725_v60 }
 0x313   : > { %v2788_v1 = vsel %vm2660_vm3, %v2550_v58, %v2724_v61  ;;  %v2560_v2 = vadd.f32 %v5935_v37, %v2559_v0 }
 0x314   : > { %5107 = vmatprep.mubr.msk.f32.mxu1 %vm2809_vm12, %v2788_v1  ;;  %vm2663_vm4 = vcmp.gt.f32.partialorder %v2565_v63, 0.0  ;;  %v2727_v3 = vmul.f32 0.1, %v2565_v63 }
 0x315   : > { %5108 = vmatmul.mubr.msk.f32.gmra.mrb[116].mxu1 %vm2809_vm12, %v2789_v4  ;;  %vm2662_vm5 = vcmp.gt.f32.partialorder %v2560_v2, 0.0  ;;  %v2726_v5 = vmul.f32 0.1, %v2560_v2  ;;  %v5015_v6 = vpop.f32.mrb[120].mxu0 }
 0x316   : > { %v2575_v7 = vadd.f32 %v5015_v6, %v5935_v37  ;;  %v2791_v8 = vsel %vm2663_vm4, %v2565_v63, %v2727_v3  ;;  %v2569_v9 = vpop.f32.mrb[121].mxu0 }
 0x317   : > { %v2790_v10 = vsel %vm2662_vm5, %v2560_v2, %v2726_v5  ;;  %v2570_v11 = vadd.f32 %v5935_v37, %v2569_v9 }
 0x318   : > { %5110 = vmatprep.mubr.msk.f32.mxu1 %vm2809_vm12, %v2790_v10  ;;  %vm2665_vm6 = vcmp.gt.f32.partialorder %v2575_v7, 0.0  ;;  %v2729_v12 = vmul.f32 0.1, %v2575_v7 }
 0x319   : > { %5111 = vmatmul.mubr.msk.f32.gmra.mrb[118].mxu1 %vm2809_vm12, %v2791_v8  ;;  %vm2664_vm8 = vcmp.gt.f32.partialorder %v2570_v11, 0.0  ;;  %v2728_v13 = vmul.f32 0.1, %v2570_v11  ;;  %v5018_v14 = vpop.f32.mrb[122].mxu0 }
 0x31a   : > { %v2585_v15 = vadd.f32 %v5018_v14, %v5935_v37  ;;  %v2793_v16 = vsel %vm2665_vm6, %v2575_v7, %v2729_v12  ;;  %v2579_v17 = vpop.f32.mrb[123].mxu0 }
 0x31b   : > { %v2792_v18 = vsel %vm2664_vm8, %v2570_v11, %v2728_v13  ;;  %v2580_v20 = vadd.f32 %v5935_v37, %v2579_v17 }
 0x31c   : > { %5113 = vmatprep.mubr.msk.f32.mxu1 %vm2809_vm12, %v2792_v18  ;;  %vm2667_vm2 = vcmp.gt.f32.partialorder %v2585_v15, 0.0  ;;  %v2731_v21 = vmul.f32 0.1, %v2585_v15 }
 0x31d   : > { %5114 = vmatmul.mubr.msk.f32.gmra.mrb[120].mxu1 %vm2809_vm12, %v2793_v16  ;;  %vm2666_vm9 = vcmp.gt.f32.partialorder %v2580_v20, 0.0  ;;  %v2730_v22 = vmul.f32 0.1, %v2580_v20  ;;  %v5021_v23 = vpop.f32.mrb[124].mxu0 }
 0x31e   : > { %v2595_v24 = vadd.f32 %v5021_v23, %v5935_v37  ;;  %v2795_v25 = vsel %vm2667_vm2, %v2585_v15, %v2731_v21  ;;  %v2589_v26 = vpop.f32.mrb[125].mxu0 }
 0x31f   : > { %v2794_v27 = vsel %vm2666_vm9, %v2580_v20, %v2730_v22  ;;  %v2590_v28 = vadd.f32 %v5935_v37, %v2589_v26 }
 0x320   : > { %5116 = vmatprep.mubr.msk.f32.mxu1 %vm2809_vm12, %v2794_v27  ;;  %vm2669_vm10 = vcmp.gt.f32.partialorder %v2595_v24, 0.0  ;;  %v2733_v29 = vmul.f32 0.1, %v2595_v24 }
 0x321   : > { %5117 = vmatmul.mubr.msk.f32.gmra.mrb[122].mxu1 %vm2809_vm12, %v2795_v25  ;;  %vm2668_vm11 = vcmp.gt.f32.partialorder %v2590_v28, 0.0  ;;  %v2732_v19 = vmul.f32 0.1, %v2590_v28  ;;  %v5024_v31 = vpop.f32.mrb[126].mxu0 }
 0x322   : > { %v2605_v32 = vadd.f32 %v5024_v31, %v5935_v37  ;;  %v2797_v33 = vsel %vm2669_vm10, %v2595_v24, %v2733_v29  ;;  %v2599_v34 = vpop.f32.mrb[127].mxu0 }
 0x323   : > { %v2796_v35 = vsel %vm2668_vm11, %v2590_v28, %v2732_v19  ;;  %v2600_v36 = vadd.f32 %v5935_v37, %v2599_v34 }
 0x324   : > { %5119 = vmatprep.mubr.msk.f32.mxu1 %vm2809_vm12, %v2796_v35  ;;  %vm2671_vm7 = vcmp.gt.f32.partialorder %v2605_v32, 0.0  ;;  %v2735_v30 = vmul.f32 0.1, %v2605_v32 }
 0x325   : > { %5120 = vmatmul.mubr.msk.f32.gmra.mrb[124].mxu1 %vm2809_vm12, %v2797_v33  ;;  %vm2670_vm13 = vcmp.gt.f32.partialorder %v2600_v36, 0.0  ;;  %v2734_v38 = vmul.f32 0.1, %v2600_v36 }
 0x326   : > { %v2799_v39 = vsel %vm2671_vm7, %v2605_v32, %v2735_v30 }
 0x327   : > { %v2798_v40 = vsel %vm2670_vm13, %v2600_v36, %v2734_v38 }
 0x328   : > { %5122 = vmatprep.mubr.msk.f32.mxu1 %vm2809_vm12, %v2798_v40 }
 0x329   : > { %5123 = vmatmul.mubr.msk.f32.gmra.mrb[126].mxu1 %vm2809_vm12, %v2799_v39 }
 0x380   : > { %v5031_v37 = vpop.f32.mrb[64].mxu1 }
 0x381   : > { %v3074_v42 = vadd.f32 %v5031_v37, %v6068_v41  ;;  %v3068_v43 = vpop.f32.mrb[65].mxu1 }
 0x382   : > { %v3069_v44 = vadd.f32 %v6068_v41, %v3068_v43 }
 0x383   : > { %vm3388_vm14 = vcmp.gt.f32.partialorder %v3074_v42, 0.0  ;;  %v3452_v45 = vmul.f32 0.1, %v3074_v42 }
 0x384   : > { %vm3387_vm15 = vcmp.gt.f32.partialorder %v3069_v44, 0.0  ;;  %v3451_v46 = vmul.f32 0.1, %v3069_v44  ;;  %v5034_v47 = vpop.f32.mrb[66].mxu1 }
 0x385   : > { %v6072_v48 = vsel %vm3388_vm14, %v3074_v42, %v3452_v45  ;;  %v3084_v49 = vadd.f32 %v5034_v47, %v6068_v41  ;;  %v3078_v50 = vpop.f32.mrb[67].mxu1  ;;  %vm3586_vm14 = vcmask 64512  }
 0x386   : > { %v6075_v51 = vsel %vm3387_vm15, %v3069_v44, %v3451_v46  ;;  %v3079_v52 = vadd.f32 %v6068_v41, %v3078_v50 }
 0x387   : > { %v5164_v53 = vpack.c.bf16 %v6072_v48, %v6075_v51  ;;  %vm3390_vm12 = vcmp.gt.f32.partialorder %v3084_v49, 0.0  ;;  %v3454_v54 = vmul.f32 0.1, %v3084_v49 }
 0x388   : > { %vm3389_vm0 = vcmp.gt.f32.partialorder %v3079_v52, 0.0  ;;  %v3453_v55 = vmul.f32 0.1, %v3079_v52  ;;  %v5037_v56 = vpop.f32.mrb[68].mxu1 }
 0x389   : > { %v6080_v57 = vsel %vm3390_vm12, %v3084_v49, %v3454_v54  ;;  %v3094_v58 = vadd.f32 %v5037_v56, %v6068_v41  ;;  %v3088_v59 = vpop.f32.mrb[69].mxu1  ;;  %v6137_v56 = vld [vmem:[%s6438_s9] sm:$0x3] }
 0x38a   : > { %v6083_v60 = vsel %vm3389_vm0, %v3079_v52, %v3453_v55  ;;  %v3089_v61 = vadd.f32 %v6068_v41, %v3088_v59  ;;  %4667 = vmatprep.mubr.msk.f32.mxu0 %vm3586_vm14, %v6137_v56  ;;  %4701 = vmatprep.mubr.msk.f32.mxu1 %vm3586_vm14, %v6137_v56  ;;  %vm6149_vm0 = vmpackc.low %vm3586_vm14, %vm3586_vm14 }
 0x38b   : > { %v5170_v62 = vpack.c.bf16 %v6080_v57, %v6083_v60  ;;  %vm3392_vm1 = vcmp.gt.f32.partialorder %v3094_v58, 0.0  ;;  %v3456_v63 = vmul.f32 0.1, %v3094_v58 }
 0x38c   : > { %vm3391_vm3 = vcmp.gt.f32.partialorder %v3089_v61, 0.0  ;;  %v3455_v0 = vmul.f32 0.1, %v3089_v61  ;;  %v5040_v1 = vpop.f32.mrb[70].mxu1 }
 0x38d   : > { %v6088_v2 = vsel %vm3392_vm1, %v3094_v58, %v3456_v63  ;;  %v3104_v3 = vadd.f32 %v5040_v1, %v6068_v41  ;;  %v3098_v4 = vpop.f32.mrb[71].mxu1 }
 0x38e   : > { %v6091_v5 = vsel %vm3391_vm3, %v3089_v61, %v3455_v0  ;;  %v3099_v6 = vadd.f32 %v6068_v41, %v3098_v4 }
 0x38f   : > { %v5176_v7 = vpack.c.bf16 %v6088_v2, %v6091_v5  ;;  %vm3394_vm4 = vcmp.gt.f32.partialorder %v3104_v3, 0.0  ;;  %v3458_v8 = vmul.f32 0.1, %v3104_v3 }
 0x390   : > { %vm3393_vm5 = vcmp.gt.f32.partialorder %v3099_v6, 0.0  ;;  %v3457_v9 = vmul.f32 0.1, %v3099_v6  ;;  %v5043_v10 = vpop.f32.mrb[72].mxu1 }
 0x391   : > { %v6096_v11 = vsel %vm3394_vm4, %v3104_v3, %v3458_v8  ;;  %v3114_v12 = vadd.f32 %v5043_v10, %v6068_v41  ;;  %v3108_v13 = vpop.f32.mrb[73].mxu1 }
 0x392   : > { %v6099_v14 = vsel %vm3393_vm5, %v3099_v6, %v3457_v9  ;;  %v3109_v15 = vadd.f32 %v6068_v41, %v3108_v13 }
 0x393   : > { %v5182_v16 = vpack.c.bf16 %v6096_v11, %v6099_v14  ;;  %vm3396_vm6 = vcmp.gt.f32.partialorder %v3114_v12, 0.0  ;;  %v3460_v17 = vmul.f32 0.1, %v3114_v12 }
 0x394   : > { %vm3395_vm8 = vcmp.gt.f32.partialorder %v3109_v15, 0.0  ;;  %v3459_v18 = vmul.f32 0.1, %v3109_v15  ;;  %v5046_v20 = vpop.f32.mrb[74].mxu1 }
 0x395   : > { %v6104_v21 = vsel %vm3396_vm6, %v3114_v12, %v3460_v17  ;;  %v3124_v22 = vadd.f32 %v5046_v20, %v6068_v41  ;;  %v3118_v23 = vpop.f32.mrb[75].mxu1  ;;  %v3580_v20 = vld [vmem:[%s6439_s10] sm:$0x3] }
 0x396   : > { %v6107_v24 = vsel %vm3395_vm8, %v3109_v15, %v3459_v18  ;;  %v3119_v25 = vadd.f32 %v6068_v41, %v3118_v23 }
 0x397   : > { %v5188_v26 = vpack.c.bf16 %v6104_v21, %v6107_v24  ;;  %vm3398_vm2 = vcmp.gt.f32.partialorder %v3124_v22, 0.0  ;;  %v3462_v27 = vmul.f32 0.1, %v3124_v22 }
 0x398   : > { %vm3397_vm9 = vcmp.gt.f32.partialorder %v3119_v25, 0.0  ;;  %v3461_v28 = vmul.f32 0.1, %v3119_v25  ;;  %v5049_v29 = vpop.f32.mrb[76].mxu1 }
 0x399   : > { %v6112_v19 = vsel %vm3398_vm2, %v3124_v22, %v3462_v27  ;;  %v3134_v31 = vadd.f32 %v5049_v29, %v6068_v41  ;;  %v3128_v32 = vpop.f32.mrb[77].mxu1 }
 0x39a   : > { %v6115_v33 = vsel %vm3397_vm9, %v3119_v25, %v3461_v28  ;;  %v3129_v34 = vadd.f32 %v6068_v41, %v3128_v32  ;;  %v5363_v25 = vmov 0  }
 0x39b   : > { %v5194_v35 = vpack.c.bf16 %v6112_v19, %v6115_v33  ;;  %vm3400_vm10 = vcmp.gt.f32.partialorder %v3134_v31, 0.0  ;;  %v3464_v36 = vmul.f32 0.1, %v3134_v31  ;;  %5298 = vset.pattern.permute.xlu0 %v5363_v25 }
 0x39c   : > { %vm3399_vm11 = vcmp.gt.f32.partialorder %v3129_v34, 0.0  ;;  %v3463_v30 = vmul.f32 0.1, %v3129_v34  ;;  %v5052_v38 = vpop.f32.mrb[78].mxu1  ;;  %3583 = vperm.xlu0 %5298, %v3580_v20  }
 0x39d   : > { %v6120_v39 = vsel %vm3400_vm10, %v3134_v31, %v3464_v36  ;;  %v3144_v40 = vadd.f32 %v5052_v38, %v6068_v41  ;;  %v3138_v37 = vpop.f32.mrb[79].mxu1 }
 0x39e   : > { %v6123_v42 = vsel %vm3399_vm11, %v3129_v34, %v3463_v30  ;;  %v3139_v43 = vadd.f32 %v6068_v41, %v3138_v37 }
 0x39f   : > { %v5200_v44 = vpack.c.bf16 %v6120_v39, %v6123_v42  ;;  %vm3402_vm7 = vcmp.gt.f32.partialorder %v3144_v40, 0.0  ;;  %v3466_v45 = vmul.f32 0.1, %v3144_v40 }
 0x3a0   : > { %vm3401_vm13 = vcmp.gt.f32.partialorder %v3139_v43, 0.0  ;;  %v3465_v46 = vmul.f32 0.1, %v3139_v43  ;;  %v5055_v47 = vpop.f32.mrb[80].mxu1 }
 0x3a1   : > { %v6128_v49 = vsel %vm3402_vm7, %v3144_v40, %v3466_v45  ;;  %v3154_v50 = vadd.f32 %v5055_v47, %v6068_v41  ;;  %v3148_v52 = vpop.f32.mrb[81].mxu1 }
 0x3a2   : > { %v6131_v54 = vsel %vm3401_vm13, %v3139_v43, %v3465_v46  ;;  %v3149_v55 = vadd.f32 %v6068_v41, %v3148_v52 }
 0x3a3   : > { %v5206_v58 = vpack.c.bf16 %v6128_v49, %v6131_v54  ;;  %vm3404_vm15 = vcmp.gt.f32.partialorder %v3154_v50, 0.0  ;;  %v3468_v59 = vmul.f32 0.1, %v3154_v50 }
 0x3a4   : > { %vm3403_vm12 = vcmp.gt.f32.partialorder %v3149_v55, 0.0  ;;  %v3467_v61 = vmul.f32 0.1, %v3149_v55  ;;  %v5058_v63 = vpop.f32.mrb[82].mxu1 }
 0x3a5   : > { %v3532_v0 = vsel %vm3404_vm15, %v3154_v50, %v3468_v59  ;;  %v3164_v1 = vadd.f32 %v5058_v63, %v6068_v41  ;;  %v3158_v3 = vpop.f32.mrb[83].mxu1 }
 0x3a6   : > { %v3531_v4 = vsel %vm3403_vm12, %v3149_v55, %v3467_v61  ;;  %v3159_v6 = vadd.f32 %v6068_v41, %v3158_v3 }
 0x3a7   : > { %v5161_v9 = vpack.c.bf16 %v3532_v0, %v3531_v4  ;;  %vm3406_vm1 = vcmp.gt.f32.partialorder %v3164_v1, 0.0  ;;  %v3470_v10 = vmul.f32 0.1, %v3164_v1 }
 0x3a8   : > { %vm3405_vm3 = vcmp.gt.f32.partialorder %v3159_v6, 0.0  ;;  %v3469_v12 = vmul.f32 0.1, %v3159_v6  ;;  %v5061_v13 = vpop.f32.mrb[84].mxu1 }
 0x3a9   : > { %v3534_v15 = vsel %vm3406_vm1, %v3164_v1, %v3470_v10  ;;  %v3174_v17 = vadd.f32 %v5061_v13, %v6068_v41  ;;  %v3168_v18 = vpop.f32.mrb[85].mxu1  ;;  %5163 = vmatprep.subr.msk.bf16.mxu0 %vm6149_vm0, %v5161_v9 }
 0x3aa   : > { %v3533_v22 = vsel %vm3405_vm3, %v3159_v6, %v3469_v12  ;;  %v3169_v23 = vadd.f32 %v6068_v41, %v3168_v18  ;;  %5166 = vmatpush3.bf16.xpose.msk.msra.mxu0 %vm6149_vm0, %v5164_v53 }
 0x3ab   : > { %v5167_v27 = vpack.c.bf16 %v3534_v15, %v3533_v22  ;;  %vm3408_vm4 = vcmp.gt.f32.partialorder %v3174_v17, 0.0  ;;  %v3472_v28 = vmul.f32 0.1, %v3174_v17 }
 0x3ac   : > { %vm3407_vm5 = vcmp.gt.f32.partialorder %v3169_v23, 0.0  ;;  %v3471_v29 = vmul.f32 0.1, %v3169_v23  ;;  %v5064_v31 = vpop.f32.mrb[86].mxu1 }
 0x3ad   : > { %v3536_v32 = vsel %vm3408_vm4, %v3174_v17, %v3472_v28  ;;  %v3184_v34 = vadd.f32 %v5064_v31, %v6068_v41  ;;  %v3178_v36 = vpop.f32.mrb[87].mxu1  ;;  %5169 = vmatprep.subr.msk.bf16.mxu0 %vm6149_vm0, %v5167_v27 }
 0x3ae   : > { %v3535_v48 = vsel %vm3407_vm5, %v3169_v23, %v3471_v29  ;;  %v3179_v51 = vadd.f32 %v6068_v41, %v3178_v36 }
 0x3af   : > { %v5173_v53 = vpack.c.bf16 %v3536_v32, %v3535_v48  ;;  %vm3410_vm6 = vcmp.gt.f32.partialorder %v3184_v34, 0.0  ;;  %v3474_v30 = vmul.f32 0.1, %v3184_v34 }
 0x3b0   : > { %vm3409_vm8 = vcmp.gt.f32.partialorder %v3179_v51, 0.0  ;;  %v3473_v38 = vmul.f32 0.1, %v3179_v51  ;;  %v5067_v40 = vpop.f32.mrb[88].mxu1 }
 0x3b1   : > { %v3538_v37 = vsel %vm3410_vm6, %v3184_v34, %v3474_v30  ;;  %v3194_v43 = vadd.f32 %v5067_v40, %v6068_v41  ;;  %v3188_v45 = vpop.f32.mrb[89].mxu1 }
 0x3b2   : > { %v3537_v46 = vsel %vm3409_vm8, %v3179_v51, %v3473_v38  ;;  %v3189_v47 = vadd.f32 %v6068_v41, %v3188_v45  ;;  %5172 = vmatpush3.bf16.xpose.msk.msra.mxu0 %vm6149_vm0, %v5170_v62 }
 0x3b3   : > { %v5179_v50 = vpack.c.bf16 %v3538_v37, %v3537_v46  ;;  %vm3412_vm2 = vcmp.gt.f32.partialorder %v3194_v43, 0.0  ;;  %v3476_v52 = vmul.f32 0.1, %v3194_v43  ;;  %5175 = vmatprep.subr.msk.bf16.mxu0 %vm6149_vm0, %v5173_v53 }
 0x3b4   : > { %vm3411_vm9 = vcmp.gt.f32.partialorder %v3189_v47, 0.0  ;;  %v3475_v55 = vmul.f32 0.1, %v3189_v47  ;;  %v5070_v59 = vpop.f32.mrb[90].mxu1 }
 0x3b5   : > { %v3540_v61 = vsel %vm3412_vm2, %v3194_v43, %v3476_v52  ;;  %v3204_v63 = vadd.f32 %v5070_v59, %v6068_v41  ;;  %v3198_v0 = vpop.f32.mrb[91].mxu1 }
 0x3b6   : > { %v3539_v1 = vsel %vm3411_vm9, %v3189_v47, %v3475_v55  ;;  %v3199_v3 = vadd.f32 %v6068_v41, %v3198_v0 }
 0x3b7   : > { %v5185_v57 = vpack.c.bf16 %v3540_v61, %v3539_v1  ;;  %vm3414_vm10 = vcmp.gt.f32.partialorder %v3204_v63, 0.0  ;;  %v3478_v60 = vmul.f32 0.1, %v3204_v63 }
 0x3b8   : > { %vm3413_vm11 = vcmp.gt.f32.partialorder %v3199_v3, 0.0  ;;  %v3477_v62 = vmul.f32 0.1, %v3199_v3  ;;  %v5073_v4 = vpop.f32.mrb[92].mxu1 }
 0x3b9   : > { %v3542_v6 = vsel %vm3414_vm10, %v3204_v63, %v3478_v60  ;;  %v3214_v9 = vadd.f32 %v5073_v4, %v6068_v41  ;;  %v3208_v10 = vpop.f32.mrb[93].mxu1 }
 0x3ba   : > { %v3541_v12 = vsel %vm3413_vm11, %v3199_v3, %v3477_v62  ;;  %v3209_v13 = vadd.f32 %v6068_v41, %v3208_v10  ;;  %5178 = vmatpush3.bf16.xpose.msk.msra.mxu0 %vm6149_vm0, %v5176_v7 }
 0x3bb   : > { %v5191_v15 = vpack.c.bf16 %v3542_v6, %v3541_v12  ;;  %vm3416_vm7 = vcmp.gt.f32.partialorder %v3214_v9, 0.0  ;;  %v3480_v17 = vmul.f32 0.1, %v3214_v9  ;;  %5181 = vmatprep.subr.msk.bf16.mxu0 %vm6149_vm0, %v5179_v50 }
 0x3bc   : > { %vm3415_vm13 = vcmp.gt.f32.partialorder %v3209_v13, 0.0  ;;  %v3479_v18 = vmul.f32 0.1, %v3209_v13  ;;  %v5076_v20 = vpop.f32.mrb[94].mxu1 }
 0x3bd   : > { %v6189_v22 = vsel %vm3416_vm7, %v3214_v9, %v3480_v17  ;;  %v3224_v23 = vadd.f32 %v5076_v20, %v6068_v41  ;;  %v3218_v25 = vpop.f32.mrb[95].mxu1 }
 0x3be   : > { %v6192_v27 = vsel %vm3415_vm13, %v3209_v13, %v3479_v18  ;;  %v3219_v2 = vadd.f32 %v6068_v41, %v3218_v25 }
 0x3bf   : > { %v5197_v5 = vpack.c.bf16 %v6189_v22, %v6192_v27  ;;  %vm3418_vm15 = vcmp.gt.f32.partialorder %v3224_v23, 0.0  ;;  %v3482_v7 = vmul.f32 0.1, %v3224_v23 }
 0x3c0   : > { %vm3417_vm12 = vcmp.gt.f32.partialorder %v3219_v2, 0.0  ;;  %v3481_v28 = vmul.f32 0.1, %v3219_v2  ;;  %v5079_v29 = vpop.f32.mrb[96].mxu1 }
 0x3c1   : > { %v6197_v31 = vsel %vm3418_vm15, %v3224_v23, %v3482_v7  ;;  %v3234_v32 = vadd.f32 %v5079_v29, %v6068_v41  ;;  %v3228_v34 = vpop.f32.mrb[97].mxu1 }
 0x3c2   : > { %v6200_v36 = vsel %vm3417_vm12, %v3219_v2, %v3481_v28  ;;  %v3229_v48 = vadd.f32 %v6068_v41, %v3228_v34  ;;  %5184 = vmatpush3.bf16.xpose.msk.msra.mxu0 %vm6149_vm0, %v5182_v16 }
 0x3c3   : > { %v5203_v51 = vpack.c.bf16 %v6197_v31, %v6200_v36  ;;  %vm3420_vm1 = vcmp.gt.f32.partialorder %v3234_v32, 0.0  ;;  %v3484_v53 = vmul.f32 0.1, %v3234_v32  ;;  %5187 = vmatprep.subr.msk.bf16.mxu0 %vm6149_vm0, %v5185_v57 }
 0x3c4   : > { %vm3419_vm3 = vcmp.gt.f32.partialorder %v3229_v48, 0.0  ;;  %v3483_v30 = vmul.f32 0.1, %v3229_v48  ;;  %v5082_v38 = vpop.f32.mrb[98].mxu1 }
 0x3c5   : > { %v6212_v40 = vsel %vm3420_vm1, %v3234_v32, %v3484_v53  ;;  %v3244_v37 = vadd.f32 %v5082_v38, %v6068_v41  ;;  %v3238_v43 = vpop.f32.mrb[99].mxu1 }
 0x3c6   : > { %v6215_v11 = vsel %vm3419_vm3, %v3229_v48, %v3483_v30  ;;  %v3239_v14 = vadd.f32 %v6068_v41, %v3238_v43 }
 0x3c7   : > { %v5212_v16 = vpack.c.bf16 %v6212_v40, %v6215_v11  ;;  %vm3422_vm4 = vcmp.gt.f32.partialorder %v3244_v37, 0.0  ;;  %v3486_v45 = vmul.f32 0.1, %v3244_v37 }
 0x3c8   : > { %vm3421_vm5 = vcmp.gt.f32.partialorder %v3239_v14, 0.0  ;;  %v3485_v46 = vmul.f32 0.1, %v3239_v14  ;;  %v5085_v47 = vpop.f32.mrb[100].mxu1 }
 0x3c9   : > { %v6220_v50 = vsel %vm3422_vm4, %v3244_v37, %v3486_v45  ;;  %v3254_v52 = vadd.f32 %v5085_v47, %v6068_v41  ;;  %v3248_v55 = vpop.f32.mrb[101].mxu1 }
 0x3ca   : > { %v6223_v59 = vsel %vm3421_vm5, %v3239_v14, %v3485_v46  ;;  %v3249_v61 = vadd.f32 %v6068_v41, %v3248_v55  ;;  %5190 = vmatpush3.bf16.xpose.msk.msra.mxu0 %vm6149_vm0, %v5188_v26 }
 0x3cb   : > { %v5218_v63 = vpack.c.bf16 %v6220_v50, %v6223_v59  ;;  %vm3424_vm6 = vcmp.gt.f32.partialorder %v3254_v52, 0.0  ;;  %v3488_v0 = vmul.f32 0.1, %v3254_v52  ;;  %5193 = vmatprep.subr.msk.bf16.mxu0 %vm6149_vm0, %v5191_v15 }
 0x3cc   : > { %vm3423_vm8 = vcmp.gt.f32.partialorder %v3249_v61, 0.0  ;;  %v3487_v1 = vmul.f32 0.1, %v3249_v61  ;;  %v5088_v3 = vpop.f32.mrb[102].mxu1 }
 0x3cd   : > { %v6235_v57 = vsel %vm3424_vm6, %v3254_v52, %v3488_v0  ;;  %v3264_v60 = vadd.f32 %v5088_v3, %v6068_v41  ;;  %v3258_v62 = vpop.f32.mrb[103].mxu1 }
 0x3ce   : > { %v6238_v21 = vsel %vm3423_vm8, %v3249_v61, %v3487_v1  ;;  %v3259_v24 = vadd.f32 %v6068_v41, %v3258_v62 }
 0x3cf   : > { %v5224_v26 = vpack.c.bf16 %v6235_v57, %v6238_v21  ;;  %vm3426_vm2 = vcmp.gt.f32.partialorder %v3264_v60, 0.0  ;;  %v3490_v4 = vmul.f32 0.1, %v3264_v60 }
 0x3d0   : > { %vm3425_vm9 = vcmp.gt.f32.partialorder %v3259_v24, 0.0  ;;  %v3489_v6 = vmul.f32 0.1, %v3259_v24  ;;  %v5091_v9 = vpop.f32.mrb[104].mxu1 }
 0x3d1   : > { %v6243_v10 = vsel %vm3426_vm2, %v3264_v60, %v3490_v4  ;;  %v3274_v12 = vadd.f32 %v5091_v9, %v6068_v41  ;;  %v3268_v13 = vpop.f32.mrb[105].mxu1 }
 0x3d2   : > { %v6246_v15 = vsel %vm3425_vm9, %v3259_v24, %v3489_v6  ;;  %v3269_v17 = vadd.f32 %v6068_v41, %v3268_v13  ;;  %5196 = vmatpush3.bf16.xpose.msk.msra.mxu0 %vm6149_vm0, %v5194_v35 }
 0x3d3   : > { %v5230_v18 = vpack.c.bf16 %v6243_v10, %v6246_v15  ;;  %vm3428_vm10 = vcmp.gt.f32.partialorder %v3274_v12, 0.0  ;;  %v3492_v20 = vmul.f32 0.1, %v3274_v12  ;;  %5199 = vmatprep.subr.msk.bf16.mxu0 %vm6149_vm0, %v5197_v5 }
 0x3d4   : > { %vm3427_vm11 = vcmp.gt.f32.partialorder %v3269_v17, 0.0  ;;  %v3491_v23 = vmul.f32 0.1, %v3269_v17  ;;  %v5094_v25 = vpop.f32.mrb[106].mxu1 }
 0x3d5   : > { %v6261_v2 = vsel %vm3428_vm10, %v3274_v12, %v3492_v20  ;;  %v3284_v19 = vadd.f32 %v5094_v25, %v6068_v41  ;;  %v3278_v33 = vpop.f32.mrb[107].mxu1 }
 0x3d6   : > { %v6264_v35 = vsel %vm3427_vm11, %v3269_v17, %v3491_v23  ;;  %v3279_v7 = vadd.f32 %v6068_v41, %v3278_v33 }
 0x3d7   : > { %v5236_v28 = vpack.c.bf16 %v6261_v2, %v6264_v35  ;;  %vm3430_vm7 = vcmp.gt.f32.partialorder %v3284_v19, 0.0  ;;  %v3494_v22 = vmul.f32 0.1, %v3284_v19 }
 0x3d8   : > { %vm3429_vm13 = vcmp.gt.f32.partialorder %v3279_v7, 0.0  ;;  %v3493_v27 = vmul.f32 0.1, %v3279_v7  ;;  %v5097_v5 = vpop.f32.mrb[108].mxu1 }
 0x3d9   : > { %v6269_v29 = vsel %vm3430_vm7, %v3284_v19, %v3494_v22  ;;  %v3294_v32 = vadd.f32 %v5097_v5, %v6068_v41  ;;  %v3288_v34 = vpop.f32.mrb[109].mxu1 }
 0x3da   : > { %v6272_v48 = vsel %vm3429_vm13, %v3279_v7, %v3493_v27  ;;  %v3289_v53 = vadd.f32 %v6068_v41, %v3288_v34  ;;  %5202 = vmatpush3.bf16.xpose.msk.msra.mxu0 %vm6149_vm0, %v5200_v44 }
 0x3db   : > { %v5242_v30 = vpack.c.bf16 %v6269_v29, %v6272_v48  ;;  %vm3432_vm15 = vcmp.gt.f32.partialorder %v3294_v32, 0.0  ;;  %v3496_v38 = vmul.f32 0.1, %v3294_v32  ;;  %5205 = vmatprep.subr.msk.bf16.mxu0 %vm6149_vm0, %v5203_v51  ;;  %v3933_v48 = vlaneseq }
 0x3dc   : > { %vm3431_vm12 = vcmp.gt.f32.partialorder %v3289_v53, 0.0  ;;  %v3495_v37 = vmul.f32 0.1, %v3289_v53  ;;  %v5100_v43 = vpop.f32.mrb[110].mxu1 }
 0x3dd   : > { %v6287_v14 = vsel %vm3432_vm15, %v3294_v32, %v3496_v38  ;;  %v3304_v39 = vadd.f32 %v5100_v43, %v6068_v41  ;;  %v3298_v42 = vpop.f32.mrb[111].mxu1 }
 0x3de   : > { %v6290_v44 = vsel %vm3431_vm12, %v3289_v53, %v3495_v37  ;;  %v3299_v45 = vadd.f32 %v6068_v41, %v3298_v42 }
 0x3df   : > { %v5248_v46 = vpack.c.bf16 %v6287_v14, %v6290_v44  ;;  %vm3434_vm1 = vcmp.gt.f32.partialorder %v3304_v39, 0.0  ;;  %v3498_v31 = vmul.f32 0.1, %v3304_v39  ;;  %v3934_v14 = vshrl.u32 %v3933_v48, 7 }
 0x3e0   : > { %vm3433_vm3 = vcmp.gt.f32.partialorder %v3299_v45, 0.0  ;;  %v3497_v36 = vmul.f32 0.1, %v3299_v45  ;;  %v5103_v51 = vpop.f32.mrb[112].mxu1 }
 0x3e1   : > { %v6295_v47 = vsel %vm3434_vm1, %v3304_v39, %v3498_v31  ;;  %v3314_v52 = vadd.f32 %v5103_v51, %v6068_v41  ;;  %v3308_v55 = vpop.f32.mrb[113].mxu1 }
 0x3e2   : > { %v6298_v61 = vsel %vm3433_vm3, %v3299_v45, %v3497_v36  ;;  %v3309_v0 = vadd.f32 %v6068_v41, %v3308_v55  ;;  %5208 = vmatpush3.bf16.xpose.msk.msra.mxu0 %vm6149_vm0, %v5206_v58 }
 0x3e3   : > { %v5254_v1 = vpack.c.bf16 %v6295_v47, %v6298_v61  ;;  %vm3436_vm4 = vcmp.gt.f32.partialorder %v3314_v52, 0.0  ;;  %v3500_v3 = vmul.f32 0.1, %v3314_v52 }
 0x3e4   : > { %vm3435_vm5 = vcmp.gt.f32.partialorder %v3309_v0, 0.0  ;;  %v3499_v60 = vmul.f32 0.1, %v3309_v0  ;;  %v5106_v62 = vpop.f32.mrb[114].mxu1 }
 0x3e5   : > { %v3564_v24 = vsel %vm3436_vm4, %v3314_v52, %v3500_v3  ;;  %v3324_v4 = vadd.f32 %v5106_v62, %v6068_v41  ;;  %v3318_v6 = vpop.f32.mrb[115].mxu1 }
 0x3e6   : > { %v3563_v9 = vsel %vm3435_vm5, %v3309_v0, %v3499_v60  ;;  %v3319_v12 = vadd.f32 %v6068_v41, %v3318_v6 }
 0x3e7   : > { %v5209_v13 = vpack.c.bf16 %v3564_v24, %v3563_v9  ;;  %vm3438_vm6 = vcmp.gt.f32.partialorder %v3324_v4, 0.0  ;;  %v3502_v49 = vmul.f32 0.1, %v3324_v4 }
 0x3e8   : > { %vm3437_vm8 = vcmp.gt.f32.partialorder %v3319_v12, 0.0  ;;  %v3501_v54 = vmul.f32 0.1, %v3319_v12  ;;  %v5109_v58 = vpop.f32.mrb[116].mxu1 }
 0x3e9   : > { %v3566_v17 = vsel %vm3438_vm6, %v3324_v4, %v3502_v49  ;;  %5211 = vmatprep.subr.msk.bf16.mxu1 %vm6149_vm0, %v5209_v13  ;;  %v3334_v20 = vadd.f32 %v5109_v58, %v6068_v41  ;;  %v3328_v23 = vpop.f32.mrb[117].mxu1  ;;  %4668 = vmatmul.mubr.msk.f32.vlgmr.msra.gmra.mrb[128].mxu0 %vm3586_vm14, %v6137_v56 }
 0x3ea   : > { %v3565_v25 = vsel %vm3437_vm8, %v3319_v12, %v3501_v54  ;;  %5214 = vmatpush3.bf16.xpose.msk.msra.mxu1 %vm6149_vm0, %v5212_v16  ;;  %v3329_v19 = vadd.f32 %v6068_v41, %v3328_v23 }
 0x3eb   : > { %v5215_v33 = vpack.c.bf16 %v3566_v17, %v3565_v25  ;;  %vm3440_vm2 = vcmp.gt.f32.partialorder %v3334_v20, 0.0  ;;  %v3504_v7 = vmul.f32 0.1, %v3334_v20 }
 0x3ec   : > { %vm3439_vm9 = vcmp.gt.f32.partialorder %v3329_v19, 0.0  ;;  %v3503_v22 = vmul.f32 0.1, %v3329_v19  ;;  %v5112_v27 = vpop.f32.mrb[118].mxu1 }
 0x3ed   : > { %5217 = vmatprep.subr.msk.bf16.mxu1 %vm6149_vm0, %v5215_v33  ;;  %v3568_v5 = vsel %vm3440_vm2, %v3334_v20, %v3504_v7  ;;  %v3344_v32 = vadd.f32 %v5112_v27, %v6068_v41  ;;  %v3338_v34 = vpop.f32.mrb[119].mxu1 }
 0x3ee   : > { %v3567_v53 = vsel %vm3439_vm9, %v3329_v19, %v3503_v22  ;;  %v3339_v40 = vadd.f32 %v6068_v41, %v3338_v34 }
 0x3ef   : > { %v5221_v11 = vpack.c.bf16 %v3568_v5, %v3567_v53  ;;  %vm3442_vm10 = vcmp.gt.f32.partialorder %v3344_v32, 0.0  ;;  %v3506_v16 = vmul.f32 0.1, %v3344_v32 }
 0x3f0   : > { %vm3441_vm11 = vcmp.gt.f32.partialorder %v3339_v40, 0.0  ;;  %v3505_v38 = vmul.f32 0.1, %v3339_v40  ;;  %v5115_v37 = vpop.f32.mrb[120].mxu1 }
 0x3f1   : > { %v3570_v43 = vsel %vm3442_vm10, %v3344_v32, %v3506_v16  ;;  %v3354_v39 = vadd.f32 %v5115_v37, %v6068_v41  ;;  %v3348_v42 = vpop.f32.mrb[121].mxu1 }
 0x3f2   : > { %5220 = vmatpush3.bf16.xpose.msk.msra.mxu1 %vm6149_vm0, %v5218_v63  ;;  %v3569_v45 = vsel %vm3441_vm11, %v3339_v40, %v3505_v38  ;;  %v3349_v31 = vadd.f32 %v6068_v41, %v3348_v42 }
 0x3f3   : > { %v5227_v36 = vpack.c.bf16 %v3570_v43, %v3569_v45  ;;  %5223 = vmatprep.subr.msk.bf16.mxu1 %vm6149_vm0, %v5221_v11  ;;  %vm3444_vm7 = vcmp.gt.f32.partialorder %v3354_v39, 0.0  ;;  %v3508_v51 = vmul.f32 0.1, %v3354_v39 }
 0x3f4   : > { %vm3443_vm13 = vcmp.gt.f32.partialorder %v3349_v31, 0.0  ;;  %v3507_v52 = vmul.f32 0.1, %v3349_v31  ;;  %v5118_v55 = vpop.f32.mrb[122].mxu1 }
 0x3f5   : > { %v3572_v0 = vsel %vm3444_vm7, %v3354_v39, %v3508_v51  ;;  %v3364_v3 = vadd.f32 %v5118_v55, %v6068_v41  ;;  %v3358_v60 = vpop.f32.mrb[123].mxu1 }
 0x3f6   : > { %v3571_v50 = vsel %vm3443_vm13, %v3349_v31, %v3507_v52  ;;  %v3359_v59 = vadd.f32 %v6068_v41, %v3358_v60 }
 0x3f7   : > { %v5233_v63 = vpack.c.bf16 %v3572_v0, %v3571_v50  ;;  %vm3446_vm15 = vcmp.gt.f32.partialorder %v3364_v3, 0.0  ;;  %v3510_v62 = vmul.f32 0.1, %v3364_v3 }
 0x3f8   : > { %vm3445_vm12 = vcmp.gt.f32.partialorder %v3359_v59, 0.0  ;;  %v3509_v24 = vmul.f32 0.1, %v3359_v59  ;;  %v5121_v4 = vpop.f32.mrb[124].mxu1 }
 0x3f9   : > { %v3574_v6 = vsel %vm3446_vm15, %v3364_v3, %v3510_v62  ;;  %v3374_v9 = vadd.f32 %v5121_v4, %v6068_v41  ;;  %v3368_v12 = vpop.f32.mrb[125].mxu1 }
 0x3fa   : > { %5226 = vmatpush3.bf16.xpose.msk.msra.mxu1 %vm6149_vm0, %v5224_v26  ;;  %v3573_v13 = vsel %vm3445_vm12, %v3359_v59, %v3509_v24  ;;  %v3369_v49 = vadd.f32 %v6068_v41, %v3368_v12 }
 0x3fb   : > { %5229 = vmatprep.subr.msk.bf16.mxu1 %vm6149_vm0, %v5227_v36  ;;  %v5239_v54 = vpack.c.bf16 %v3574_v6, %v3573_v13  ;;  %vm3448_vm1 = vcmp.gt.f32.partialorder %v3374_v9, 0.0  ;;  %v3512_v58 = vmul.f32 0.1, %v3374_v9 }
 0x3fc   : > { %vm3447_vm3 = vcmp.gt.f32.partialorder %v3369_v49, 0.0  ;;  %v3511_v17 = vmul.f32 0.1, %v3369_v49  ;;  %v5124_v20 = vpop.f32.mrb[126].mxu1 }
 0x3fd   : > { %v3576_v23 = vsel %vm3448_vm1, %v3374_v9, %v3512_v58  ;;  %v3384_v25 = vadd.f32 %v5124_v20, %v6068_v41  ;;  %v3378_v19 = vpop.f32.mrb[127].mxu1 }
 0x3fe   : > { %v3575_v57 = vsel %vm3447_vm3, %v3369_v49, %v3511_v17  ;;  %v3379_v21 = vadd.f32 %v6068_v41, %v3378_v19 }
 0x3ff   : > { %v5245_v26 = vpack.c.bf16 %v3576_v23, %v3575_v57  ;;  %vm3450_vm4 = vcmp.gt.f32.partialorder %v3384_v25, 0.0  ;;  %v3514_v33 = vmul.f32 0.1, %v3384_v25 }
 0x400   : > { %vm3449_vm5 = vcmp.gt.f32.partialorder %v3379_v21, 0.0  ;;  %v3513_v7 = vmul.f32 0.1, %v3379_v21 }
 0x401   : > { %v3578_v22 = vsel %vm3450_vm4, %v3384_v25, %v3514_v33 }
 0x402   : > { %5232 = vmatpush3.bf16.xpose.msk.msra.mxu1 %vm6149_vm0, %v5230_v18  ;;  %v3577_v27 = vsel %vm3449_vm5, %v3379_v21, %v3513_v7 }
 0x403   : > { %5235 = vmatprep.subr.msk.bf16.mxu1 %vm6149_vm0, %v5233_v63  ;;  %v5251_v5 = vpack.c.bf16 %v3578_v22, %v3577_v27 }
 0x40a   : > { %5238 = vmatpush3.bf16.xpose.msk.msra.mxu1 %vm6149_vm0, %v5236_v28  ;;  %v5364_v28 = vmov 1983009808  }
 0x40b   : > { %5241 = vmatprep.subr.msk.bf16.mxu1 %vm6149_vm0, %v5239_v54  ;;  %v3931_v29 = vunpack.c.l.s4 %v5364_v28 }
 0x412   : > { %5244 = vmatpush3.bf16.xpose.msk.msra.mxu1 %vm6149_vm0, %v5242_v30  ;;  %v3932_v30 = vunpack.c.0.s8 %v3931_v29 }
 0x413   : > { %5247 = vmatprep.subr.msk.bf16.mxu1 %vm6149_vm0, %v5245_v26 }
 0x414   : > { %v3935_v8 = vsub.s32 %v3932_v30, %v3934_v14 }
 0x41a   : > { %5250 = vmatpush3.bf16.xpose.msk.msra.mxu1 %vm6149_vm0, %v5248_v46 }
 0x41b   : > { %5253 = vmatprep.subr.msk.bf16.mxu1 %vm6149_vm0, %v5251_v5  ;;  %v3584_v41 = vpop.permute.xlu0 %3583 }
 0x422   : > { %5256 = vmatpush3.bf16.xpose.msk.msra.mxu1 %vm6149_vm0, %v5254_v1 }
 0x429   : > { %4702 = vmatmul.mubr.msk.f32.vlgmr.msra.gmra.mrb[128].mxu1 %vm3586_vm14, %v6137_v56 }
 0x4bc   : > { %v3848_v10 = vpop.f32.mrb[128].mxu0 }
 0x4bd   : > { %v3849_v15 = vadd.f32 %v3848_v10, %v3584_v41  ;;  %v3850_v18 = vpop.f32.mrb[129].mxu0 }
 0x4be   : > { %v3851_v2 = vadd.f32 %v3850_v18, %v3584_v41 }
 0x4c0   : > { %v3928_v35 = vcombine.low %v3849_v15, %v3851_v2 }
 0x4c2   : > { %v3936_v61 = vrot.slane %v3928_v35, %v3935_v8 }
 0x4fc   : > { %v3919_v44 = vpop.f32.mrb[128].mxu1 }
 0x4fd   : > { %v3920_v46 = vadd.f32 %v3919_v44, %v3584_v41  ;;  %v3921_v47 = vpop.f32.mrb[129].mxu1 }
 0x4fe   : > { %v3922_v56 = vadd.f32 %v3921_v47, %v3584_v41 }
 0x500   : > { %v3929_v1 = vcombine.low %v3920_v46, %v3922_v56 }
 0x502   : > { %v3943_v32 = vrot.slane %v3929_v1, %v3935_v8 }
 0x504   : > { %v3944_v34 = vcombine.low %v3936_v61, %v3943_v32 }
 0x506   : > { %3946 = vst [vmem:[%s380_s25] sm:$0xff] %v3944_v34 }
 0x507   : > { %5312 = shalt.err (!%p5309_p3)
}
 0x508   : > { %s5313_s16 = scalar_lea.hbm %s6387_s13, 128  ;;  %s5317_s30 = scalar_lea.hbm %s6440_s11, 256 }
 0x509   : > { %p5314_p4 = scmp.ne.s32.totalorder %s6387_s13, %s5313_s16  ;;  %p5318_p9 = scmp.lt.u32.totalorder %s6387_s13, %s6440_s11 }
 0x50a   : > { %p5319_p10 = scmp.lt.u32.totalorder %s5317_s30, %s5313_s16  ;;  %p5321_p12 = scmp.lt.u32.totalorder %s5313_s16, %s6387_s13 }
 0x50b   : > { %p5315_p7 = pnand %p5314_p4, %p5464_p5 }
 0x50c   : > { %p5320_p11 = por %p5319_p10, %p5318_p9 }
 0x50d   : > { %p5316_p8 = pneg %p5315_p7 }
 0x50e   : > { %p5322_p13 = por %p5321_p12, %p5320_p11 }
 0x510   : > { %p5323_p0 = pnand %p5322_p13, %p5316_p8 }
 0x512   : > { %5326 = shalt.err (!%p5323_p0)
}
 0x513   : > { %5257 = dma.vmem_to_hbm [thread:$0]  (%p5464_p5), %s6389_s29, 128, %s6387_s13, %s3948_s14  }
 0x514 PF: > { %p5263_p1 = scmp.ge.s32.totalorder %s5361_s20, 2  ;;  %s3974_s0 = sand.u32 1, %s5349_s17  }
 0x515   : > { %s3975_s15 = scalar_lea.sflag [#allocation3], %s3974_s0 }
 0x516   : > { %p5260_p2 = pnand %p5263_p1, %p5468_p6 }
 0x518   : > { %5344 = dma.done.wait (!%p5260_p2), %s3975_s15, 128  }
 0x519   : > { %5346 = vsyncadd (!%p5260_p2), %s3975_s15, 4294967168  ;;  %p21_p3 = scmp.ge.s32.totalorder %s5451_s23, 4   ;;  %s6447_s17 = smov %s5353_s18 }
 0x51a   : > { %s6448_s18 = smov %s5357_s19  ;;  %s6449_s19 = smov %s5462_s26 }
 0x51b   : > { %s6450_s20 = smov %s5451_s23  ;;  %23 = sbr.rel (!%p21_p3) target bundleno = 5 (0x5), region = 99 }
 0x522   :  { %3980 = vsyncpa [#allocation3], 1 }
 0x523   :  { %3982 = vsyncpa [#allocation3 + $0x1], 1 }

</bundles_post_ra>
